<compile_context>
chip_gen: v5e
topology: v5e:2x2
jax: 0.10.0
libtpu: 0.0.40
codegen_flags: <defaults>
</compile_context>

<pallas_src>
import functools

import jax
import jax.numpy as jnp
from jax import lax
from jax.experimental import pallas as pl
from jax.experimental.pallas import tpu as pltpu


BN_EPS = 0.8          # BatchNorm1d(out_feat, 0.8) -> eps = 0.8
LEAK = 0.2            # LeakyReLU negative slope
LANES = 128           # TPU lane width

# Packed-vector slab row layout (built in prepare_params, read in the kernel).
_ROW_B1, _ROW_G2, _ROW_BE2, _ROW_G3, _ROW_BE3, _ROW_G4, _ROW_BE4, _ROW_B5 = range(8)


def _generator_kernel(z_ref, w1_ref, w2_ref, w3_ref, w4_ref, w5_ref, vec_ref,
                      out_ref):
    out_pad = out_ref.shape[-1]

    # Unpack the (8, W) parameter slab (static slices, tiny).
    b1 = vec_ref[_ROW_B1:_ROW_B1 + 1, 0:128]
    g2 = vec_ref[_ROW_G2:_ROW_G2 + 1, 0:256]
    be2 = vec_ref[_ROW_BE2:_ROW_BE2 + 1, 0:256]
    g3 = vec_ref[_ROW_G3:_ROW_G3 + 1, 0:512]
    be3 = vec_ref[_ROW_BE3:_ROW_BE3 + 1, 0:512]
    g4 = vec_ref[_ROW_G4:_ROW_G4 + 1, 0:1024]
    be4 = vec_ref[_ROW_BE4:_ROW_BE4 + 1, 0:1024]
    b5 = vec_ref[_ROW_B5:_ROW_B5 + 1, 0:out_pad]

    def linear(x, w_ref):
        # bf16 operands (weights already stored bf16) -> native MXU pass,
        # f32 accumulation.  Layers 2-4 need no bias (BN cancels it exactly).
        return jnp.dot(x.astype(jnp.bfloat16), w_ref[...],
                       preferred_element_type=jnp.float32)

    def leaky_relu(x):
        return jnp.maximum(x, LEAK * x)

    def batchnorm(x, g, be):
        # Training-mode BN over the full group batch: batch mean, biased batch
        # variance, eps = 0.8.  Folded into per-feature scale/shift so the
        # (B, D) work is one multiply + one add; rsqrt lands on the EUP slot.
        mean = jnp.mean(x, axis=0, keepdims=True)
        var = jnp.mean(x * x, axis=0, keepdims=True) - mean * mean
        scale = lax.rsqrt(var + BN_EPS) * g
        shift = be - mean * scale
        return x * scale + shift

    h = leaky_relu(linear(z_ref[...], w1_ref) + b1)
    h = leaky_relu(batchnorm(linear(h, w2_ref), g2, be2))
    h = leaky_relu(batchnorm(linear(h, w3_ref), g3, be3))
    h = leaky_relu(batchnorm(linear(h, w4_ref), g4, be4))
    out_ref[...] = jnp.tanh(linear(h, w5_ref) + b5)


def _round_up(n, m):
    return ((n + m - 1) // m) * m


def _pad_axis(x, axis, target):
    pad = target - x.shape[axis]
    if pad <= 0:
        return x
    widths = [(0, 0)] * x.ndim
    widths[axis] = (0, pad)
    return jnp.pad(x, widths)


def prepare_params(params):
    """One-time prep.

    - Pads W1 rows (input_dim) and W5 cols / b5 (output_dim) to lane-dense 128
      multiples with zeros (math unchanged).
    - Casts weight matrices to bf16 (MXU operand dtype).
    - Drops b2/b3/b4 (cancelled exactly by training-mode BN mean subtraction).
    - Packs all remaining (1, D) vectors into a single (8, W) f32 slab.
    """
    (w1, b1, w2, _b2, g2, be2, w3, _b3, g3, be3, w4, _b4, g4, be4,
     w5, b5) = params

    in_pad = _round_up(w1.shape[0], LANES)
    out_pad = _round_up(w5.shape[1], LANES)
    w1 = _pad_axis(w1, 0, in_pad)
    w5 = _pad_axis(w5, 1, out_pad)
    b5 = _pad_axis(b5, 1, out_pad)

    slab_w = max(1024, out_pad)
    vec = jnp.zeros((8, slab_w), jnp.float32)
    rows = [(_ROW_B1, b1), (_ROW_G2, g2), (_ROW_BE2, be2),
            (_ROW_G3, g3), (_ROW_BE3, be3), (_ROW_G4, g4), (_ROW_BE4, be4),
            (_ROW_B5, b5)]
    for row, v in rows:
        flat = v.astype(jnp.float32).reshape(-1)
        vec = vec.at[row, : flat.shape[0]].set(flat)

    weights = tuple(w.astype(jnp.bfloat16) for w in (w1, w2, w3, w4, w5))
    return weights + (vec,)


@functools.partial(jax.jit, static_argnames=("output_dim",))
def generator_forward(z, prepped_params, *, output_dim):
    """Forward pass.

    z: (B, input_dim) for a single batch, or (G, B, input_dim) for G
    independent batches (each group gets its own BatchNorm statistics, exactly
    like G separate calls to the PyTorch module).  Weights are DMA'd to VMEM
    once and stay resident across the G grid steps.
    """
    w1, w2, w3, w4, w5, vec = prepped_params
    squeeze = (z.ndim == 2)
    if squeeze:
        z = z[None]
    G, B, _ = z.shape
    in_pad = w1.shape[0]
    out_pad = w5.shape[1]
    z_p = _pad_axis(z.astype(jnp.float32), 2, in_pad)

    def full_spec(a):
        return pl.BlockSpec(a.shape, lambda g: (0,) * a.ndim)

    flops = 2 * G * B * (in_pad * 128 + 128 * 256 + 256 * 512
                         + 512 * 1024 + 1024 * out_pad)
    bytes_accessed = (sum(int(w.size) * 2 for w in (w1, w2, w3, w4, w5))
                      + int(vec.size) * 4
                      + int(z_p.size) * 4
                      + G * B * out_pad * 4)
    cost = pl.CostEstimate(flops=flops,
                           transcendentals=G * B * out_pad,
                           bytes_accessed=bytes_accessed)

    out_padded = pl.pallas_call(
        _generator_kernel,
        out_shape=jax.ShapeDtypeStruct((G, B, out_pad), jnp.float32),
        grid=(G,),
        in_specs=[
            pl.BlockSpec((None, B, in_pad), lambda g: (g, 0, 0)),  # z: per-step
            full_spec(w1), full_spec(w2), full_spec(w3),           # weights:
            full_spec(w4), full_spec(w5), full_spec(vec),          # resident
        ],
        out_specs=pl.BlockSpec((None, B, out_pad), lambda g: (g, 0, 0)),
        compiler_params=pltpu.CompilerParams(
            dimension_semantics=("parallel",)),   # v7x: split groups over 2 TCs
        cost_estimate=cost,
    )(z_p, w1, w2, w3, w4, w5, vec)

    out = out_padded[..., :output_dim]
    return out[0] if squeeze else out


def init_params(key, input_dim, output_dim):
    """Deterministic synthetic init (shapes match the PyTorch module), f32."""
    dims = [input_dim, 128, 256, 512, 1024, output_dim]
    keys = jax.random.split(key, len(dims) - 1)
    params = []
    for i, (din, dout) in enumerate(zip(dims[:-1], dims[1:])):
        kw, kb = jax.random.split(keys[i])
        scale = 1.0 / jnp.sqrt(jnp.float32(din))
        w = jax.random.uniform(kw, (din, dout), jnp.float32, -scale, scale)
        b = jax.random.uniform(kb, (1, dout), jnp.float32, -scale, scale)
        params.extend([w, b])
        # BatchNorm follows layers 2, 3, 4 (blocks with normalize=True).
        if i in (1, 2, 3):
            gamma = jnp.ones((1, dout), jnp.float32)
            beta = jnp.zeros((1, dout), jnp.float32)
            params.extend([gamma, beta])
    return tuple(params)


def _reference_forward(z, params):
    """Plain-JAX reference (keeps the b2/b3/b4 biases, same bf16 matmul math)."""
    p = list(params)

    def lin(x, w, b):
        return jnp.dot(x.astype(jnp.bfloat16), w.astype(jnp.bfloat16),
                       preferred_element_type=jnp.float32) + b

    def lrelu(x):
        return jnp.maximum(x, LEAK * x)

    def bn(x, g, be):
        m = jnp.mean(x, axis=0, keepdims=True)
        v = jnp.mean(x * x, axis=0, keepdims=True) - m * m
        scale = g / jnp.sqrt(v + BN_EPS)
        return x * scale + (be - m * scale)

    h = lrelu(lin(z, p[0], p[1]))
    h = lrelu(bn(lin(h, p[2], p[3]), p[4], p[5]))
    h = lrelu(bn(lin(h, p[6], p[7]), p[8], p[9]))
    h = lrelu(bn(lin(h, p[10], p[11]), p[12], p[13]))
    return jnp.tanh(lin(h, p[14], p[15]))


if __name__ == "__main__":
    G, B, INPUT_DIM, OUTPUT_DIM = 4, 8, 32, 64

    key = jax.random.PRNGKey(0)
    kz, kp = jax.random.split(key)
    z = jax.random.normal(kz, (G, B, INPUT_DIM), jnp.float32)
    params = init_params(kp, INPUT_DIM, OUTPUT_DIM)
    prepped = prepare_params(params)

    # Multi-group path: grid=(G,) with VMEM-resident weights.
    out = generator_forward(z, prepped, output_dim=OUTPUT_DIM)
    out = jax.block_until_ready(out)
    assert out.shape == (G, B, OUTPUT_DIM)
    for g in range(G):
        ref = _reference_forward(z[g], params)
        assert jnp.allclose(out[g], ref, atol=5e-3, rtol=5e-3), (
            f"mismatch vs reference in group {g}")

    # Single-batch (2D) path matches group 0 of the batched run.
    out_single = generator_forward(z[0], prepped, output_dim=OUTPUT_DIM)
    out_single = jax.block_until_ready(out_single)
    assert out_single.shape == (B, OUTPUT_DIM)
    assert jnp.allclose(out_single, out[0], atol=1e-5, rtol=1e-5), (
        "2D path disagrees with batched path")

    print("KERNEL_OK")
</pallas_src>

<mosaic_0001>
module attributes {stable_mosaic.version = 11 : i64} {
  func.func @_generator_kernel(%arg0: i32, %arg1: memref<1x8x128xf32, #tpu.memory_space<vmem>>, %arg2: memref<128x128xbf16, #tpu.memory_space<vmem>>, %arg3: memref<128x256xbf16, #tpu.memory_space<vmem>>, %arg4: memref<256x512xbf16, #tpu.memory_space<vmem>>, %arg5: memref<512x1024xbf16, #tpu.memory_space<vmem>>, %arg6: memref<1024x128xbf16, #tpu.memory_space<vmem>>, %arg7: memref<8x1024xf32, #tpu.memory_space<vmem>>, %arg8: memref<1x8x128xf32, #tpu.memory_space<vmem>>) attributes {dimension_semantics = [#tpu.dimension_semantics<parallel>], iteration_bounds = array<i64: 4>, scalar_prefetch = 0 : i64, scratch_operands = 0 : i64, tpu.core_type = #tpu.core_type<tc>, window_params = [{transform_indices = @transform_0, window_bounds = array<i64: 1, 8, 128>}, {pipeline_mode = #tpu.pipeline_mode<synchronous>, transform_indices = @transform_1, window_bounds = array<i64: 128, 128>}, {pipeline_mode = #tpu.pipeline_mode<synchronous>, transform_indices = @transform_2, window_bounds = array<i64: 128, 256>}, {pipeline_mode = #tpu.pipeline_mode<synchronous>, transform_indices = @transform_3, window_bounds = array<i64: 256, 512>}, {pipeline_mode = #tpu.pipeline_mode<synchronous>, transform_indices = @transform_4, window_bounds = array<i64: 512, 1024>}, {pipeline_mode = #tpu.pipeline_mode<synchronous>, transform_indices = @transform_5, window_bounds = array<i64: 1024, 128>}, {pipeline_mode = #tpu.pipeline_mode<synchronous>, transform_indices = @transform_6, window_bounds = array<i64: 8, 1024>}, {transform_indices = @transform_7, window_bounds = array<i64: 1, 8, 128>}]} {
    %c0 = arith.constant 0 : index
    %c0_0 = arith.constant 0 : index
    %0 = vector.load %arg7[%c0, %c0_0] : memref<8x1024xf32, #tpu.memory_space<vmem>>, vector<1x128xf32>
    %c1 = arith.constant 1 : index
    %c0_1 = arith.constant 0 : index
    %1 = vector.load %arg7[%c1, %c0_1] : memref<8x1024xf32, #tpu.memory_space<vmem>>, vector<1x256xf32>
    %c2 = arith.constant 2 : index
    %c0_2 = arith.constant 0 : index
    %2 = vector.load %arg7[%c2, %c0_2] : memref<8x1024xf32, #tpu.memory_space<vmem>>, vector<1x256xf32>
    %c3 = arith.constant 3 : index
    %c0_3 = arith.constant 0 : index
    %3 = vector.load %arg7[%c3, %c0_3] : memref<8x1024xf32, #tpu.memory_space<vmem>>, vector<1x512xf32>
    %c4 = arith.constant 4 : index
    %c0_4 = arith.constant 0 : index
    %4 = vector.load %arg7[%c4, %c0_4] : memref<8x1024xf32, #tpu.memory_space<vmem>>, vector<1x512xf32>
    %c5 = arith.constant 5 : index
    %c0_5 = arith.constant 0 : index
    %5 = vector.load %arg7[%c5, %c0_5] : memref<8x1024xf32, #tpu.memory_space<vmem>>, vector<1x1024xf32>
    %c6 = arith.constant 6 : index
    %c0_6 = arith.constant 0 : index
    %6 = vector.load %arg7[%c6, %c0_6] : memref<8x1024xf32, #tpu.memory_space<vmem>>, vector<1x1024xf32>
    %c7 = arith.constant 7 : index
    %c0_7 = arith.constant 0 : index
    %7 = vector.load %arg7[%c7, %c0_7] : memref<8x1024xf32, #tpu.memory_space<vmem>>, vector<1x128xf32>
    %c0_8 = arith.constant 0 : index
    %c0_9 = arith.constant 0 : index
    %c0_10 = arith.constant 0 : index
    %8 = vector.load %arg1[%c0_8, %c0_9, %c0_10] : memref<1x8x128xf32, #tpu.memory_space<vmem>>, vector<1x8x128xf32>
    %9 = vector.shape_cast %8 : vector<1x8x128xf32> to vector<8x128xf32>
    %10 = arith.truncf %9 : vector<8x128xf32> to vector<8x128xbf16>
    %c0_11 = arith.constant 0 : index
    %c0_12 = arith.constant 0 : index
    %11 = vector.load %arg2[%c0_11, %c0_12] : memref<128x128xbf16, #tpu.memory_space<vmem>>, vector<128x128xbf16>
    %cst = arith.constant dense<0.000000e+00> : vector<8x128xf32>
    %12 = tpu.matmul %10, %11, %cst {dimension_numbers = #tpu.dot_dimension_numbers<[1], [0], [0], [1], [0, 0, 1, 1], [], []>} : vector<8x128xbf16>, vector<128x128xbf16>, vector<8x128xf32> -> vector<8x128xf32>
    %13 = vector.broadcast %0 : vector<1x128xf32> to vector<8x128xf32>
    %14 = arith.addf %12, %13 : vector<8x128xf32>
    %cst_13 = arith.constant 2.000000e-01 : f32
    %15 = vector.broadcast %cst_13 : f32 to vector<8x128xf32>
    %16 = arith.mulf %15, %14 : vector<8x128xf32>
    %17 = arith.maximumf %14, %16 : vector<8x128xf32>
    %18 = arith.truncf %17 : vector<8x128xf32> to vector<8x128xbf16>
    %c0_14 = arith.constant 0 : index
    %c0_15 = arith.constant 0 : index
    %19 = vector.load %arg3[%c0_14, %c0_15] : memref<128x256xbf16, #tpu.memory_space<vmem>>, vector<128x256xbf16>
    %cst_16 = arith.constant dense<0.000000e+00> : vector<8x256xf32>
    %20 = tpu.matmul %18, %19, %cst_16 {dimension_numbers = #tpu.dot_dimension_numbers<[1], [0], [0], [1], [0, 0, 1, 1], [], []>} : vector<8x128xbf16>, vector<128x256xbf16>, vector<8x256xf32> -> vector<8x256xf32>
    %cst_17 = arith.constant dense<0.000000e+00> : vector<256xf32>
    %21 = vector.multi_reduction <add>, %20, %cst_17 [0] : vector<8x256xf32> to vector<256xf32>
    %22 = vector.shape_cast %21 : vector<256xf32> to vector<1x256xf32>
    %cst_18 = arith.constant 8.000000e+00 : f32
    %23 = vector.broadcast %cst_18 : f32 to vector<1x256xf32>
    %24 = arith.divf %22, %23 : vector<1x256xf32>
    %25 = arith.mulf %20, %20 : vector<8x256xf32>
    %cst_19 = arith.constant dense<0.000000e+00> : vector<256xf32>
    %26 = vector.multi_reduction <add>, %25, %cst_19 [0] : vector<8x256xf32> to vector<256xf32>
    %27 = vector.shape_cast %26 : vector<256xf32> to vector<1x256xf32>
    %cst_20 = arith.constant 8.000000e+00 : f32
    %28 = vector.broadcast %cst_20 : f32 to vector<1x256xf32>
    %29 = arith.divf %27, %28 : vector<1x256xf32>
    %30 = arith.mulf %24, %24 : vector<1x256xf32>
    %31 = arith.subf %29, %30 : vector<1x256xf32>
    %cst_21 = arith.constant 8.000000e-01 : f32
    %32 = vector.broadcast %cst_21 : f32 to vector<1x256xf32>
    %33 = arith.addf %31, %32 : vector<1x256xf32>
    %34 = math.rsqrt %33 : vector<1x256xf32>
    %35 = arith.mulf %34, %1 : vector<1x256xf32>
    %36 = arith.mulf %24, %35 : vector<1x256xf32>
    %37 = arith.subf %2, %36 : vector<1x256xf32>
    %38 = vector.broadcast %35 : vector<1x256xf32> to vector<8x256xf32>
    %39 = arith.mulf %20, %38 : vector<8x256xf32>
    %40 = vector.broadcast %37 : vector<1x256xf32> to vector<8x256xf32>
    %41 = arith.addf %39, %40 : vector<8x256xf32>
    %cst_22 = arith.constant 2.000000e-01 : f32
    %42 = vector.broadcast %cst_22 : f32 to vector<8x256xf32>
    %43 = arith.mulf %42, %41 : vector<8x256xf32>
    %44 = arith.maximumf %41, %43 : vector<8x256xf32>
    %45 = arith.truncf %44 : vector<8x256xf32> to vector<8x256xbf16>
    %c0_23 = arith.constant 0 : index
    %c0_24 = arith.constant 0 : index
    %46 = vector.load %arg4[%c0_23, %c0_24] : memref<256x512xbf16, #tpu.memory_space<vmem>>, vector<256x512xbf16>
    %cst_25 = arith.constant dense<0.000000e+00> : vector<8x512xf32>
    %47 = tpu.matmul %45, %46, %cst_25 {dimension_numbers = #tpu.dot_dimension_numbers<[1], [0], [0], [1], [0, 0, 1, 1], [], []>} : vector<8x256xbf16>, vector<256x512xbf16>, vector<8x512xf32> -> vector<8x512xf32>
    %cst_26 = arith.constant dense<0.000000e+00> : vector<512xf32>
    %48 = vector.multi_reduction <add>, %47, %cst_26 [0] : vector<8x512xf32> to vector<512xf32>
    %49 = vector.shape_cast %48 : vector<512xf32> to vector<1x512xf32>
    %cst_27 = arith.constant 8.000000e+00 : f32
    %50 = vector.broadcast %cst_27 : f32 to vector<1x512xf32>
    %51 = arith.divf %49, %50 : vector<1x512xf32>
    %52 = arith.mulf %47, %47 : vector<8x512xf32>
    %cst_28 = arith.constant dense<0.000000e+00> : vector<512xf32>
    %53 = vector.multi_reduction <add>, %52, %cst_28 [0] : vector<8x512xf32> to vector<512xf32>
    %54 = vector.shape_cast %53 : vector<512xf32> to vector<1x512xf32>
    %cst_29 = arith.constant 8.000000e+00 : f32
    %55 = vector.broadcast %cst_29 : f32 to vector<1x512xf32>
    %56 = arith.divf %54, %55 : vector<1x512xf32>
    %57 = arith.mulf %51, %51 : vector<1x512xf32>
    %58 = arith.subf %56, %57 : vector<1x512xf32>
    %cst_30 = arith.constant 8.000000e-01 : f32
    %59 = vector.broadcast %cst_30 : f32 to vector<1x512xf32>
    %60 = arith.addf %58, %59 : vector<1x512xf32>
    %61 = math.rsqrt %60 : vector<1x512xf32>
    %62 = arith.mulf %61, %3 : vector<1x512xf32>
    %63 = arith.mulf %51, %62 : vector<1x512xf32>
    %64 = arith.subf %4, %63 : vector<1x512xf32>
    %65 = vector.broadcast %62 : vector<1x512xf32> to vector<8x512xf32>
    %66 = arith.mulf %47, %65 : vector<8x512xf32>
    %67 = vector.broadcast %64 : vector<1x512xf32> to vector<8x512xf32>
    %68 = arith.addf %66, %67 : vector<8x512xf32>
    %cst_31 = arith.constant 2.000000e-01 : f32
    %69 = vector.broadcast %cst_31 : f32 to vector<8x512xf32>
    %70 = arith.mulf %69, %68 : vector<8x512xf32>
    %71 = arith.maximumf %68, %70 : vector<8x512xf32>
    %72 = arith.truncf %71 : vector<8x512xf32> to vector<8x512xbf16>
    %c0_32 = arith.constant 0 : index
    %c0_33 = arith.constant 0 : index
    %73 = vector.load %arg5[%c0_32, %c0_33] : memref<512x1024xbf16, #tpu.memory_space<vmem>>, vector<512x1024xbf16>
    %cst_34 = arith.constant dense<0.000000e+00> : vector<8x1024xf32>
    %74 = tpu.matmul %72, %73, %cst_34 {dimension_numbers = #tpu.dot_dimension_numbers<[1], [0], [0], [1], [0, 0, 1, 1], [], []>} : vector<8x512xbf16>, vector<512x1024xbf16>, vector<8x1024xf32> -> vector<8x1024xf32>
    %cst_35 = arith.constant dense<0.000000e+00> : vector<1024xf32>
    %75 = vector.multi_reduction <add>, %74, %cst_35 [0] : vector<8x1024xf32> to vector<1024xf32>
    %76 = vector.shape_cast %75 : vector<1024xf32> to vector<1x1024xf32>
    %cst_36 = arith.constant 8.000000e+00 : f32
    %77 = vector.broadcast %cst_36 : f32 to vector<1x1024xf32>
    %78 = arith.divf %76, %77 : vector<1x1024xf32>
    %79 = arith.mulf %74, %74 : vector<8x1024xf32>
    %cst_37 = arith.constant dense<0.000000e+00> : vector<1024xf32>
    %80 = vector.multi_reduction <add>, %79, %cst_37 [0] : vector<8x1024xf32> to vector<1024xf32>
    %81 = vector.shape_cast %80 : vector<1024xf32> to vector<1x1024xf32>
    %cst_38 = arith.constant 8.000000e+00 : f32
    %82 = vector.broadcast %cst_38 : f32 to vector<1x1024xf32>
    %83 = arith.divf %81, %82 : vector<1x1024xf32>
    %84 = arith.mulf %78, %78 : vector<1x1024xf32>
    %85 = arith.subf %83, %84 : vector<1x1024xf32>
    %cst_39 = arith.constant 8.000000e-01 : f32
    %86 = vector.broadcast %cst_39 : f32 to vector<1x1024xf32>
    %87 = arith.addf %85, %86 : vector<1x1024xf32>
    %88 = math.rsqrt %87 : vector<1x1024xf32>
    %89 = arith.mulf %88, %5 : vector<1x1024xf32>
    %90 = arith.mulf %78, %89 : vector<1x1024xf32>
    %91 = arith.subf %6, %90 : vector<1x1024xf32>
    %92 = vector.broadcast %89 : vector<1x1024xf32> to vector<8x1024xf32>
    %93 = arith.mulf %74, %92 : vector<8x1024xf32>
    %94 = vector.broadcast %91 : vector<1x1024xf32> to vector<8x1024xf32>
    %95 = arith.addf %93, %94 : vector<8x1024xf32>
    %cst_40 = arith.constant 2.000000e-01 : f32
    %96 = vector.broadcast %cst_40 : f32 to vector<8x1024xf32>
    %97 = arith.mulf %96, %95 : vector<8x1024xf32>
    %98 = arith.maximumf %95, %97 : vector<8x1024xf32>
    %99 = arith.truncf %98 : vector<8x1024xf32> to vector<8x1024xbf16>
    %c0_41 = arith.constant 0 : index
    %c0_42 = arith.constant 0 : index
    %100 = vector.load %arg6[%c0_41, %c0_42] : memref<1024x128xbf16, #tpu.memory_space<vmem>>, vector<1024x128xbf16>
    %cst_43 = arith.constant dense<0.000000e+00> : vector<8x128xf32>
    %101 = tpu.matmul %99, %100, %cst_43 {dimension_numbers = #tpu.dot_dimension_numbers<[1], [0], [0], [1], [0, 0, 1, 1], [], []>} : vector<8x1024xbf16>, vector<1024x128xbf16>, vector<8x128xf32> -> vector<8x128xf32>
    %102 = vector.broadcast %7 : vector<1x128xf32> to vector<8x128xf32>
    %103 = arith.addf %101, %102 : vector<8x128xf32>
    %104 = math.tanh %103 : vector<8x128xf32>
    %c0_44 = arith.constant 0 : index
    %c0_45 = arith.constant 0 : index
    %c0_46 = arith.constant 0 : index
    %105 = vector.load %arg8[%c0_44, %c0_45, %c0_46] : memref<1x8x128xf32, #tpu.memory_space<vmem>>, vector<1x8x128xf32>
    %106 = vector.shape_cast %105 : vector<1x8x128xf32> to vector<8x128xf32>
    %107 = vector.shape_cast %104 : vector<8x128xf32> to vector<1x8x128xf32>
    tpu.vector_store %arg8[%c0_44, %c0_45, %c0_46], %107 {strides = array<i32>} : memref<1x8x128xf32, #tpu.memory_space<vmem>>, vector<1x8x128xf32>,
    return
  }
  func.func @transform_0(%arg0: i32) -> (i32, i32, i32) {
    %c0_i32 = arith.constant 0 : i32
    %c0_i32_0 = arith.constant 0 : i32
    %c0_i32_1 = arith.constant 0 : i32
    return %arg0, %c0_i32, %c0_i32_0 : i32, i32, i32
  }
  func.func @transform_1(%arg0: i32) -> (i32, i32) {
    %c0_i32 = arith.constant 0 : i32
    %c0_i32_0 = arith.constant 0 : i32
    %c0_i32_1 = arith.constant 0 : i32
    return %c0_i32, %c0_i32_0 : i32, i32
  }
  func.func @transform_2(%arg0: i32) -> (i32, i32) {
    %c0_i32 = arith.constant 0 : i32
    %c0_i32_0 = arith.constant 0 : i32
    %c0_i32_1 = arith.constant 0 : i32
    return %c0_i32, %c0_i32_0 : i32, i32
  }
  func.func @transform_3(%arg0: i32) -> (i32, i32) {
    %c0_i32 = arith.constant 0 : i32
    %c0_i32_0 = arith.constant 0 : i32
    %c0_i32_1 = arith.constant 0 : i32
    return %c0_i32, %c0_i32_0 : i32, i32
  }
  func.func @transform_4(%arg0: i32) -> (i32, i32) {
    %c0_i32 = arith.constant 0 : i32
    %c0_i32_0 = arith.constant 0 : i32
    %c0_i32_1 = arith.constant 0 : i32
    return %c0_i32, %c0_i32_0 : i32, i32
  }
  func.func @transform_5(%arg0: i32) -> (i32, i32) {
    %c0_i32 = arith.constant 0 : i32
    %c0_i32_0 = arith.constant 0 : i32
    %c0_i32_1 = arith.constant 0 : i32
    return %c0_i32, %c0_i32_0 : i32, i32
  }
  func.func @transform_6(%arg0: i32) -> (i32, i32) {
    %c0_i32 = arith.constant 0 : i32
    %c0_i32_0 = arith.constant 0 : i32
    %c0_i32_1 = arith.constant 0 : i32
    return %c0_i32, %c0_i32_0 : i32, i32
  }
  func.func @transform_7(%arg0: i32) -> (i32, i32, i32) {
    %c0_i32 = arith.constant 0 : i32
    %c0_i32_0 = arith.constant 0 : i32
    %c0_i32_1 = arith.constant 0 : i32
    return %arg0, %c0_i32, %c0_i32_0 : i32, i32, i32
  }
}

</mosaic_0001>

<bundles_post_ra>
// kernel: generator_forward.1
= control target key start
LH: loop header
LB: loop body
LE: loop exit
PB: predicated region body
PF: predicated region fallthrough
CT: control target
= control target key end

     0   :  { %s7424_s0 = inlined_call_operand.vmem [shape: f32[4,8,128], index: 0, kind: input, shape index: {}]   ;;  %s7425_s1 = inlined_call_operand.vmem [shape: bf16[128,128], index: 1, kind: input, shape index: {}]   ;;  %s7426_s2 = inlined_call_operand.hbm [shape: bf16[128,256], index: 2, kind: input, shape index: {}]   ;;  %s7427_s3 = inlined_call_operand.hbm [shape: bf16[256,512], index: 3, kind: input, shape index: {}]   ;;  %s7428_s4 = inlined_call_operand.hbm [shape: bf16[512,1024], index: 4, kind: input, shape index: {}]   ;;  %s7429_s5 = inlined_call_operand.hbm [shape: bf16[1024,128], index: 5, kind: input, shape index: {}]   ;;  %s7430_s6 = inlined_call_operand.hbm [shape: f32[8,1024], index: 6, kind: input, shape index: {}]   ;;  %s7431_s7 = inlined_call_operand.hbm [shape: f32[4,8,128], index: 7, kind: output, shape index: {}]  }
   0x1   :  { %7433 = sst [smem:[#allocation18_spill]] %s7427_s3 }
   0x2   :  { %7434 = sst [smem:[#allocation19_spill]] %s7429_s5 }
   0x3   :  { %12 = vsyncpa [#allocation3], 0 }
   0x4   :  { %13 = vsyncpa [#allocation6], 0 }
   0x5   :  { %14 = vsyncpa [#allocation9], 0 }
   0x6   :  { %15 = vsyncpa [#allocation4], 0 }
   0x7   :  { %17 = vsyncpa [#allocation4 + $0x1], 0  ;;  %s6853_s24 = smov 0   ;;  %s6855_s25 = smov 0  }
   0x8   :  { %s6857_s26 = smov 0   ;;  %s6859_s27 = smov 0  }
   0x9 LB: > { %7435 = sst [smem:[#allocation16_spill]] %s6793_s26  ;;  %s6874_s28 = sadd.s32 4294967295, %s6797_s27   ;;  %s6797_s27 = sphi %s6859_s27, %s7453_s27   ;;  %s6793_s26 = sphi %s6857_s26, %s7450_s26   ;;  %s6789_s25 = sphi %s6855_s25, %s7452_s25   ;;  %s6785_s24 = sphi %s6853_s24, %s7451_s24  }
   0xa   : > { %s4382_s29 = sadd.s32 4294967294, %s6797_s27   ;;  %s6878_s30 = sadd.s32 1, %s6797_s27  }
   0xb   : > { %s182_s8 = sadd.s32 1, %s6793_s26  ;;  %s179_s9 = ssub.s32 %s6797_s27, %s6878_s30 }
   0xc   : > { %p192_p0 = scmp.ne.s32.totalorder %s6793_s26, %s6789_s25  ;;  %p180_p1 = scmp.eq.s32.totalorder %s179_s9, 0 }
   0xd   : > { %p193_p2 = scmp.eq.s32.totalorder %s6874_s28, 3  ;;  %p198_p3 = scmp.ne.s32.totalorder %s6789_s25, %s6785_s24 }
   0xe   : > { %p199_p4 = scmp.eq.s32.totalorder %s4382_s29, 3  ;;  %p4383_p7 = scmp.ge.s32.totalorder %s6797_s27, 1 }
   0xf   : > { %s6889_s10 = scalar_select %p180_p1, %s6793_s26, %s182_s8  }
  0x10   : > { %p6891_p5 = por %p193_p2, %p192_p0  ;;  %p6895_p6 = por %p199_p4, %p198_p3 }
  0x11   : > { %7436 = sst [smem:[#allocation17_spill]] %s6889_s10  ;;  %p206_p8 = scmp.lt.s32.totalorder %s6797_s27, 5 }
  0x12   : > { %p6484_p9 = scmp.eq.s32.totalorder %s6874_s28, 0  ;;  %s7440_s3 = sld [smem:[#allocation18_spill]] }
  0x13   : > { %p6902_p10 = pnand %p4383_p7, %p206_p8  ;;  %s6799_s17 = smov [#allocation5]  }
  0x14   : > { %s236_s18 = sshll.u32 %s6799_s17, 4  ;;  %s7442_s5 = sld [smem:[#allocation19_spill]]  ;;  %s237_s18 = int_to_ptr.vmem [resolvable:$true] %s236_s18 }
  0x15   : > { %p6464_p11 = pneg %p6902_p10  ;;  %s6800_s23 = smov 256  }
  0x16   : > { %s6801_s29 = smov 16   ;;  %s6802_s8 = smov [#allocation8]  }
  0x17   : > { %p6913_p12 = pnand %p6484_p9, %p6464_p11  ;;  %s264_s9 = sshll.u32 %s6802_s8, 4  ;;  %s265_s9 = int_to_ptr.vmem [resolvable:$true] %s264_s9 }
  0x18   : > { %s234_s16 = sshll.u32 %s7440_s3, 4  ;;  %s6803_s14 = smov 64   ;;  %s235_s16 = int_to_ptr.hbm [resolvable:$true] %s234_s16 }
  0x19   : > { %6470 = dma.hbm_to_vmem [thread:$0]  (!%p6913_p12), %s235_s16, 8192, %s237_s18, [#allocation6], %s6800_s23, %s6800_s23, %s6801_s29  }
  0x1a   : > { %s262_s22 = sshll.u32 %s7442_s5, 4  ;;  %s6804_s15 = smov 4   ;;  %s263_s22 = int_to_ptr.hbm [resolvable:$true] %s262_s22 }
  0x1b   : > { %6476 = dma.hbm_to_vmem [thread:$0]  (!%p6913_p12), %s263_s22, 8192, %s265_s9, [#allocation9], %s6803_s14, %s6803_s14, %s6804_s15  }
  0x1c   : > { %s220_s20 = sshll.u32 %s7426_s2, 4  ;;  %s6805_s21 = smov [#allocation2]   ;;  %s221_s20 = int_to_ptr.hbm [resolvable:$true] %s220_s20 }
  0x1d   : > { %s222_s5 = sshll.u32 %s6805_s21, 4  ;;  %s248_s16 = sshll.u32 %s7428_s4, 4  ;;  %s223_s5 = int_to_ptr.vmem [resolvable:$true] %s222_s5  ;;  %s249_s16 = int_to_ptr.hbm [resolvable:$true] %s248_s16 }
  0x1e   : > { %s6806_s18 = smov 128   ;;  %s6807_s23 = smov 8  }
  0x1f   : > { %6467 = dma.hbm_to_vmem [thread:$0]  (!%p6913_p12), %s221_s20, 2048, %s223_s5, [#allocation3], %s6806_s18, %s6806_s18, %s6807_s23  }
  0x20   : > { %s6808_s22 = smov [#allocation7]   ;;  %s6809_s3 = smov 512  }
  0x21   : > { %s250_s29 = sshll.u32 %s6808_s22, 4  ;;  %s6810_s8 = smov 32   ;;  %s251_s29 = int_to_ptr.vmem [resolvable:$true] %s250_s29 }
  0x22   : > { %6473 = dma.hbm_to_vmem [thread:$0]  (!%p6913_p12), %s249_s16, 32768, %s251_s29, [#allocation6], %s6809_s3, %s6809_s3, %s6810_s8  }
  0x23   : > { %s277_s15 = sshll.u32 %s7430_s6, 4  ;;  %s6811_s26 = smov [#allocation10]   ;;  %s278_s15 = int_to_ptr.hbm [resolvable:$true] %s277_s15 }
  0x24   : > { %s279_s10 = sshll.u32 %s6811_s26, 4  ;;  %299 = sbr.rel (%p6902_p10) target bundleno = 1176 (0x498), region = 48  ;;  %s280_s10 = int_to_ptr.vmem [resolvable:$true] %s279_s10 }
  0x25   : > { %6479 = dma.hbm_to_vmem [thread:$0]  (!%p6913_p12), %s278_s15, 1024, %s280_s10, [#allocation9]  }
  0x29   : > { %6768 = dma.done.wait (%p6484_p9), [#allocation3], 2048  }
  0x2a   : > { %6770 = vsyncadd (%p6484_p9), [#allocation3], 4294965248 }
  0x2b   : > { %6772 = dma.done.wait (%p6484_p9), [#allocation6], 40960  }
  0x2c   : > { %6774 = vsyncadd (%p6484_p9), [#allocation6], 4294926336 }
  0x2d   : > { %6776 = dma.done.wait (%p6484_p9), [#allocation9], 9216  }
  0x2e   : > { %6778 = vsyncadd (%p6484_p9), [#allocation9], 4294958080  ;;  %v6041_v0 = vld [vmem:[%s7425_s1 + $0x38] sm:$0xff]  ;;  %v6040_v1 = vld [vmem:[%s7425_s1 + $0x30] sm:$0xff]  ;;  %p351_p13 = scmp.lt.s32.totalorder %s6874_s28, 3  ;;  %vm652_vm7 = vcmask 1040384  }
  0x2f   : > { %439 = vmatpush.bf16.msra.mxu0 %v6041_v0  ;;  %v4488_v2 = vld [vmem:[#allocation2 + $0x70] sm:$0xf]  ;;  %v6057_v3 = vld [vmem:[#allocation2 + $0x74] sm:$0xf0]  ;;  %v6056_v4 = vld [vmem:[#allocation2 + $0x74] sm:$0xf] }
  0x30   : > { %v4489_v5 = vor.u32 %v6057_v3, %v4488_v2  ;;  %v4490_v6 = vld [vmem:[#allocation2 + $0x78] sm:$0xf0]  ;;  %v4480_v7 = vld [vmem:[#allocation2 + $0x60] sm:$0xf]  ;;  %v6055_v8 = vld [vmem:[#allocation2 + $0x64] sm:$0xf0] }
  0x31   : > { %v4493_v9 = vor.u32 %v6056_v4, %v4490_v6  ;;  %v6054_v10 = vld [vmem:[#allocation2 + $0x64] sm:$0xf]  ;;  %v4482_v11 = vld [vmem:[#allocation2 + $0x68] sm:$0xf0]  ;;  %v4481_v13 = vor.u32 %v6055_v8, %v4480_v7  ;;  %v4472_v15 = vld [vmem:[#allocation2 + $0x50] sm:$0xf] }
  0x32   : > { %v6039_v12 = vld [vmem:[%s7425_s1 + $0x28] sm:$0xff]  ;;  %551 = vmatpush.bf16.msra.mxu1 %v4489_v5  ;;  %v4485_v14 = vor.u32 %v6054_v10, %v4482_v11  ;;  %v6053_v16 = vld [vmem:[#allocation2 + $0x54] sm:$0xf0]  ;;  %v6052_v17 = vld [vmem:[#allocation2 + $0x54] sm:$0xf]  ;;  %s352_s29 = scalar_select %p351_p13, %s6874_s28, 3 }
  0x33   : > { %440 = vmatpush.bf16.msra.mxu0 %v6040_v1  ;;  %564 = vmatpush.bf16.msra.mxu2 %v4493_v9  ;;  %v4474_v18 = vld [vmem:[#allocation2 + $0x58] sm:$0xf0]  ;;  %v6038_v19 = vld [vmem:[%s7425_s1 + $0x20] sm:$0xff]  ;;  %v4473_v20 = vor.u32 %v6053_v16, %v4472_v15  ;;  %v6051_v23 = vld [vmem:[#allocation2 + $0x44] sm:$0xf0]  ;;  %v6812_v1 = vmov 8.0  }
  0x34   : > { %v4477_v21 = vor.u32 %v6052_v17, %v4474_v18  ;;  %v4464_v22 = vld [vmem:[#allocation2 + $0x40] sm:$0xf]  ;;  %v6050_v24 = vld [vmem:[#allocation2 + $0x44] sm:$0xf]  ;;  %v4466_v25 = vld [vmem:[#allocation2 + $0x48] sm:$0xf0]  ;;  %6541 = vrcp.f32 %v6812_v1 }
  0x35   : > { %v6037_v26 = vld [vmem:[%s7425_s1 + $0x18] sm:$0xff]  ;;  %v4465_v27 = vor.u32 %v6051_v23, %v4464_v22  ;;  %v4469_v28 = vor.u32 %v6050_v24, %v4466_v25  ;;  %v4456_v29 = vld [vmem:[#allocation2 + $0x30] sm:$0xf]  ;;  %v6048_v31 = vld [vmem:[#allocation2 + $0x34] sm:$0xf]  ;;  %s4397_s9 = sshll.u32 %s352_s29, 3 }
  0x36   : > { %552 = vmatpush.bf16.msra.mxu1 %v4481_v13  ;;  %v6049_v30 = vld [vmem:[#allocation2 + $0x34] sm:$0xf0]  ;;  %v4458_v32 = vld [vmem:[#allocation2 + $0x38] sm:$0xf0]  ;;  %v6036_v33 = vld [vmem:[%s7425_s1 + $0x10] sm:$0xff]  ;;  %s354_s5 = scalar_lea.vmem %s7424_s0, %s4397_s9  ;;  %s348_s17 = sand.u32 1, %s6789_s25  }
  0x37   : > { %441 = vmatpush.bf16.msra.mxu0 %v6039_v12  ;;  %565 = vmatpush.bf16.msra.mxu2 %v4485_v14  ;;  %v4457_v34 = vor.u32 %v6049_v30, %v4456_v29  ;;  %v4461_v35 = vor.u32 %v6048_v31, %v4458_v32  ;;  %v4448_v36 = vld [vmem:[#allocation2 + $0x20] sm:$0xf]  ;;  %v6047_v37 = vld [vmem:[#allocation2 + $0x24] sm:$0xf0]  ;;  %v6046_v38 = vld [vmem:[#allocation2 + $0x24] sm:$0xf] }
  0x38   : > { %v4450_v39 = vld [vmem:[#allocation2 + $0x28] sm:$0xf0]  ;;  %v4449_v41 = vor.u32 %v6047_v37, %v4448_v36  ;;  %v6034_v43 = vld [vmem:[%s7425_s1] sm:$0xff]  ;;  %v4440_v46 = vld [vmem:[#allocation2 + $0x10] sm:$0xf]  ;;  %s4396_s20 = sshll.u32 %s348_s17, 3 }
  0x39   : > { %v6035_v40 = vld [vmem:[%s7425_s1 + $0x8] sm:$0xff]  ;;  %v4453_v42 = vor.u32 %v6046_v38, %v4450_v39  ;;  %v373_v44 = vld [vmem:[%s354_s5] sm:$0xff]  ;;  %v6045_v47 = vld [vmem:[#allocation2 + $0x14] sm:$0xf0]  ;;  %s6031_s21 = sshll.u32 %s6874_s28, 3  ;;  %s350_s22 = scalar_lea.vmem [#allocation11], %s4396_s20 }
  0x3a   : > { %553 = vmatpush.bf16.msra.mxu1 %v4473_v20  ;;  %v374_v45 = vpack.c.bf16 %v373_v44, %v373_v44  ;;  %v6044_v48 = vld [vmem:[#allocation2 + $0x14] sm:$0xf]  ;;  %v4441_v49 = vor.u32 %v6045_v47, %v4440_v46  ;;  %v4442_v50 = vld [vmem:[#allocation2 + $0x18] sm:$0xf0]  ;;  %v4432_v52 = vld [vmem:[#allocation2] sm:$0xf]  ;;  %v6982_v14 = vpop.eup %6541  ;;  %s4268_s23 = scalar_lea.hbm %s7431_s7, %s6031_s21 }
  0x3b   : > { %442 = vmatpush.bf16.msra.mxu0 %v6038_v19  ;;  %566 = vmatpush.bf16.msra.mxu2 %v4477_v21  ;;  %v4445_v51 = vor.u32 %v6044_v48, %v4442_v50  ;;  %v6043_v53 = vld [vmem:[#allocation2 + $0x4] sm:$0xf0]  ;;  %v6042_v54 = vld [vmem:[#allocation2 + $0x4] sm:$0xf]  ;;  %v4434_v56 = vld [vmem:[#allocation2 + $0x8] sm:$0xf0]  ;;  %vm594_vm0 = vweird.f32 %v6982_v14 }
  0x3c   : > { %v4433_v55 = vor.u32 %v6043_v53, %v4432_v52  ;;  %v4437_v57 = vor.u32 %v6042_v54, %v4434_v56  ;;  %v355_v58 = vld [vmem:[#allocation10] ss:$0 sm:$0xff]  ;;  %v6088_v3 = vld [vmem:[#allocation5 + $0xec] sm:$0xf0]  ;;  %v6086_v7 = vld [vmem:[#allocation5 + $0xe4] sm:$0xf] }
  0x3d   : > { %v4608_v2 = vld [vmem:[#allocation5 + $0xe0] sm:$0xf]  ;;  %v6120_v6 = vld [vmem:[#allocation5 + $0x1ec] sm:$0xf0]  ;;  %v4610_v8 = vld [vmem:[#allocation5 + $0xf0] sm:$0xf0] }
  0x3e   : > { %554 = vmatpush.bf16.msra.mxu1 %v4465_v27  ;;  %v4736_v4 = vld [vmem:[#allocation5 + $0x1e0] sm:$0xf]  ;;  %v4609_v5 = vor.u32 %v6088_v3, %v4608_v2  ;;  %v4613_v10 = vor.u32 %v6086_v7, %v4610_v8  ;;  %v6118_v11 = vld [vmem:[#allocation5 + $0x1e4] sm:$0xf]  ;;  %v4738_v12 = vld [vmem:[#allocation5 + $0x1f0] sm:$0xf0] }
  0x3f   : > { %443 = vmatpush.bf16.msra.mxu0 %v6037_v26  ;;  %567 = vmatpush.bf16.msra.mxu2 %v4469_v28  ;;  %v4737_v9 = vor.u32 %v6120_v6, %v4736_v4  ;;  %v4741_v13 = vor.u32 %v6118_v11, %v4738_v12  ;;  %v4592_v15 = vld [vmem:[#allocation5 + $0xc0] sm:$0xf]  ;;  %v6084_v16 = vld [vmem:[#allocation5 + $0xcc] sm:$0xf0]  ;;  %v6082_v20 = vld [vmem:[#allocation5 + $0xc4] sm:$0xf] }
  0x40   : > { %1057 = vmatpush.bf16.msra.mxu3 %v4609_v5  ;;  %v4720_v17 = vld [vmem:[#allocation5 + $0x1c0] sm:$0xf]  ;;  %v4593_v18 = vor.u32 %v6084_v16, %v4592_v15  ;;  %v6116_v19 = vld [vmem:[#allocation5 + $0x1cc] sm:$0xf0]  ;;  %v4594_v21 = vld [vmem:[#allocation5 + $0xd0] sm:$0xf0] }
  0x41   : > { %v4721_v22 = vor.u32 %v6116_v19, %v4720_v17  ;;  %v4597_v23 = vor.u32 %v6082_v20, %v4594_v21  ;;  %v6114_v24 = vld [vmem:[#allocation5 + $0x1c4] sm:$0xf]  ;;  %v4722_v25 = vld [vmem:[#allocation5 + $0x1d0] sm:$0xf0]  ;;  %v590_v26 = vmul.f32 8.0, %v6982_v14  ;;  %s4270_s29 = sshll.u32 %s350_s22, 4  ;;  %s4271_s29 = int_to_ptr.vmem [resolvable:$true] %s4270_s29 }
  0x42   : > { %555 = vmatpush.bf16.msra.mxu1 %v4457_v34  ;;  %v4725_v27 = vor.u32 %v6114_v24, %v4722_v25  ;;  %v4576_v28 = vld [vmem:[#allocation5 + $0xa0] sm:$0xf]  ;;  %v6080_v29 = vld [vmem:[#allocation5 + $0xac] sm:$0xf0]  ;;  %v4578_v34 = vld [vmem:[#allocation5 + $0xb0] sm:$0xf0] }
  0x43   : > { %444 = vmatpush.bf16.msra.mxu0 %v6036_v33  ;;  %568 = vmatpush.bf16.msra.mxu2 %v4461_v35  ;;  %v4704_v30 = vld [vmem:[#allocation5 + $0x1a0] sm:$0xf]  ;;  %v4577_v31 = vor.u32 %v6080_v29, %v4576_v28  ;;  %v6112_v32 = vld [vmem:[#allocation5 + $0x1ac] sm:$0xf0]  ;;  %v6078_v33 = vld [vmem:[#allocation5 + $0xa4] sm:$0xf] }
  0x44   : > { %1058 = vmatpush.bf16.msra.mxu3 %v4593_v18  ;;  %v4705_v35 = vor.u32 %v6112_v32, %v4704_v30  ;;  %v4581_v36 = vor.u32 %v6078_v33, %v4578_v34  ;;  %v6110_v37 = vld [vmem:[#allocation5 + $0x1a4] sm:$0xf]  ;;  %v4706_v38 = vld [vmem:[#allocation5 + $0x1b0] sm:$0xf0]  ;;  %v591_v39 = vsub.f32 1.0, %v590_v26  ;;  %s4272_s3 = sshll.u32 %s4268_s23, 4  ;;  %s4273_s3 = int_to_ptr.hbm [resolvable:$true] %s4272_s3 }
  0x45   : > { %v6074_v46 = vld [vmem:[#allocation5 + $0x84] sm:$0xf]  ;;  %v4562_v47 = vld [vmem:[#allocation5 + $0x90] sm:$0xf0]  ;;  %v4544_v56 = vld [vmem:[#allocation5 + $0x60] sm:$0xf] }
  0x46   : > { %556 = vmatpush.bf16.msra.mxu1 %v4449_v41  ;;  %v4560_v41 = vld [vmem:[#allocation5 + $0x80] sm:$0xf]  ;;  %v6106_v50 = vld [vmem:[#allocation5 + $0x184] sm:$0xf]  ;;  %v4546_v2 = vld [vmem:[#allocation5 + $0x70] sm:$0xf0] }
  0x47   : > { %445 = vmatpush.bf16.msra.mxu0 %v6035_v40  ;;  %569 = vmatpush.bf16.msra.mxu2 %v4453_v42  ;;  %v4709_v40 = vor.u32 %v6110_v37, %v4706_v38  ;;  %v6076_v42 = vld [vmem:[#allocation5 + $0x8c] sm:$0xf0]  ;;  %v6102_v3 = vld [vmem:[#allocation5 + $0x164] sm:$0xf]  ;;  %v4674_v5 = vld [vmem:[#allocation5 + $0x170] sm:$0xf0] }
  0x48   : > { %1059 = vmatpush.bf16.msra.mxu3 %v4577_v31  ;;  %v4561_v44 = vor.u32 %v6076_v42, %v4560_v41  ;;  %v4677_v8 = vor.u32 %v6102_v3, %v4674_v5  ;;  %v4656_v15 = vld [vmem:[#allocation5 + $0x140] sm:$0xf]  ;;  %v6100_v16 = vld [vmem:[#allocation5 + $0x14c] sm:$0xf0]  ;;  %v6066_v17 = vld [vmem:[#allocation5 + $0x44] sm:$0xf] }
  0x49   : > { %v4657_v25 = vor.u32 %v6100_v16, %v4656_v15  ;;  %v4512_v32 = vld [vmem:[#allocation5 + $0x20] sm:$0xf]  ;;  %v6064_v33 = vld [vmem:[#allocation5 + $0x2c] sm:$0xf0]  ;;  %v4626_v5 = vld [vmem:[#allocation5 + $0x110] sm:$0xf0] }
  0x4a   : > { %557 = vmatpush.bf16.msra.mxu1 %v4441_v49  ;;  %v4565_v49 = vor.u32 %v6074_v46, %v4562_v47  ;;  %v4640_v37 = vld [vmem:[#allocation5 + $0x120] sm:$0xf]  ;;  %v6096_v38 = vld [vmem:[#allocation5 + $0x12c] sm:$0xf0]  ;;  %v6094_v46 = vld [vmem:[#allocation5 + $0x124] sm:$0xf] }
  0x4b   : > { %446 = vmatpush.bf16.msra.mxu0 %v6034_v43  ;;  %570 = vmatpush.bf16.msra.mxu2 %v4445_v51  ;;  %v4688_v43 = vld [vmem:[#allocation5 + $0x180] sm:$0xf]  ;;  %v4690_v51 = vld [vmem:[#allocation5 + $0x190] sm:$0xf0]  ;;  %v6121_v16 = vld [vmem:[#allocation5 + $0x1f4] sm:$0xf0] }
  0x4c   : > { %1060 = vmatpush.bf16.msra.mxu3 %v4561_v44  ;;  %v4693_v53 = vor.u32 %v6106_v50, %v4690_v51  ;;  %v4641_v44 = vor.u32 %v6096_v38, %v4640_v37  ;;  %v4642_v50 = vld [vmem:[#allocation5 + $0x130] sm:$0xf0]  ;;  %v4496_v51 = vld [vmem:[#allocation5] sm:$0xf]  ;;  %s4258_s8 = scalar_lea.sflag [#allocation4], %s348_s17  ;;  %s6737_s9 = sshra.s32 %s4273_s3, 4  ;;  %s6738_s9 = int_to_ptr.hbm [resolvable:$true] %s6737_s9 }
  0x4d   : > { %s6739_s28 = scalar_lea.hbm %s6738_s9, 8  ;;  %s6743_s26 = scalar_lea.hbm %s7431_s7, 32 }
  0x4e   : > { %447 = vmatmul.bf16.vlgmr.msra.gmra.mxu0 %v374_v45  ;;  %558 = vmatpush.bf16.msra.mxu1 %v4433_v55  ;;  %v6108_v45 = vld [vmem:[#allocation5 + $0x18c] sm:$0xf0]  ;;  %p6740_p0 = scmp.ne.s32.totalorder %s6738_s9, %s6739_s28  ;;  %p6744_p3 = scmp.lt.s32.totalorder %s6738_s9, %s7431_s7 }
  0x4f   : > { %571 = vmatpush.bf16.msra.mxu2 %v4437_v57  ;;  %1070 = vmatpush.bf16.msrb.mxu0 %v4737_v9  ;;  %v4689_v48 = vor.u32 %v6108_v45, %v4688_v43  ;;  %v6072_v57 = vld [vmem:[#allocation5 + $0x6c] sm:$0xf0]  ;;  %v4528_v9 = vld [vmem:[#allocation5 + $0x40] sm:$0xf]  ;;  %v6062_v43 = vld [vmem:[#allocation5 + $0x24] sm:$0xf]  ;;  %p6745_p4 = scmp.lt.s32.totalorder %s6743_s26, %s6739_s28 }
  0x50   : > { %v4514_v45 = vld [vmem:[#allocation5 + $0x30] sm:$0xf0]  ;;  %p6741_p1 = pnand %p6740_p0, %p6891_p5 }
  0x51   : > { %p6746_p7 = por %p6745_p4, %p6744_p3 }
  0x52   : > { %1083 = vmatpush.bf16.msrb.mxu1 %v4613_v10  ;;  %v6068_v10 = vld [vmem:[#allocation5 + $0x4c] sm:$0xf0]  ;;  %p6742_p2 = pneg %p6741_p1 }
  0x53   : > { %1096 = vmatpush.bf16.msrb.mxu2 %v4741_v13  ;;  %1071 = vmatpush.bf16.msrb.mxu0 %v4721_v22  ;;  %v4529_v13 = vor.u32 %v6068_v10, %v4528_v9  ;;  %v4530_v22 = vld [vmem:[#allocation5 + $0x50] sm:$0xf0]  ;;  %v6089_v10 = vld [vmem:[#allocation5 + $0xf4] sm:$0xf0] }
  0x54   : > { %v4533_v26 = vor.u32 %v6066_v17, %v4530_v22  ;;  %v6087_v17 = vld [vmem:[#allocation5 + $0xec] sm:$0xf]  ;;  %p6747_p8 = pnand %p6746_p7, %p6742_p2 }
  0x56   : > { %1084 = vmatpush.bf16.msrb.mxu1 %v4597_v23  ;;  %v6098_v23 = vld [vmem:[#allocation5 + $0x144] sm:$0xf] }
  0x57   : > { %1097 = vmatpush.bf16.msrb.mxu2 %v4725_v27  ;;  %1072 = vmatpush.bf16.msrb.mxu0 %v4705_v35  ;;  %v4658_v27 = vld [vmem:[#allocation5 + $0x150] sm:$0xf0] }
  0x58   : > { %v4661_v35 = vor.u32 %v6098_v23, %v4658_v27  ;;  %v6119_v23 = vld [vmem:[#allocation5 + $0x1ec] sm:$0xf]  ;;  %v4600_v27 = vld [vmem:[#allocation5 + $0xc8] sm:$0xf] }
  0x5a   : > { %1085 = vmatpush.bf16.msrb.mxu1 %v4581_v36  ;;  %v4513_v36 = vor.u32 %v6064_v33, %v4512_v32  ;;  %v6117_v32 = vld [vmem:[#allocation5 + $0x1d4] sm:$0xf0]  ;;  %v6083_v33 = vld [vmem:[#allocation5 + $0xcc] sm:$0xf] }
  0x5b   : > { %1098 = vmatpush.bf16.msrb.mxu2 %v4709_v40  ;;  %1073 = vmatpush.bf16.msrb.mxu0 %v4689_v48 }
  0x5e   : > { %1086 = vmatpush.bf16.msrb.mxu1 %v4565_v49 }
  0x5f   : > { %1099 = vmatpush.bf16.msrb.mxu2 %v4693_v53 }
  0x63   : > { %1100 = vmatpush.bf16.msrb.mxu2 %v4677_v8 }
  0x67   : > { %1101 = vmatpush.bf16.msrb.mxu2 %v4661_v35  ;;  %v4602_v35 = vld [vmem:[#allocation5 + $0xd8] sm:$0xf0] }
  0x68   : > { %v4605_v38 = vor.u32 %v6083_v33, %v4602_v35  ;;  %v6067_v35 = vld [vmem:[#allocation5 + $0x4c] sm:$0xf] }
  0xcb   : > { %v448_v59 = vpop.f32.mrf.mxu0 }
  0xcc   : > { %v449_v60 = vadd.f32 %v448_v59, %v355_v58  ;;  %v592_v58 = vmul.f32 %v6982_v14, %v591_v39  ;;  %v4545_v59 = vor.u32 %v6072_v57, %v4544_v56  ;;  %v6060_v56 = vld [vmem:[#allocation5 + $0xc] sm:$0xf0]  ;;  %v4624_v57 = vld [vmem:[#allocation5 + $0x100] sm:$0xf] }
  0xce   : > { %v452_v61 = vmul.f32 0.2, %v449_v60  ;;  %1061 = vmatpush.bf16.msra.mxu3 %v4545_v59  ;;  %v593_v11 = vadd.f32 %v6982_v14, %v592_v58  ;;  %v6092_v58 = vld [vmem:[#allocation5 + $0x10c] sm:$0xf0] }
  0xd0   : > { %v453_v62 = vmax.f32 %v449_v60, %v452_v61  ;;  %v4672_v60 = vld [vmem:[#allocation5 + $0x160] sm:$0xf]  ;;  %v6104_v61 = vld [vmem:[#allocation5 + $0x16c] sm:$0xf0]  ;;  %v7003_v34 = vsel %vm594_vm0, %v6982_v14, %v593_v11  ;;  %v4744_v11 = vld [vmem:[#allocation5 + $0x1e8] sm:$0xf] }
  0xd1   : > { %v4673_v1 = vor.u32 %v6104_v61, %v4672_v60  ;;  %v4745_v22 = vor.u32 %v6121_v16, %v4744_v11 }
  0xd2   : > { %v454_v63 = vpack.c.bf16 %v453_v62, %v453_v62  ;;  %v6070_v62 = vld [vmem:[#allocation5 + $0x64] sm:$0xf]  ;;  %1062 = vmatpush.bf16.msra.mxu3 %v4529_v13 }
  0xd3   : > { %v450_v0 = vpop.f32.mrf.mxu0  ;;  %v4549_v4 = vor.u32 %v6070_v62, %v4546_v2  ;;  %1074 = vmatpush.bf16.msrb.mxu0 %v4673_v1  ;;  %v4497_v1 = vor.u32 %v6060_v56, %v4496_v51  ;;  %v4625_v2 = vor.u32 %v6092_v58, %v4624_v57  ;;  %v4568_v57 = vld [vmem:[#allocation5 + $0x88] sm:$0xf]  ;;  %v6077_v58 = vld [vmem:[#allocation5 + $0x94] sm:$0xf0] }
  0xd4   : > { %559 = vmatmul.bf16.vlgmr.msra.gmra.mxu1 %v454_v63  ;;  %572 = vmatmul.bf16.vlgmr.msra.gmra.mxu2 %v454_v63 }
  0xd5   : > { %1087 = vmatpush.bf16.msrb.mxu1 %v4549_v4  ;;  %v6090_v4 = vld [vmem:[#allocation5 + $0x104] sm:$0xf] }
  0xd6   : > { %1063 = vmatpush.bf16.msra.mxu3 %v4513_v36  ;;  %v4629_v13 = vor.u32 %v6090_v4, %v4626_v5 }
  0xd7   : > { %1075 = vmatpush.bf16.msrb.mxu0 %v4657_v25 }
  0xd9   : > { %1088 = vmatpush.bf16.msrb.mxu1 %v4533_v26 }
  0xda   : > { %1064 = vmatpush.bf16.msra.mxu3 %v4497_v1  ;;  %v6107_v1 = vld [vmem:[#allocation5 + $0x18c] sm:$0xf] }
  0xdb   : > { %1076 = vmatpush.bf16.msrb.mxu0 %v4641_v44  ;;  %v6081_v44 = vld [vmem:[#allocation5 + $0xb4] sm:$0xf0] }
  0xdf   : > { %1077 = vmatpush.bf16.msrb.mxu0 %v4625_v2  ;;  %v4698_v2 = vld [vmem:[#allocation5 + $0x198] sm:$0xf0] }
  0xe3   : > { %1122 = vmatpush.bf16.msra.mxu0 %v4745_v22  ;;  %v6103_v22 = vld [vmem:[#allocation5 + $0x16c] sm:$0xf] }
 0x151   : > { %v6985_v52 = vpop.f32.mrf.mxu1 }
 0x152   : > { %v577_v54 = vrot.slane %v6985_v52, 4  ;;  %v598_v55 = vmul.f32 %v6985_v52, %v6985_v52 }
 0x154   : > { %v578_v63 = vadd.f32 %v577_v54, %v6985_v52  ;;  %v600_v0 = vrot.slane %v598_v55, 4  ;;  %v4517_v54 = vor.u32 %v6062_v43, %v4514_v45  ;;  %v4712_v45 = vld [vmem:[#allocation5 + $0x1a8] sm:$0xf] }
 0x156   : > { %v579_v6 = vrot.slane %v578_v63, 2  ;;  %v601_v7 = vadd.f32 %v600_v0, %v598_v55  ;;  %v4645_v55 = vor.u32 %v6094_v46, %v4642_v50  ;;  %v4498_v0 = vld [vmem:[#allocation5 + $0x10] sm:$0xf0]  ;;  %1089 = vmatpush.bf16.msrb.mxu1 %v4517_v54  ;;  %v6113_v46 = vld [vmem:[#allocation5 + $0x1b4] sm:$0xf0] }
 0x157   : > { %v6994_v12 = vpop.f32.mrf.mxu2  ;;  %v4714_v54 = vld [vmem:[#allocation5 + $0x1b8] sm:$0xf0] }
 0x158   : > { %v580_v18 = vadd.f32 %v579_v6, %v578_v63  ;;  %v602_v19 = vrot.slane %v601_v7, 2  ;;  %v583_v20 = vrot.slane %v6994_v12, 4  ;;  %v599_v21 = vmul.f32 %v6994_v12, %v6994_v12  ;;  %v6058_v63 = vld [vmem:[#allocation5 + $0x4] sm:$0xf]  ;;  %1102 = vmatpush.bf16.msrb.mxu2 %v4645_v55  ;;  %v4616_v6 = vld [vmem:[#allocation5 + $0xe8] sm:$0xf] }
 0x159   : > { %v562_v24 = vpop.f32.mrf.mxu1  ;;  %v4501_v3 = vor.u32 %v6058_v63, %v4498_v0  ;;  %v4617_v15 = vor.u32 %v6089_v10, %v4616_v6  ;;  %v4570_v63 = vld [vmem:[#allocation5 + $0x98] sm:$0xf0]  ;;  %v4680_v10 = vld [vmem:[#allocation5 + $0x168] sm:$0xf] }
 0x15a   : > { %v581_v28 = vrot.slane %v580_v18, 1  ;;  %v603_v29 = vadd.f32 %v602_v19, %v601_v7  ;;  %v584_v30 = vadd.f32 %v583_v20, %v6994_v12  ;;  %v606_v31 = vrot.slane %v599_v21, 4  ;;  %v4746_v24 = vld [vmem:[#allocation5 + $0x1f8] sm:$0xf0] }
 0x15b   : > { %1090 = vmatpush.bf16.msrb.mxu1 %v4501_v3  ;;  %v4749_v26 = vor.u32 %v6119_v23, %v4746_v24  ;;  %1109 = vmatpush.bf16.msrb.mxu3 %v4617_v15  ;;  %v4569_v3 = vor.u32 %v6077_v58, %v4568_v57  ;;  %v6071_v15 = vld [vmem:[#allocation5 + $0x6c] sm:$0xf]  ;;  %v4682_v23 = vld [vmem:[#allocation5 + $0x178] sm:$0xf0] }
 0x15c   : > { %v582_v39 = vadd.f32 %v581_v28, %v580_v18  ;;  %v604_v40 = vrot.slane %v603_v29, 1  ;;  %v585_v41 = vrot.slane %v584_v30, 2  ;;  %v607_v42 = vadd.f32 %v606_v31, %v599_v21  ;;  %v4618_v18 = vld [vmem:[#allocation5 + $0xf8] sm:$0xf0]  ;;  %1103 = vmatpush.bf16.msrb.mxu2 %v4629_v13  ;;  %v6085_v28 = vld [vmem:[#allocation5 + $0xd4] sm:$0xf0] }
 0x15d   : > { %v4621_v25 = vor.u32 %v6087_v17, %v4618_v18  ;;  %v4601_v36 = vor.u32 %v6085_v28, %v4600_v27  ;;  %v6105_v13 = vld [vmem:[#allocation5 + $0x174] sm:$0xf0]  ;;  %v4536_v27 = vld [vmem:[#allocation5 + $0x48] sm:$0xf]  ;;  %v4650_v57 = vld [vmem:[#allocation5 + $0x138] sm:$0xf0] }
 0x15e   : > { %v7006_v47 = vmul.f32 %v7003_v34, %v582_v39  ;;  %v605_v14 = vadd.f32 %v604_v40, %v603_v29  ;;  %v586_v48 = vadd.f32 %v585_v41, %v584_v30  ;;  %v608_v49 = vrot.slane %v607_v42, 2  ;;  %v4728_v29 = vld [vmem:[#allocation5 + $0x1c8] sm:$0xf]  ;;  %v6115_v39 = vld [vmem:[#allocation5 + $0x1cc] sm:$0xf] }
 0x15f   : > { %v575_v53 = vpop.f32.mrf.mxu2  ;;  %1135 = vmatpush.bf16.msra.mxu1 %v4621_v25  ;;  %v4729_v37 = vor.u32 %v6117_v32, %v4728_v29  ;;  %v4730_v40 = vld [vmem:[#allocation5 + $0x1d8] sm:$0xf0]  ;;  %v4584_v41 = vld [vmem:[#allocation5 + $0xa8] sm:$0xf]  ;;  %1110 = vmatpush.bf16.msrb.mxu3 %v4601_v36  ;;  %v4681_v18 = vor.u32 %v6105_v13, %v4680_v10  ;;  %v6069_v28 = vld [vmem:[#allocation5 + $0x54] sm:$0xf0] }
 0x160   : > { %v612_v59 = vmul.f32 %v605_v14, %v7003_v34  ;;  %v614_v60 = vmul.f32 %v7006_v47, %v7006_v47  ;;  %v587_v61 = vrot.slane %v586_v48, 1  ;;  %v609_v62 = vadd.f32 %v608_v49, %v607_v42  ;;  %1148 = vmatpush.bf16.msra.mxu2 %v4749_v26  ;;  %v6079_v14 = vld [vmem:[#allocation5 + $0xac] sm:$0xf]  ;;  %v357_v29 = vld [vmem:[#allocation10 + $0x1] ss:$8 sm:$0x3] }
 0x161   : > { %v4733_v43 = vor.u32 %v6115_v39, %v4730_v40  ;;  %v6111_v49 = vld [vmem:[#allocation5 + $0x1ac] sm:$0xf]  ;;  %1123 = vmatpush.bf16.msra.mxu0 %v4729_v37  ;;  %v4585_v51 = vor.u32 %v6081_v44, %v4584_v41  ;;  %v4713_v53 = vor.u32 %v6113_v46, %v4712_v45  ;;  %v6101_v32 = vld [vmem:[#allocation5 + $0x154] sm:$0xf0]  ;;  %v4538_v36 = vld [vmem:[#allocation5 + $0x58] sm:$0xf0]  ;;  %v4537_v39 = vor.u32 %v6069_v28, %v4536_v27 }
 0x162   : > { %v616_v7 = vsub.f32 %v612_v59, %v614_v60  ;;  %v588_v8 = vadd.f32 %v587_v61, %v586_v48  ;;  %v610_v9 = vrot.slane %v609_v62, 1  ;;  %v4586_v48 = vld [vmem:[#allocation5 + $0xb8] sm:$0xf0]  ;;  %v4717_v56 = vor.u32 %v6111_v49, %v4714_v54  ;;  %v4696_v59 = vld [vmem:[#allocation5 + $0x188] sm:$0xf] }
 0x163   : > { %1136 = vmatpush.bf16.msra.mxu1 %v4605_v38  ;;  %v4589_v55 = vor.u32 %v6079_v14, %v4586_v48  ;;  %v6109_v61 = vld [vmem:[#allocation5 + $0x194] sm:$0xf0]  ;;  %1111 = vmatpush.bf16.msrb.mxu3 %v4585_v51  ;;  %v6099_v37 = vld [vmem:[#allocation5 + $0x14c] sm:$0xf]  ;;  %v4666_v41 = vld [vmem:[#allocation5 + $0x158] sm:$0xf0]  ;;  %v4541_v45 = vor.u32 %v6067_v35, %v4538_v36 }
 0x164   : > { %v7011_v19 = vadd.f32 0.8, %v616_v7  ;;  %v7014_v20 = vmul.f32 %v7003_v34, %v588_v8  ;;  %v611_v21 = vadd.f32 %v610_v9, %v609_v62  ;;  %1149 = vmatpush.bf16.msra.mxu2 %v4733_v43  ;;  %v6075_v62 = vld [vmem:[#allocation5 + $0x8c] sm:$0xf]  ;;  %v4697_v4 = vor.u32 %v6109_v61, %v4696_v59  ;;  %v4552_v8 = vld [vmem:[#allocation5 + $0x68] sm:$0xf] }
 0x165   : > { %1124 = vmatpush.bf16.msra.mxu0 %v4713_v53  ;;  %v4573_v6 = vor.u32 %v6075_v62, %v4570_v63  ;;  %v4701_v7 = vor.u32 %v6107_v1, %v4698_v2  ;;  %v6073_v9 = vld [vmem:[#allocation5 + $0x74] sm:$0xf0]  ;;  %v4669_v46 = vor.u32 %v6099_v37, %v4666_v41  ;;  %v4648_v14 = vld [vmem:[#allocation5 + $0x128] sm:$0xf]  ;;  %v6063_v49 = vld [vmem:[#allocation5 + $0x2c] sm:$0xf] }
 0x166   : > { %6543 = vrsqrt.f32 %v7011_v19  ;;  %v613_v30 = vmul.f32 %v611_v21, %v7003_v34  ;;  %v615_v31 = vmul.f32 %v7014_v20, %v7014_v20  ;;  %v4553_v17 = vor.u32 %v6073_v9, %v4552_v8  ;;  %v4554_v21 = vld [vmem:[#allocation5 + $0x78] sm:$0xf0]  ;;  %v6065_v43 = vld [vmem:[#allocation5 + $0x34] sm:$0xf0]  ;;  %v6095_v53 = vld [vmem:[#allocation5 + $0x12c] sm:$0xf] }
 0x167   : > { %1137 = vmatpush.bf16.msra.mxu1 %v4589_v55  ;;  %1112 = vmatpush.bf16.msrb.mxu3 %v4569_v3  ;;  %v4557_v26 = vor.u32 %v6071_v15, %v4554_v21  ;;  %v6097_v48 = vld [vmem:[#allocation5 + $0x134] sm:$0xf0]  ;;  %vm626_vm3 = vweird.f32 %v7011_v19  ;;  %v4522_v51 = vld [vmem:[#allocation5 + $0x38] sm:$0xf0]  ;;  %v641_v55 = vperm.slane %v357_v29, 0  ;;  %v642_v59 = vperm.slane %v357_v29, 1 }
 0x168   : > { %v617_v42 = vsub.f32 %v613_v30, %v615_v31  ;;  %1150 = vmatpush.bf16.msra.mxu2 %v4717_v56  ;;  %v4685_v30 = vor.u32 %v6103_v22, %v4682_v23  ;;  %v4664_v31 = vld [vmem:[#allocation5 + $0x148] sm:$0xf]  ;;  %v4649_v62 = vor.u32 %v6097_v48, %v4648_v14  ;;  %v4525_v1 = vor.u32 %v6063_v49, %v4522_v51  ;;  %v6093_v3 = vld [vmem:[#allocation5 + $0x114] sm:$0xf0]  ;;  %v5488_v41 = vld [vmem:[#allocation7 + $0x5c0] sm:$0xf] }
 0x169   : > { %1125 = vmatpush.bf16.msra.mxu0 %v4697_v4  ;;  %v4665_v40 = vor.u32 %v6101_v32, %v4664_v31  ;;  %v4504_v63 = vld [vmem:[#allocation5 + $0x8] sm:$0xf]  ;;  %v4653_v2 = vor.u32 %v6095_v53, %v4650_v57  ;;  %v6059_v4 = vld [vmem:[#allocation5 + $0xc] sm:$0xf]  ;;  %v4944_v48 = vld [vmem:[#allocation7 + $0x180] sm:$0xf] }
 0x16a   : > { %v7020_v50 = vadd.f32 0.8, %v617_v42  ;;  %v4520_v42 = vld [vmem:[#allocation5 + $0x28] sm:$0xf]  ;;  %v6174_v49 = vld [vmem:[#allocation7 + $0x19c] sm:$0xf0] }
 0x16b   : > { %1138 = vmatpush.bf16.msra.mxu1 %v4573_v6  ;;  %1113 = vmatpush.bf16.msrb.mxu3 %v4553_v17  ;;  %v4521_v61 = vor.u32 %v6065_v43, %v4520_v42  ;;  %v6091_v6 = vld [vmem:[#allocation5 + $0x10c] sm:$0xf]  ;;  %v359_v22 = vld [vmem:[#allocation10 + $0x2] ss:$8 sm:$0x3]  ;;  %v4945_v53 = vor.u32 %v6174_v49, %v4944_v48 }
 0x16c   : > { %v7022_v60 = vpop.eup %6543  ;;  %6545 = vrsqrt.f32 %v7020_v50  ;;  %1151 = vmatpush.bf16.msra.mxu2 %v4701_v7  ;;  %vm636_vm5 = vweird.f32 %v7020_v50  ;;  %v4634_v7 = vld [vmem:[#allocation5 + $0x118] sm:$0xf0]  ;;  %v6310_v42 = vld [vmem:[#allocation7 + $0x5dc] sm:$0xf0] }
 0x16d   : > { %v621_v0 = vmul.f32 %v7022_v60, %v7011_v19  ;;  %vm627_vm1 = vweird.f32 %v7022_v60  ;;  %1126 = vmatpush.bf16.msra.mxu0 %v4681_v18  ;;  %v4637_v17 = vor.u32 %v6091_v6, %v4634_v7  ;;  %v5200_v51 = vld [vmem:[#allocation7 + $0x380] sm:$0xf] }
 0x16e   : > { %vm7039_vm4 = vmor %vm626_vm3, %vm627_vm1  ;;  %v6238_v54 = vld [vmem:[#allocation7 + $0x39c] sm:$0xf0] }
 0x16f   : > { %v622_v5 = vmul.f32 %v7022_v60, %v621_v0  ;;  %1139 = vmatpush.bf16.msra.mxu1 %v4557_v26  ;;  %1114 = vmatpush.bf16.msrb.mxu3 %v4537_v39  ;;  %v6061_v0 = vld [vmem:[#allocation5 + $0x14] sm:$0xf0]  ;;  %v5680_v7 = vld [vmem:[#allocation7 + $0x740] sm:$0xf] }
 0x170   : > { %1152 = vmatpush.bf16.msra.mxu2 %v4685_v30  ;;  %v5616_v48 = vld [vmem:[#allocation7 + $0x6c0] sm:$0xf] }
 0x171   : > { %v623_v11 = vmul.f32 0.5, %v622_v5  ;;  %1127 = vmatpush.bf16.msra.mxu0 %v4665_v40  ;;  %v4506_v5 = vld [vmem:[#allocation5 + $0x18] sm:$0xf0]  ;;  %v6246_v40 = vld [vmem:[#allocation7 + $0x3dc] sm:$0xf0] }
 0x172   : > { %v7028_v16 = vpop.eup %6545  ;;  %v4509_v15 = vor.u32 %v6059_v4, %v4506_v5  ;;  %v6294_v4 = vld [vmem:[#allocation7 + $0x55c] sm:$0xf0] }
 0x173   : > { %v624_v24 = vsub.f32 1.5, %v623_v11  ;;  %v631_v25 = vmul.f32 %v7028_v16, %v7020_v50  ;;  %vm637_vm2 = vweird.f32 %v7028_v16  ;;  %1140 = vmatpush.bf16.msra.mxu1 %v4541_v45  ;;  %1115 = vmatpush.bf16.msrb.mxu3 %v4521_v61  ;;  %v4505_v11 = vor.u32 %v6061_v0, %v4504_v63  ;;  %v5744_v45 = vld [vmem:[#allocation7 + $0x7c0] sm:$0xf] }
 0x174   : > { %vm7049_vm6 = vmor %vm636_vm5, %vm637_vm2  ;;  %1153 = vmatpush.bf16.msra.mxu2 %v4669_v46  ;;  %v6374_v46 = vld [vmem:[#allocation7 + $0x7dc] sm:$0xf0]  ;;  %vm1300_vm5 = vcmask 1041408  }
 0x175   : > { %v632_v33 = vmul.f32 %v7028_v16, %v631_v25  ;;  %v625_v38 = vmul.f32 %v7022_v60, %v624_v24  ;;  %1128 = vmatpush.bf16.msra.mxu0 %v4649_v62  ;;  %v5745_v14 = vor.u32 %v6374_v46, %v5744_v45  ;;  %v6366_v61 = vld [vmem:[#allocation7 + $0x79c] sm:$0xf0] }
 0x176   : > { %v4912_v0 = vld [vmem:[#allocation7 + $0x140] sm:$0xf] }
 0x177   : > { %v633_v44 = vmul.f32 0.5, %v632_v33  ;;  %v629_v58 = vsel %vm7039_vm4, %v7022_v60, %v625_v38  ;;  %v4632_v60 = vld [vmem:[#allocation5 + $0x108] sm:$0xf]  ;;  %1141 = vmatpush.bf16.msra.mxu1 %v4525_v1  ;;  %1116 = vmatpush.bf16.msrb.mxu3 %v4505_v11  ;;  %v5232_v38 = vld [vmem:[#allocation7 + $0x3c0] sm:$0xf]  ;;  %vm1298_vm4 = vcmask 1042434  }
 0x178   : > { %v645_v8 = vmul.f32 %v641_v55, %v629_v58  ;;  %v4633_v13 = vor.u32 %v6093_v3, %v4632_v60  ;;  %1154 = vmatpush.bf16.msra.mxu2 %v4653_v2  ;;  %v5233_v43 = vor.u32 %v6246_v40, %v5232_v38  ;;  %v5456_v55 = vld [vmem:[#allocation7 + $0x580] sm:$0xf]  ;;  %v5201_v58 = vor.u32 %v6238_v54, %v5200_v51 }
 0x179   : > { %v634_v56 = vsub.f32 1.5, %v633_v44  ;;  %v5489_v44 = vor.u32 %v6310_v42, %v5488_v41  ;;  %v5168_v1 = vld [vmem:[#allocation7 + $0x340] sm:$0xf] }
 0x17a   : > { %v647_v21 = vmul.f32 %v645_v8, %v7006_v47  ;;  %1129 = vmatpush.bf16.msra.mxu0 %v4633_v13  ;;  %v656_v24 = vperm.slane %v645_v8, 0  ;;  %v6230_v60 = vld [vmem:[#allocation7 + $0x35c] sm:$0xf0] }
 0x17b   : > { %v635_v50 = vmul.f32 %v7028_v16, %v634_v56  ;;  %1142 = vmatpush.bf16.msra.mxu1 %v4509_v15  ;;  %v6302_v56 = vld [vmem:[#allocation7 + $0x59c] sm:$0xf0]  ;;  %v5169_v5 = vor.u32 %v6230_v60, %v5168_v1 }
 0x17c   : > { %1155 = vmatpush.bf16.msra.mxu2 %v4637_v17  ;;  %v658_v27 = vmul.f32 %v656_v24, %v6985_v52  ;;  %v4976_v52 = vld [vmem:[#allocation7 + $0x1c0] sm:$0xf]  ;;  %v5457_v19 = vor.u32 %v6302_v56, %v5456_v55 }
 0x17d   : > { %v639_v9 = vsel %vm7049_vm6, %v7028_v16, %v635_v50  ;;  %v6166_v50 = vld [vmem:[#allocation7 + $0x15c] sm:$0xf0] }
 0x17e   : > { %v646_v10 = vmul.f32 %v642_v59, %v639_v9  ;;  %v5712_v59 = vld [vmem:[#allocation7 + $0x780] sm:$0xf]  ;;  %v4913_v2 = vor.u32 %v6166_v50, %v4912_v0 }
 0x17f   : > { %v5713_v63 = vor.u32 %v6366_v61, %v5712_v59  ;;  %v5424_v3 = vld [vmem:[#allocation7 + $0x540] sm:$0xf] }
 0x180   : > { %v648_v18 = vmul.f32 %v646_v10, %v7014_v20  ;;  %v657_v16 = vperm.slane %v646_v10, 0  ;;  %v5425_v6 = vor.u32 %v6294_v4, %v5424_v3  ;;  %v6358_v8 = vld [vmem:[#allocation7 + $0x75c] sm:$0xf0] }
 0x181   : > { %v5681_v9 = vor.u32 %v6358_v8, %v5680_v7  ;;  %v4880_v11 = vld [vmem:[#allocation7 + $0x100] sm:$0xf] }
 0x182   : > { %v651_v23 = vrot.slane %v648_v18, 7  ;;  %v659_v28 = vmul.f32 %v657_v16, %v6994_v12  ;;  %v6182_v12 = vld [vmem:[#allocation7 + $0x1dc] sm:$0xf0] }
 0x183   : > { %v4977_v39 = vor.u32 %v6182_v12, %v4976_v52  ;;  %v6158_v13 = vld [vmem:[#allocation7 + $0x11c] sm:$0xf0] }
 0x184   : > { %v653_v25 = vsel %vm652_vm7, %v647_v21, %v651_v23  ;;  %v5136_v15 = vld [vmem:[#allocation7 + $0x300] sm:$0xf]  ;;  %v4881_v21 = vor.u32 %v6158_v13, %v4880_v11 }
 0x185   : > { %v655_v26 = vsub.f32 %v359_v22, %v653_v25  ;;  %v6222_v22 = vld [vmem:[#allocation7 + $0x31c] sm:$0xf0] }
 0x186   : > { %v5392_v23 = vld [vmem:[#allocation7 + $0x500] sm:$0xf] }
 0x187   : > { %v662_v29 = vperm.slane %v655_v26, 1  ;;  %v661_v20 = vperm.slane %v655_v26, 0  ;;  %v6286_v24 = vld [vmem:[#allocation7 + $0x51c] sm:$0xf0]  ;;  %v5137_v26 = vor.u32 %v6222_v22, %v5136_v15 }
 0x188   : > { %v5104_v38 = vld [vmem:[#allocation7 + $0x2c0] sm:$0xf] }
 0x189   : > { %v666_v30 = vadd.f32 %v662_v29, %v659_v28  ;;  %v665_v31 = vadd.f32 %v661_v20, %v658_v27  ;;  %v5393_v27 = vor.u32 %v6286_v24, %v5392_v23  ;;  %v5648_v28 = vld [vmem:[#allocation7 + $0x700] sm:$0xf] }
 0x18a   : > { %v6350_v29 = vld [vmem:[#allocation7 + $0x71c] sm:$0xf0] }
 0x18b   : > { %v668_v47 = vmul.f32 0.2, %v666_v30  ;;  %v667_v32 = vmul.f32 0.2, %v665_v31  ;;  %v6342_v49 = vld [vmem:[#allocation7 + $0x6dc] sm:$0xf0] }
 0x18c   : > { %v4816_v55 = vld [vmem:[#allocation7 + $0x80] sm:$0xf] }
 0x18d   : > { %v669_v33 = vmax.f32 %v665_v31, %v667_v32  ;;  %v670_v35 = vmax.f32 %v666_v30, %v668_v47  ;;  %v5649_v47 = vor.u32 %v6350_v29, %v5648_v28  ;;  %v6142_v59 = vld [vmem:[#allocation7 + $0x9c] sm:$0xf0] }
 0x18e   : > { %v5072_v61 = vld [vmem:[#allocation7 + $0x280] sm:$0xf]  ;;  %v4817_v50 = vor.u32 %v6142_v59, %v4816_v55 }
 0x18f   : > { %v671_v36 = vpack.c.bf16 %v669_v33, %v669_v33  ;;  %v672_v37 = vpack.c.bf16 %v670_v35, %v670_v35  ;;  %v4848_v35 = vld [vmem:[#allocation7 + $0xc0] sm:$0xf] }
 0x190   : > { %v6206_v1 = vld [vmem:[#allocation7 + $0x29c] sm:$0xf0] }
 0x191   : > { %1065 = vmatmul.bf16.vlgmr.msra.gmra.mxu3 %v671_v36  ;;  %1078 = vmatmul.bf16.vlgmr.msrb.gmra.mxu0 %v672_v37  ;;  %v5584_v7 = vld [vmem:[#allocation7 + $0x680] sm:$0xf] }
 0x192   : > { %1091 = vmatmul.bf16.vlgmr.msrb.gmra.mxu1 %v671_v36  ;;  %1104 = vmatmul.bf16.vlgmr.msrb.gmra.mxu2 %v672_v37  ;;  %v6334_v11 = vld [vmem:[#allocation7 + $0x69c] sm:$0xf0] }
 0x193   : > { %2873 = vmatpush.bf16.msra.mxu3 %v4977_v39  ;;  %2886 = vmatpush.bf16.msrb.mxu0 %v5233_v43  ;;  %v6214_v39 = vld [vmem:[#allocation7 + $0x2dc] sm:$0xf0] }
 0x194   : > { %2899 = vmatpush.bf16.msrb.mxu1 %v5489_v44  ;;  %2912 = vmatpush.bf16.msrb.mxu2 %v5745_v14  ;;  %v5105_v42 = vor.u32 %v6214_v39, %v5104_v38  ;;  %v5360_v43 = vld [vmem:[#allocation7 + $0x4c0] sm:$0xf] }
 0x195   : > { %v6278_v44 = vld [vmem:[#allocation7 + $0x4dc] sm:$0xf0] }
 0x196   : > { %v5361_v14 = vor.u32 %v6278_v44, %v5360_v43  ;;  %v4784_v13 = vld [vmem:[#allocation7 + $0x40] sm:$0xf] }
 0x197   : > { %2874 = vmatpush.bf16.msra.mxu3 %v4945_v53  ;;  %2887 = vmatpush.bf16.msrb.mxu0 %v5201_v58  ;;  %v6134_v22 = vld [vmem:[#allocation7 + $0x5c] sm:$0xf0] }
 0x198   : > { %2900 = vmatpush.bf16.msrb.mxu1 %v5457_v19  ;;  %2913 = vmatpush.bf16.msrb.mxu2 %v5713_v63  ;;  %v5617_v19 = vor.u32 %v6342_v49, %v5616_v48  ;;  %v5040_v23 = vld [vmem:[#allocation7 + $0x240] sm:$0xf] }
 0x199   : > { %v5296_v28 = vld [vmem:[#allocation7 + $0x440] sm:$0xf] }
 0x19a   : > { %v6126_v38 = vld [vmem:[#allocation7 + $0x1c] sm:$0xf0] }
 0x19b   : > { %2875 = vmatpush.bf16.msra.mxu3 %v4913_v2  ;;  %2888 = vmatpush.bf16.msrb.mxu0 %v5169_v5  ;;  %v5328_v2 = vld [vmem:[#allocation7 + $0x480] sm:$0xf]  ;;  %v5073_v5 = vor.u32 %v6206_v1, %v5072_v61 }
 0x19c   : > { %2901 = vmatpush.bf16.msrb.mxu1 %v5425_v6  ;;  %2914 = vmatpush.bf16.msrb.mxu2 %v5681_v9  ;;  %v6270_v6 = vld [vmem:[#allocation7 + $0x49c] sm:$0xf0] }
 0x19d   : > { %v5008_v39 = vld [vmem:[#allocation7 + $0x200] sm:$0xf] }
 0x19e   : > { %v5520_v55 = vld [vmem:[#allocation7 + $0x600] sm:$0xf] }
 0x19f   : > { %2876 = vmatpush.bf16.msra.mxu3 %v4881_v21  ;;  %2889 = vmatpush.bf16.msrb.mxu0 %v5137_v26  ;;  %v5585_v21 = vor.u32 %v6334_v11, %v5584_v7  ;;  %v4785_v26 = vor.u32 %v6134_v22, %v4784_v13 }
 0x1a0   : > { %2902 = vmatpush.bf16.msrb.mxu1 %v5393_v27  ;;  %2915 = vmatpush.bf16.msrb.mxu2 %v5649_v47  ;;  %v6198_v27 = vld [vmem:[#allocation7 + $0x25c] sm:$0xf0] }
 0x1a1   : > { %1117 = vmatmul.bf16.vlgmr.msrb.gmra.mxu3 %v671_v36  ;;  %1130 = vmatmul.bf16.vlgmr.msra.gmra.mxu0 %v672_v37  ;;  %v5552_v47 = vld [vmem:[#allocation7 + $0x640] sm:$0xf] }
 0x1a2   : > { %1143 = vmatmul.bf16.vlgmr.msra.gmra.mxu1 %v671_v36  ;;  %1156 = vmatmul.bf16.vlgmr.msra.gmra.mxu2 %v672_v37  ;;  %v6150_v36 = vld [vmem:[#allocation7 + $0xdc] sm:$0xf0] }
 0x1a3   : > { %v4849_v12 = vor.u32 %v6150_v36, %v4848_v35  ;;  %2890 = vmatpush.bf16.msrb.mxu0 %v5105_v42 }
 0x1a4   : > { %2903 = vmatpush.bf16.msrb.mxu1 %v5361_v14  ;;  %2916 = vmatpush.bf16.msrb.mxu2 %v5617_v19  ;;  %v6254_v14 = vld [vmem:[#allocation7 + $0x41c] sm:$0xf0] }
 0x1a5   : > { %2877 = vmatpush.bf16.msra.mxu3 %v4849_v12  ;;  %v4752_v12 = vld [vmem:[#allocation7] sm:$0xf] }
 0x1a6   : > { %v4753_v44 = vor.u32 %v6126_v38, %v4752_v12  ;;  %v5458_v38 = vld [vmem:[#allocation7 + $0x5a0] sm:$0xf0] }
 0x1a7   : > { %2891 = vmatpush.bf16.msrb.mxu0 %v5073_v5 }
 0x1a8   : > { %2917 = vmatpush.bf16.msrb.mxu2 %v5585_v21 }
 0x1a9   : > { %2878 = vmatpush.bf16.msra.mxu3 %v4817_v50 }
 0x1ad   : > { %2879 = vmatpush.bf16.msra.mxu3 %v4785_v26 }
 0x1b1   : > { %2880 = vmatpush.bf16.msra.mxu3 %v4753_v44 }
 0x20e   : > { %v1079_v57 = vpop.f32.mrf.mxu0 }
 0x20f   : > { %v1092_v62 = vpop.f32.mrf.mxu1 }
 0x214   : > { %v1066_v10 = vpop.f32.mrf.mxu3 }
 0x215   : > { %v7062_v17 = vadd.f32 %v1079_v57, %v1066_v10  ;;  %v1105_v18 = vpop.f32.mrf.mxu2  ;;  %v5329_v10 = vor.u32 %v6270_v6, %v5328_v2 }
 0x216   : > { %v7064_v16 = vadd.f32 %v1105_v18, %v1092_v62  ;;  %v1081_v25 = vpop.f32.mrf.mxu0 }
 0x217   : > { %v1161_v20 = vrot.slane %v7062_v17, 4  ;;  %v1189_v30 = vmul.f32 %v7062_v17, %v7062_v17  ;;  %v1094_v31 = vpop.f32.mrf.mxu1  ;;  %2904 = vmatpush.bf16.msrb.mxu1 %v5329_v10 }
 0x218   : > { %v1167_v32 = vrot.slane %v7064_v16, 4  ;;  %v1190_v33 = vmul.f32 %v7064_v16, %v7064_v16  ;;  %v6262_v31 = vld [vmem:[#allocation7 + $0x45c] sm:$0xf0] }
 0x219   : > { %v1162_v37 = vadd.f32 %v1161_v20, %v7062_v17  ;;  %v1193_v52 = vrot.slane %v1189_v30, 4 }
 0x21a   : > { %v1168_v40 = vadd.f32 %v1167_v32, %v7064_v16  ;;  %v1199_v41 = vrot.slane %v1190_v33, 4  ;;  %v6326_v32 = vld [vmem:[#allocation7 + $0x65c] sm:$0xf0] }
 0x21b   : > { %v1163_v45 = vrot.slane %v1162_v37, 2  ;;  %v1194_v46 = vadd.f32 %v1193_v52, %v1189_v30  ;;  %v5041_v30 = vor.u32 %v6198_v27, %v5040_v23  ;;  %v5553_v52 = vor.u32 %v6326_v32, %v5552_v47  ;;  %v5746_v23 = vld [vmem:[#allocation7 + $0x7e0] sm:$0xf0] }
 0x21c   : > { %v1169_v51 = vrot.slane %v1168_v40, 2  ;;  %v1200_v53 = vadd.f32 %v1199_v41, %v1190_v33  ;;  %v1068_v54 = vpop.f32.mrf.mxu3  ;;  %v4946_v27 = vld [vmem:[#allocation7 + $0x1a0] sm:$0xf0] }
 0x21d   : > { %v1164_v56 = vadd.f32 %v1163_v45, %v1162_v37  ;;  %v1195_v57 = vrot.slane %v1194_v46, 2  ;;  %v1107_v58 = vpop.f32.mrf.mxu2  ;;  %v5297_v37 = vor.u32 %v6262_v31, %v5296_v28  ;;  %2892 = vmatpush.bf16.msrb.mxu0 %v5041_v30  ;;  %v6190_v45 = vld [vmem:[#allocation7 + $0x21c] sm:$0xf0]  ;;  %2918 = vmatpush.bf16.msrb.mxu2 %v5553_v52  ;;  %v6234_v28 = vld [vmem:[#allocation7 + $0x384] sm:$0xf] }
 0x21e   : > { %v1170_v62 = vadd.f32 %v1169_v51, %v1168_v40  ;;  %v1201_v63 = vrot.slane %v1200_v53, 2  ;;  %v1131_v0 = vpop.f32.mrf.mxu0  ;;  %v5009_v54 = vor.u32 %v6190_v45, %v5008_v39  ;;  %v6362_v39 = vld [vmem:[#allocation7 + $0x784] sm:$0xf] }
 0x21f   : > { %v1165_v60 = vrot.slane %v1164_v56, 1  ;;  %v1196_v3 = vadd.f32 %v1195_v57, %v1194_v46  ;;  %v1144_v4 = vpop.f32.mrf.mxu1  ;;  %v5264_v46 = vld [vmem:[#allocation7 + $0x400] sm:$0xf]  ;;  %2905 = vmatpush.bf16.msrb.mxu1 %v5297_v37  ;;  %v6178_v57 = vld [vmem:[#allocation7 + $0x1c4] sm:$0xf] }
 0x220   : > { %v1171_v8 = vrot.slane %v1170_v62, 1  ;;  %v1202_v9 = vadd.f32 %v1201_v63, %v1200_v53  ;;  %v4978_v63 = vld [vmem:[#allocation7 + $0x1e0] sm:$0xf0] }
 0x221   : > { %v1166_v15 = vadd.f32 %v1165_v60, %v1164_v56  ;;  %v1197_v18 = vrot.slane %v1196_v3, 1  ;;  %v6318_v56 = vld [vmem:[#allocation7 + $0x61c] sm:$0xf0]  ;;  %2893 = vmatpush.bf16.msrb.mxu0 %v5009_v54  ;;  %v5714_v45 = vld [vmem:[#allocation7 + $0x7a0] sm:$0xf0] }
 0x222   : > { %v1172_v24 = vadd.f32 %v1171_v8, %v1170_v62  ;;  %v1203_v25 = vrot.slane %v1202_v9, 1  ;;  %v5265_v62 = vor.u32 %v6254_v14, %v5264_v46  ;;  %v5521_v60 = vor.u32 %v6318_v56, %v5520_v55  ;;  %v6162_v46 = vld [vmem:[#allocation7 + $0x144] sm:$0xf] }
 0x223   : > { %v7075_v29 = vmul.f32 %v1166_v15, %v7003_v34  ;;  %v1198_v20 = vadd.f32 %v1197_v18, %v1196_v3  ;;  %v5234_v3 = vld [vmem:[#allocation7 + $0x3e0] sm:$0xf0]  ;;  %v4981_v8 = vor.u32 %v6178_v57, %v4978_v63 }
 0x224   : > { %v7078_v33 = vmul.f32 %v1172_v24, %v7003_v34  ;;  %v1204_v35 = vadd.f32 %v1203_v25, %v1202_v9  ;;  %v1118_v36 = vpop.f32.mrf.mxu3  ;;  %v5490_v9 = vld [vmem:[#allocation7 + $0x5e0] sm:$0xf0]  ;;  %2906 = vmatpush.bf16.msrb.mxu1 %v5265_v62  ;;  %2919 = vmatpush.bf16.msrb.mxu2 %v5521_v60 }
 0x225   : > { %v1217_v40 = vmul.f32 %v1198_v20, %v7003_v34  ;;  %v1221_v41 = vmul.f32 %v7075_v29, %v7075_v29  ;;  %v7083_v42 = vadd.f32 %v1131_v0, %v1118_v36  ;;  %v1157_v43 = vpop.f32.mrf.mxu2  ;;  %v6242_v0 = vld [vmem:[#allocation7 + $0x3c4] sm:$0xf]  ;;  %2925 = vmatpush.bf16.msrb.mxu3 %v4981_v8 }
 0x226   : > { %v1218_v48 = vmul.f32 %v1204_v35, %v7003_v34  ;;  %v1222_v49 = vmul.f32 %v7078_v33, %v7078_v33  ;;  %v7088_v51 = vadd.f32 %v1157_v43, %v1144_v4  ;;  %v1133_v53 = vpop.f32.mrf.mxu0  ;;  %v6306_v4 = vld [vmem:[#allocation7 + $0x5c4] sm:$0xf]  ;;  %v5237_v15 = vor.u32 %v6242_v0, %v5234_v3 }
 0x227   : > { %v1225_v58 = vsub.f32 %v1217_v40, %v1221_v41  ;;  %v1173_v19 = vrot.slane %v7083_v42, 4  ;;  %v1191_v59 = vmul.f32 %v7083_v42, %v7083_v42  ;;  %v1146_v61 = vpop.f32.mrf.mxu1  ;;  %v6370_v18 = vld [vmem:[#allocation7 + $0x7c4] sm:$0xf]  ;;  %v5493_v32 = vor.u32 %v6306_v4, %v5490_v9 }
 0x228   : > { %v1226_v50 = vsub.f32 %v1218_v48, %v1222_v49  ;;  %v1179_v1 = vrot.slane %v7088_v51, 4  ;;  %v1192_v2 = vmul.f32 %v7088_v51, %v7088_v51  ;;  %v6170_v24 = vld [vmem:[#allocation7 + $0x184] sm:$0xf]  ;;  %2938 = vmatpush.bf16.msra.mxu0 %v5237_v15  ;;  %v5749_v52 = vor.u32 %v6370_v18, %v5746_v23 }
 0x229   : > { %v7096_v5 = vadd.f32 0.8, %v1225_v58  ;;  %v1174_v6 = vadd.f32 %v1173_v19, %v7083_v42  ;;  %v1205_v7 = vrot.slane %v1191_v59, 4  ;;  %v5202_v35 = vld [vmem:[#allocation7 + $0x3a0] sm:$0xf0]  ;;  %v4949_v12 = vor.u32 %v6170_v24, %v4946_v27  ;;  %2951 = vmatpush.bf16.msra.mxu1 %v5493_v32 }
 0x22a   : > { %v7099_v10 = vadd.f32 0.8, %v1226_v50  ;;  %v1180_v11 = vadd.f32 %v1179_v1, %v7088_v51  ;;  %v1211_v13 = vrot.slane %v1192_v2, 4  ;;  %v6298_v36 = vld [vmem:[#allocation7 + $0x584] sm:$0xf]  ;;  %v5205_v44 = vor.u32 %v6234_v28, %v5202_v35  ;;  %2964 = vmatpush.bf16.msra.mxu2 %v5749_v52 }
 0x22b   : > { %v1175_v21 = vrot.slane %v1174_v6, 2  ;;  %v1206_v22 = vadd.f32 %v1205_v7, %v1191_v59  ;;  %2926 = vmatpush.bf16.msrb.mxu3 %v4949_v12  ;;  %v5461_v48 = vor.u32 %v6298_v36, %v5458_v38  ;;  %v5717_v49 = vor.u32 %v6362_v39, %v5714_v45  ;;  %v4914_v53 = vld [vmem:[#allocation7 + $0x160] sm:$0xf0] }
 0x22c   : > { %6547 = vrsqrt.f32 %v7099_v10  ;;  %v1181_v25 = vrot.slane %v1180_v11, 2  ;;  %v1120_v26 = vpop.f32.mrf.mxu3  ;;  %v1212_v31 = vadd.f32 %v1211_v13, %v1192_v2  ;;  %v6226_v54 = vld [vmem:[#allocation7 + $0x344] sm:$0xf]  ;;  %2939 = vmatpush.bf16.msra.mxu0 %v5205_v44  ;;  %v4917_v58 = vor.u32 %v6162_v46, %v4914_v53 }
 0x22d   : > { %v1176_v20 = vadd.f32 %v1175_v21, %v1174_v6  ;;  %v1207_v30 = vrot.slane %v1206_v22, 2  ;;  %v1159_v47 = vpop.f32.mrf.mxu2  ;;  %6549 = vrsqrt.f32 %v7096_v5  ;;  %v5170_v19 = vld [vmem:[#allocation7 + $0x360] sm:$0xf0]  ;;  %2952 = vmatpush.bf16.msra.mxu1 %v5461_v48  ;;  %vm1249_vm9 = vweird.f32 %v7099_v10 }
 0x22e   : > { %v1182_v37 = vadd.f32 %v1181_v25, %v1180_v11  ;;  %v1213_v43 = vrot.slane %v1212_v31, 2  ;;  %v5173_v62 = vor.u32 %v6226_v54, %v5170_v19  ;;  %v6290_v63 = vld [vmem:[#allocation7 + $0x544] sm:$0xf]  ;;  %2965 = vmatpush.bf16.msra.mxu2 %v5717_v49  ;;  %vm1239_vm14 = vweird.f32 %v7096_v5 }
 0x22f   : > { %v1177_v40 = vrot.slane %v1176_v20, 1  ;;  %v1208_v41 = vadd.f32 %v1207_v30, %v1206_v22  ;;  %v5426_v0 = vld [vmem:[#allocation7 + $0x560] sm:$0xf0]  ;;  %2927 = vmatpush.bf16.msrb.mxu3 %v4917_v58 }
 0x230   : > { %v1183_v14 = vrot.slane %v1182_v37, 1  ;;  %v1214_v57 = vadd.f32 %v1213_v43, %v1212_v31  ;;  %v6354_v60 = vld [vmem:[#allocation7 + $0x744] sm:$0xf]  ;;  %2940 = vmatpush.bf16.msra.mxu0 %v5173_v62  ;;  %v5429_v21 = vor.u32 %v6290_v63, %v5426_v0 }
 0x231   : > { %v1178_v55 = vadd.f32 %v1177_v40, %v1176_v20  ;;  %v1209_v56 = vrot.slane %v1208_v41, 1  ;;  %v5682_v3 = vld [vmem:[#allocation7 + $0x760] sm:$0xf0] }
 0x232   : > { %v7104_v59 = vpop.eup %6547  ;;  %v1184_v61 = vadd.f32 %v1183_v14, %v1182_v37  ;;  %v6154_v4 = vld [vmem:[#allocation7 + $0x104] sm:$0xf]  ;;  %v1215_v8 = vrot.slane %v1214_v57, 1  ;;  %2953 = vmatpush.bf16.msra.mxu1 %v5429_v21  ;;  %v5685_v30 = vor.u32 %v6354_v60, %v5682_v3 }
 0x233   : > { %v1244_v50 = vmul.f32 %v7104_v59, %v7099_v10  ;;  %v7109_v1 = vmul.f32 %v1178_v55, %v7003_v34  ;;  %v1210_v2 = vadd.f32 %v1209_v56, %v1208_v41  ;;  %v7111_v6 = vpop.eup %6549  ;;  %v4882_v9 = vld [vmem:[#allocation7 + $0x120] sm:$0xf0]  ;;  %vm1250_vm8 = vweird.f32 %v7104_v59 }
 0x234   : > { %v7114_v7 = vmul.f32 %v1184_v61, %v7003_v34  ;;  %v6218_v11 = vld [vmem:[#allocation7 + $0x304] sm:$0xf]  ;;  %v1216_v25 = vadd.f32 %v1215_v8, %v1214_v57  ;;  %v4885_v31 = vor.u32 %v6154_v4, %v4882_v9  ;;  %v1234_v35 = vmul.f32 %v7111_v6, %v7096_v5  ;;  %2966 = vmatpush.bf16.msra.mxu2 %v5685_v30  ;;  %vm7145_vm10 = vmor %vm1249_vm9, %vm1250_vm8 }
 0x235   : > { %v1245_v13 = vmul.f32 %v7104_v59, %v1244_v50  ;;  %v1219_v15 = vmul.f32 %v1210_v2, %v7003_v34  ;;  %v1223_v18 = vmul.f32 %v7109_v1, %v7109_v1  ;;  %v5138_v22 = vld [vmem:[#allocation7 + $0x320] sm:$0xf0]  ;;  %vm1240_vm12 = vweird.f32 %v7111_v6 }
 0x236   : > { %v6282_v23 = vld [vmem:[#allocation7 + $0x504] sm:$0xf]  ;;  %v1224_v26 = vmul.f32 %v7114_v7, %v7114_v7  ;;  %v1220_v36 = vmul.f32 %v1216_v25, %v7003_v34  ;;  %v5141_v37 = vor.u32 %v6218_v11, %v5138_v22  ;;  %2928 = vmatpush.bf16.msrb.mxu3 %v4885_v31  ;;  %v1235_v61 = vmul.f32 %v7111_v6, %v1234_v35  ;;  %v7134_v22 = vld [vmem:[#allocation10 + $0x3] ss:$8 sm:$0xf]  ;;  %vm1241_vm1 = vmor %vm1239_vm14, %vm1240_vm12 }
 0x237   : > { %v5394_v24 = vld [vmem:[#allocation7 + $0x520] sm:$0xf0]  ;;  %v1227_v20 = vsub.f32 %v1219_v15, %v1223_v18  ;;  %v1246_v39 = vmul.f32 0.5, %v1245_v13 }
 0x238   : > { %v6346_v27 = vld [vmem:[#allocation7 + $0x704] sm:$0xf]  ;;  %v5397_v52 = vor.u32 %v6282_v23, %v5394_v24  ;;  %v1228_v45 = vsub.f32 %v1220_v36, %v1224_v26  ;;  %2941 = vmatpush.bf16.msra.mxu0 %v5141_v37  ;;  %v1236_v23 = vmul.f32 0.5, %v1235_v61 }
 0x239   : > { %v5650_v28 = vld [vmem:[#allocation7 + $0x720] sm:$0xf0]  ;;  %v7125_v40 = vadd.f32 0.8, %v1227_v20  ;;  %v1247_v8 = vsub.f32 1.5, %v1246_v39 }
 0x23a   : > { %v6146_v47 = vld [vmem:[#allocation7 + $0xc4] sm:$0xf]  ;;  %v5653_v41 = vor.u32 %v6346_v27, %v5650_v28  ;;  %2954 = vmatpush.bf16.msra.mxu1 %v5397_v52  ;;  %v7128_v57 = vadd.f32 0.8, %v1228_v45  ;;  %v1237_v39 = vsub.f32 1.5, %v1236_v23 }
 0x23b   : > { %v4850_v32 = vld [vmem:[#allocation7 + $0xe0] sm:$0xf0]  ;;  %6551 = vrsqrt.f32 %v7125_v40  ;;  %vm1259_vm13 = vweird.f32 %v7125_v40 }
 0x23c   : > { %v6210_v12 = vld [vmem:[#allocation7 + $0x2c4] sm:$0xf]  ;;  %v4853_v43 = vor.u32 %v6146_v47, %v4850_v32  ;;  %2967 = vmatpush.bf16.msra.mxu2 %v5653_v41  ;;  %6553 = vrsqrt.f32 %v7128_v57  ;;  %v1248_v47 = vmul.f32 %v7104_v59, %v1247_v8  ;;  %vm1269_vm2 = vweird.f32 %v7128_v57 }
 0x23d   : > { %v5106_v38 = vld [vmem:[#allocation7 + $0x2e0] sm:$0xf0] }
 0x23e   : > { %v6274_v44 = vld [vmem:[#allocation7 + $0x4c4] sm:$0xf]  ;;  %v5109_v46 = vor.u32 %v6210_v12, %v5106_v38  ;;  %2929 = vmatpush.bf16.msrb.mxu3 %v4853_v43 }
 0x23f   : > { %v5362_v14 = vld [vmem:[#allocation7 + $0x4e0] sm:$0xf0] }
 0x240   : > { %v6338_v48 = vld [vmem:[#allocation7 + $0x6c4] sm:$0xf]  ;;  %v5365_v53 = vor.u32 %v6274_v44, %v5362_v14  ;;  %2942 = vmatpush.bf16.msra.mxu0 %v5109_v46  ;;  %v1275_v46 = vperm.slane %v7134_v22, 1 }
 0x241   : > { %v5618_v49 = vld [vmem:[#allocation7 + $0x6e0] sm:$0xf0]  ;;  %v7132_v21 = vpop.eup %6551 }
 0x242   : > { %v6138_v54 = vld [vmem:[#allocation7 + $0x84] sm:$0xf]  ;;  %v5621_v62 = vor.u32 %v6338_v48, %v5618_v49  ;;  %2955 = vmatpush.bf16.msra.mxu1 %v5365_v53  ;;  %v1254_v27 = vmul.f32 %v7132_v21, %v7125_v40  ;;  %v6554_v37 = vpop.eup %6553  ;;  %v1252_v53 = vsel %vm7145_vm10, %v7104_v59, %v1248_v47  ;;  %vm1260_vm11 = vweird.f32 %v7132_v21 }
 0x243   : > { %v4818_v55 = vld [vmem:[#allocation7 + $0xa0] sm:$0xf0]  ;;  %v1264_v41 = vmul.f32 %v6554_v37, %v7128_v57  ;;  %vm1261_vm15 = vmor %vm1259_vm13, %vm1260_vm11  ;;  %vm1270_vm0 = vweird.f32 %v6554_v37 }
 0x244   : > { %v6202_v56 = vld [vmem:[#allocation7 + $0x284] sm:$0xf]  ;;  %v4821_v63 = vor.u32 %v6138_v54, %v4818_v55  ;;  %2968 = vmatpush.bf16.msra.mxu2 %v5621_v62  ;;  %v1255_v52 = vmul.f32 %v7132_v21, %v1254_v27  ;;  %vm1271_vm3 = vmor %vm1269_vm2, %vm1270_vm0 }
 0x245   : > { %v5074_v58 = vld [vmem:[#allocation7 + $0x2a0] sm:$0xf0]  ;;  %v1265_v54 = vmul.f32 %v6554_v37, %v1264_v41  ;;  %v5240_v41 = vld [vmem:[#allocation7 + $0x3c8] sm:$0xf] }
 0x246   : > { %v6266_v19 = vld [vmem:[#allocation7 + $0x484] sm:$0xf]  ;;  %v5077_v2 = vor.u32 %v6202_v56, %v5074_v58  ;;  %2930 = vmatpush.bf16.msrb.mxu3 %v4821_v63  ;;  %v1256_v10 = vmul.f32 0.5, %v1255_v52  ;;  %v1276_v58 = vperm.slane %v7134_v22, 2  ;;  %v1283_v63 = vmul.f32 %v1275_v46, %v1252_v53  ;;  %v5496_v46 = vld [vmem:[#allocation7 + $0x5c8] sm:$0xf] }
 0x247   : > { %v5330_v0 = vld [vmem:[#allocation7 + $0x4a0] sm:$0xf0]  ;;  %v1266_v61 = vmul.f32 0.5, %v1265_v54 }
 0x248   : > { %v6330_v50 = vld [vmem:[#allocation7 + $0x684] sm:$0xf]  ;;  %v5333_v9 = vor.u32 %v6266_v19, %v5330_v0  ;;  %2943 = vmatpush.bf16.msra.mxu0 %v5077_v2  ;;  %v1257_v56 = vsub.f32 1.5, %v1256_v10  ;;  %v1238_v19 = vmul.f32 %v7111_v6, %v1237_v39  ;;  %v1287_v5 = vmul.f32 %v1283_v63, %v7078_v33  ;;  %v6183_v39 = vld [vmem:[#allocation7 + $0x1e4] sm:$0xf0] }
 0x249   : > { %v5586_v60 = vld [vmem:[#allocation7 + $0x6a0] sm:$0xf0]  ;;  %v1267_v59 = vsub.f32 1.5, %v1266_v61  ;;  %v4952_v61 = vld [vmem:[#allocation7 + $0x188] sm:$0xf] }
 0x24a   : > { %v6130_v3 = vld [vmem:[#allocation7 + $0x44] sm:$0xf]  ;;  %v5589_v24 = vor.u32 %v6330_v50, %v5586_v60  ;;  %2956 = vmatpush.bf16.msra.mxu1 %v5333_v9  ;;  %v1258_v0 = vmul.f32 %v7132_v21, %v1257_v56  ;;  %v1274_v50 = vperm.slane %v7134_v22, 0  ;;  %v1277_v60 = vperm.slane %v7134_v22, 3 }
 0x24b   : > { %v4786_v4 = vld [vmem:[#allocation7 + $0x60] sm:$0xf0]  ;;  %v1268_v8 = vmul.f32 %v6554_v37, %v1267_v59 }
 0x24c   : > { %v6194_v11 = vld [vmem:[#allocation7 + $0x244] sm:$0xf]  ;;  %v4789_v25 = vor.u32 %v6130_v3, %v4786_v4  ;;  %2969 = vmatpush.bf16.msra.mxu2 %v5589_v24  ;;  %v1262_v2 = vsel %vm1261_vm15, %v7132_v21, %v1258_v0  ;;  %v1242_v3 = vsel %vm1241_vm1, %v7111_v6, %v1238_v19  ;;  %v1305_v24 = vperm.slane %v1283_v63, 0 }
 0x24d   : > { %v5042_v13 = vld [vmem:[#allocation7 + $0x260] sm:$0xf0]  ;;  %v1284_v4 = vmul.f32 %v1276_v58, %v1262_v2  ;;  %v1272_v9 = vsel %vm1271_vm3, %v6554_v37, %v1268_v8  ;;  %v6239_v2 = vld [vmem:[#allocation7 + $0x3a4] sm:$0xf0] }
 0x24e   : > { %v6258_v15 = vld [vmem:[#allocation7 + $0x444] sm:$0xf]  ;;  %v5045_v28 = vor.u32 %v6194_v11, %v5042_v13  ;;  %2931 = vmatpush.bf16.msrb.mxu3 %v4789_v25  ;;  %v1282_v11 = vmul.f32 %v1274_v50, %v1242_v3  ;;  %v1285_v13 = vmul.f32 %v1277_v60, %v1272_v9  ;;  %v5208_v50 = vld [vmem:[#allocation7 + $0x388] sm:$0xf] }
 0x24f   : > { %v5298_v18 = vld [vmem:[#allocation7 + $0x460] sm:$0xf0]  ;;  %v1288_v40 = vmul.f32 %v1284_v4, %v7109_v1  ;;  %v1306_v25 = vperm.slane %v1284_v4, 0  ;;  %v5464_v60 = vld [vmem:[#allocation7 + $0x588] sm:$0xf] }
 0x250   : > { %v6322_v26 = vld [vmem:[#allocation7 + $0x644] sm:$0xf]  ;;  %v5301_v32 = vor.u32 %v6258_v15, %v5298_v18  ;;  %2944 = vmatpush.bf16.msra.mxu0 %v5045_v28  ;;  %v1294_v15 = vrot.slane %v1287_v5, 7  ;;  %v1289_v21 = vmul.f32 %v1285_v13, %v7114_v7  ;;  %v1286_v6 = vmul.f32 %v1282_v11, %v7075_v29  ;;  %v6303_v3 = vld [vmem:[#allocation7 + $0x5a4] sm:$0xf0] }
 0x251   : > { %v5554_v20 = vld [vmem:[#allocation7 + $0x660] sm:$0xf0]  ;;  %v1295_v18 = vrot.slane %v1288_v40, 6  ;;  %v1304_v57 = vperm.slane %v1282_v11, 0  ;;  %v1307_v33 = vperm.slane %v1285_v13, 0  ;;  %v1309_v7 = vmul.f32 %v1305_v24, %v7064_v16 }
 0x252   : > { %v6122_v30 = vld [vmem:[#allocation7 + $0x4] sm:$0xf]  ;;  %v5557_v43 = vor.u32 %v6322_v26, %v5554_v20  ;;  %2957 = vmatpush.bf16.msra.mxu1 %v5301_v32  ;;  %v1296_v23 = vrot.slane %v1289_v21, 5  ;;  %v1297_v26 = vsel %vm652_vm7, %v1286_v6, %v1294_v15  ;;  %v1310_v29 = vmul.f32 %v1306_v25, %v7083_v42  ;;  %v6247_v16 = vld [vmem:[#allocation7 + $0x3e4] sm:$0xf0] }
 0x253   : > { %v4754_v31 = vld [vmem:[#allocation7 + $0x20] sm:$0xf0]  ;;  %v1308_v20 = vmul.f32 %v1304_v57, %v7062_v17  ;;  %v5241_v19 = vor.u32 %v6247_v16, %v5240_v41  ;;  %v5720_v4 = vld [vmem:[#allocation7 + $0x788] sm:$0xf]  ;;  %v5209_v40 = vor.u32 %v6239_v2, %v5208_v50  ;;  %v5465_v13 = vor.u32 %v6303_v3, %v5464_v60 }
 0x254   : > { %v6186_v35 = vld [vmem:[#allocation7 + $0x204] sm:$0xf]  ;;  %v4757_v44 = vor.u32 %v6122_v30, %v4754_v31  ;;  %2970 = vmatpush.bf16.msra.mxu2 %v5557_v43  ;;  %v1299_v1 = vsel %vm1298_vm4, %v1295_v18, %v1296_v23  ;;  %v1311_v30 = vmul.f32 %v1307_v33, %v7088_v51  ;;  %v6367_v8 = vld [vmem:[#allocation7 + $0x7a4] sm:$0xf0] }
 0x255   : > { %v5010_v36 = vld [vmem:[#allocation7 + $0x220] sm:$0xf0]  ;;  %v1301_v27 = vsel %vm1300_vm5, %v1297_v26, %v1299_v1  ;;  %v4920_v9 = vld [vmem:[#allocation7 + $0x148] sm:$0xf]  ;;  %v5721_v15 = vor.u32 %v6367_v8, %v5720_v4 }
 0x256   : > { %v6250_v12 = vld [vmem:[#allocation7 + $0x404] sm:$0xf]  ;;  %v5013_v14 = vor.u32 %v6186_v35, %v5010_v36  ;;  %2932 = vmatpush.bf16.msrb.mxu3 %v4757_v44  ;;  %v6167_v11 = vld [vmem:[#allocation7 + $0x164] sm:$0xf0] }
 0x257   : > { %v5266_v38 = vld [vmem:[#allocation7 + $0x420] sm:$0xf0]  ;;  %v5176_v18 = vld [vmem:[#allocation7 + $0x348] sm:$0xf]  ;;  %v4921_v24 = vor.u32 %v6167_v11, %v4920_v9 }
 0x258   : > { %v6314_v48 = vld [vmem:[#allocation7 + $0x604] sm:$0xf]  ;;  %v5269_v55 = vor.u32 %v6250_v12, %v5266_v38  ;;  %2945 = vmatpush.bf16.msra.mxu0 %v5013_v14  ;;  %v4984_v38 = vld [vmem:[#allocation7 + $0x1c8] sm:$0xf] }
 0x259   : > { %v5522_v49 = vld [vmem:[#allocation7 + $0x620] sm:$0xf0]  ;;  %v6311_v14 = vld [vmem:[#allocation7 + $0x5e4] sm:$0xf0]  ;;  %v4985_v54 = vor.u32 %v6183_v39, %v4984_v38 }
 0x25a   : > { %v5525_v62 = vor.u32 %v6314_v48, %v5522_v49  ;;  %2958 = vmatpush.bf16.msra.mxu1 %v5269_v55  ;;  %v363_v22 = vld [vmem:[#allocation10 + $0x4] ss:$8 sm:$0xf]  ;;  %v5752_v48 = vld [vmem:[#allocation7 + $0x7c8] sm:$0xf]  ;;  %v5497_v0 = vor.u32 %v6311_v14, %v5496_v46 }
 0x25b   : > { %v1303_v28 = vsub.f32 %v363_v22, %v1301_v27  ;;  %v6375_v49 = vld [vmem:[#allocation7 + $0x7e4] sm:$0xf0] }
 0x25c   : > { %2971 = vmatpush.bf16.msra.mxu2 %v5525_v62  ;;  %v6175_v62 = vld [vmem:[#allocation7 + $0x1a4] sm:$0xf0]  ;;  %v5753_v59 = vor.u32 %v6375_v49, %v5752_v48 }
 0x25d   : > { %v1313_v31 = vperm.slane %v1303_v28, 0  ;;  %v1314_v47 = vperm.slane %v1303_v28, 1  ;;  %v1315_v32 = vperm.slane %v1303_v28, 2  ;;  %v1316_v35 = vperm.slane %v1303_v28, 3  ;;  %v6231_v21 = vld [vmem:[#allocation7 + $0x364] sm:$0xf0] }
 0x25e   : > { %v4953_v5 = vor.u32 %v6175_v62, %v4952_v61  ;;  %v5432_v6 = vld [vmem:[#allocation7 + $0x548] sm:$0xf]  ;;  %v5177_v25 = vor.u32 %v6231_v21, %v5176_v18 }
 0x25f   : > { %v1321_v36 = vadd.f32 %v1313_v31, %v1308_v20  ;;  %v1322_v37 = vadd.f32 %v1314_v47, %v1309_v7  ;;  %v1323_v52 = vadd.f32 %v1315_v32, %v1310_v29  ;;  %v1324_v12 = vadd.f32 %v1316_v35, %v1311_v30  ;;  %v6295_v22 = vld [vmem:[#allocation7 + $0x564] sm:$0xf0] }
 0x260   : > { %v5688_v23 = vld [vmem:[#allocation7 + $0x748] sm:$0xf]  ;;  %v5433_v1 = vor.u32 %v6295_v22, %v5432_v6 }
 0x261   : > { %v1325_v43 = vmul.f32 0.2, %v1321_v36  ;;  %v1326_v44 = vmul.f32 0.2, %v1322_v37  ;;  %v1327_v17 = vmul.f32 0.2, %v1323_v52 }
 0x262   : > { %v1328_v45 = vmul.f32 0.2, %v1324_v12  ;;  %v6359_v57 = vld [vmem:[#allocation7 + $0x764] sm:$0xf0] }
 0x263   : > { %v1329_v42 = vmax.f32 %v1321_v36, %v1325_v43  ;;  %v1330_v10 = vmax.f32 %v1322_v37, %v1326_v44  ;;  %v1331_v51 = vmax.f32 %v1323_v52, %v1327_v17  ;;  %v4888_v33 = vld [vmem:[#allocation7 + $0x108] sm:$0xf]  ;;  %v5689_v27 = vor.u32 %v6359_v57, %v5688_v23 }
 0x264   : > { %v1332_v53 = vmax.f32 %v1324_v12, %v1328_v45  ;;  %v6159_v26 = vld [vmem:[#allocation7 + $0x124] sm:$0xf0] }
 0x265   : > { %v7176_v55 = vpack.c.bf16 %v1329_v42, %v1329_v42  ;;  %v7178_v56 = vpack.c.bf16 %v1330_v10, %v1330_v10  ;;  %v7180_v58 = vpack.c.bf16 %v1331_v51, %v1331_v51  ;;  %v5144_v28 = vld [vmem:[#allocation7 + $0x308] sm:$0xf]  ;;  %v4889_v47 = vor.u32 %v6159_v26, %v4888_v33  ;;  %v4986_v33 = vld [vmem:[#allocation7 + $0x1e8] sm:$0xf0] }
 0x266   : > { %v7182_v63 = vpack.c.bf16 %v1332_v53, %v1332_v53  ;;  %v6223_v20 = vld [vmem:[#allocation7 + $0x324] sm:$0xf0]  ;;  %v6243_v26 = vld [vmem:[#allocation7 + $0x3cc] sm:$0xf] }
 0x267   : > { %2881 = vmatmul.bf16.vlgmr.msra.gmra.mxu3 %v7176_v55  ;;  %2894 = vmatmul.bf16.vlgmr.msrb.gmra.mxu0 %v7178_v56  ;;  %v5400_v7 = vld [vmem:[#allocation7 + $0x508] sm:$0xf]  ;;  %v5145_v32 = vor.u32 %v6223_v20, %v5144_v28 }
 0x268   : > { %2907 = vmatmul.bf16.vlgmr.msrb.gmra.mxu1 %v7180_v58  ;;  %2920 = vmatmul.bf16.vlgmr.msrb.gmra.mxu2 %v7182_v63  ;;  %v6287_v29 = vld [vmem:[#allocation7 + $0x524] sm:$0xf0] }
 0x269   : > { %2977 = vmatpush.bf16.msra.mxu3 %v4985_v54  ;;  %2990 = vmatpush.bf16.msrb.mxu0 %v5241_v19  ;;  %v5656_v30 = vld [vmem:[#allocation7 + $0x708] sm:$0xf]  ;;  %v5401_v37 = vor.u32 %v6287_v29, %v5400_v7  ;;  %v5498_v7 = vld [vmem:[#allocation7 + $0x5e8] sm:$0xf0] }
 0x26a   : > { %3003 = vmatpush.bf16.msrb.mxu1 %v5497_v0  ;;  %3016 = vmatpush.bf16.msrb.mxu2 %v5753_v59  ;;  %v6351_v31 = vld [vmem:[#allocation7 + $0x724] sm:$0xf0]  ;;  %v6371_v29 = vld [vmem:[#allocation7 + $0x7cc] sm:$0xf] }
 0x26b   : > { %v4856_v35 = vld [vmem:[#allocation7 + $0xc8] sm:$0xf]  ;;  %v5657_v52 = vor.u32 %v6351_v31, %v5656_v30  ;;  %v5754_v30 = vld [vmem:[#allocation7 + $0x7e8] sm:$0xf0] }
 0x26c   : > { %v6151_v36 = vld [vmem:[#allocation7 + $0xe4] sm:$0xf0] }
 0x26d   : > { %2978 = vmatpush.bf16.msra.mxu3 %v4953_v5  ;;  %2991 = vmatpush.bf16.msrb.mxu0 %v5209_v40  ;;  %v5112_v12 = vld [vmem:[#allocation7 + $0x2c8] sm:$0xf]  ;;  %v4857_v17 = vor.u32 %v6151_v36, %v4856_v35  ;;  %v6171_v36 = vld [vmem:[#allocation7 + $0x18c] sm:$0xf] }
 0x26e   : > { %3004 = vmatpush.bf16.msrb.mxu1 %v5465_v13  ;;  %3017 = vmatpush.bf16.msrb.mxu2 %v5721_v15  ;;  %v6215_v38 = vld [vmem:[#allocation7 + $0x2e4] sm:$0xf0] }
 0x26f   : > { %v5368_v39 = vld [vmem:[#allocation7 + $0x4c8] sm:$0xf]  ;;  %v5113_v45 = vor.u32 %v6215_v38, %v5112_v12  ;;  %v5757_v12 = vor.u32 %v6371_v29, %v5754_v30  ;;  %v6235_v38 = vld [vmem:[#allocation7 + $0x38c] sm:$0xf] }
 0x270   : > { %v6279_v41 = vld [vmem:[#allocation7 + $0x4e4] sm:$0xf0]  ;;  %v5082_v29 = vld [vmem:[#allocation7 + $0x2a8] sm:$0xf0] }
 0x271   : > { %2979 = vmatpush.bf16.msra.mxu3 %v4921_v24  ;;  %2992 = vmatpush.bf16.msrb.mxu0 %v5177_v25  ;;  %v5624_v43 = vld [vmem:[#allocation7 + $0x6c8] sm:$0xf]  ;;  %v5369_v42 = vor.u32 %v6279_v41, %v5368_v39  ;;  %v6179_v25 = vld [vmem:[#allocation7 + $0x1cc] sm:$0xf] }
 0x272   : > { %3005 = vmatpush.bf16.msrb.mxu1 %v5433_v1  ;;  %3018 = vmatpush.bf16.msrb.mxu2 %v5689_v27  ;;  %v6343_v44 = vld [vmem:[#allocation7 + $0x6e4] sm:$0xf0]  ;;  %v5242_v1 = vld [vmem:[#allocation7 + $0x3e8] sm:$0xf0] }
 0x273   : > { %v4824_v16 = vld [vmem:[#allocation7 + $0x88] sm:$0xf]  ;;  %v5625_v10 = vor.u32 %v6343_v44, %v5624_v43  ;;  %v6307_v27 = vld [vmem:[#allocation7 + $0x5cc] sm:$0xf]  ;;  %v5245_v35 = vor.u32 %v6243_v26, %v5242_v1 }
 0x274   : > { %v6143_v46 = vld [vmem:[#allocation7 + $0xa4] sm:$0xf0]  ;;  %v5210_v39 = vld [vmem:[#allocation7 + $0x3a8] sm:$0xf0] }
 0x275   : > { %2980 = vmatpush.bf16.msra.mxu3 %v4889_v47  ;;  %2993 = vmatpush.bf16.msrb.mxu0 %v5145_v32  ;;  %v5080_v51 = vld [vmem:[#allocation7 + $0x288] sm:$0xf]  ;;  %v4825_v19 = vor.u32 %v6143_v46, %v4824_v16  ;;  %v4989_v32 = vor.u32 %v6179_v25, %v4986_v33  ;;  %v6299_v41 = vld [vmem:[#allocation7 + $0x58c] sm:$0xf]  ;;  %v5213_v16 = vor.u32 %v6235_v38, %v5210_v39 }
 0x276   : > { %3006 = vmatpush.bf16.msrb.mxu1 %v5401_v37  ;;  %3019 = vmatpush.bf16.msrb.mxu2 %v5657_v52  ;;  %v6207_v14 = vld [vmem:[#allocation7 + $0x2a4] sm:$0xf0]  ;;  %v4954_v37 = vld [vmem:[#allocation7 + $0x1a8] sm:$0xf0]  ;;  %v5501_v52 = vor.u32 %v6307_v27, %v5498_v7 }
 0x277   : > { %v5336_v48 = vld [vmem:[#allocation7 + $0x488] sm:$0xf]  ;;  %2933 = vmatmul.bf16.vlgmr.msrb.gmra.mxu3 %v7176_v55  ;;  %2946 = vmatmul.bf16.vlgmr.msra.gmra.mxu0 %v7178_v56  ;;  %v5081_v61 = vor.u32 %v6207_v14, %v5080_v51  ;;  %v5466_v43 = vld [vmem:[#allocation7 + $0x5a8] sm:$0xf0] }
 0x278   : > { %v6271_v49 = vld [vmem:[#allocation7 + $0x4a4] sm:$0xf0]  ;;  %2959 = vmatmul.bf16.vlgmr.msra.gmra.mxu1 %v7180_v58  ;;  %2972 = vmatmul.bf16.vlgmr.msra.gmra.mxu2 %v7182_v63  ;;  %v6363_v44 = vld [vmem:[#allocation7 + $0x78c] sm:$0xf] }
 0x279   : > { %v5592_v53 = vld [vmem:[#allocation7 + $0x688] sm:$0xf]  ;;  %2981 = vmatpush.bf16.msra.mxu3 %v4857_v17  ;;  %2994 = vmatpush.bf16.msrb.mxu0 %v5113_v45  ;;  %v5337_v59 = vor.u32 %v6271_v49, %v5336_v48  ;;  %v5722_v17 = vld [vmem:[#allocation7 + $0x7a8] sm:$0xf0]  ;;  %v4957_v45 = vor.u32 %v6171_v36, %v4954_v37 }
 0x27a   : > { %v6335_v54 = vld [vmem:[#allocation7 + $0x6a4] sm:$0xf0]  ;;  %3007 = vmatpush.bf16.msrb.mxu1 %v5369_v42  ;;  %3020 = vmatpush.bf16.msrb.mxu2 %v5625_v10  ;;  %v6163_v46 = vld [vmem:[#allocation7 + $0x14c] sm:$0xf]  ;;  %v5469_v10 = vor.u32 %v6299_v41, %v5466_v43  ;;  %v5725_v51 = vor.u32 %v6363_v44, %v5722_v17 }
 0x27b   : > { %v4792_v62 = vld [vmem:[#allocation7 + $0x48] sm:$0xf]  ;;  %v5593_v50 = vor.u32 %v6335_v54, %v5592_v53  ;;  %v4922_v42 = vld [vmem:[#allocation7 + $0x168] sm:$0xf0] }
 0x27c   : > { %v6135_v0 = vld [vmem:[#allocation7 + $0x64] sm:$0xf0]  ;;  %v6227_v14 = vld [vmem:[#allocation7 + $0x34c] sm:$0xf] }
 0x27d   : > { %v5048_v2 = vld [vmem:[#allocation7 + $0x248] sm:$0xf]  ;;  %2982 = vmatpush.bf16.msra.mxu3 %v4825_v19  ;;  %2995 = vmatpush.bf16.msrb.mxu0 %v5081_v61  ;;  %v4793_v9 = vor.u32 %v6135_v0, %v4792_v62  ;;  %v5178_v48 = vld [vmem:[#allocation7 + $0x368] sm:$0xf0]  ;;  %v4925_v61 = vor.u32 %v6163_v46, %v4922_v42 }
 0x27e   : > { %v6199_v60 = vld [vmem:[#allocation7 + $0x264] sm:$0xf0]  ;;  %3008 = vmatpush.bf16.msrb.mxu1 %v5337_v59  ;;  %3021 = vmatpush.bf16.msrb.mxu2 %v5593_v50  ;;  %v6291_v49 = vld [vmem:[#allocation7 + $0x54c] sm:$0xf]  ;;  %v5181_v62 = vor.u32 %v6227_v14, %v5178_v48 }
 0x27f   : > { %v5304_v3 = vld [vmem:[#allocation7 + $0x448] sm:$0xf]  ;;  %v5049_v11 = vor.u32 %v6199_v60, %v5048_v2  ;;  %v5434_v53 = vld [vmem:[#allocation7 + $0x568] sm:$0xf0] }
 0x280   : > { %v6263_v4 = vld [vmem:[#allocation7 + $0x464] sm:$0xf0]  ;;  %v6355_v54 = vld [vmem:[#allocation7 + $0x74c] sm:$0xf]  ;;  %v5437_v50 = vor.u32 %v6291_v49, %v5434_v53 }
 0x281   : > { %v5560_v8 = vld [vmem:[#allocation7 + $0x648] sm:$0xf]  ;;  %v5305_v21 = vor.u32 %v6263_v4, %v5304_v3  ;;  %2983 = vmatpush.bf16.msra.mxu3 %v4793_v9  ;;  %2996 = vmatpush.bf16.msrb.mxu0 %v5049_v11  ;;  %v5690_v19 = vld [vmem:[#allocation7 + $0x768] sm:$0xf0] }
 0x282   : > { %v6327_v5 = vld [vmem:[#allocation7 + $0x664] sm:$0xf0]  ;;  %v6155_v0 = vld [vmem:[#allocation7 + $0x10c] sm:$0xf]  ;;  %v5693_v2 = vor.u32 %v6355_v54, %v5690_v19 }
 0x283   : > { %v4760_v40 = vld [vmem:[#allocation7 + $0x8] sm:$0xf]  ;;  %v5561_v6 = vor.u32 %v6327_v5, %v5560_v8  ;;  %3009 = vmatpush.bf16.msrb.mxu1 %v5305_v21  ;;  %v4890_v59 = vld [vmem:[#allocation7 + $0x128] sm:$0xf0] }
 0x284   : > { %v6127_v13 = vld [vmem:[#allocation7 + $0x24] sm:$0xf0]  ;;  %v6219_v60 = vld [vmem:[#allocation7 + $0x30c] sm:$0xf]  ;;  %v4893_v9 = vor.u32 %v6155_v0, %v4890_v59  ;;  %v6184_v0 = vld [vmem:[#allocation7 + $0x1ec] sm:$0xf0] }
 0x285   : > { %v5016_v15 = vld [vmem:[#allocation7 + $0x208] sm:$0xf]  ;;  %v4761_v28 = vor.u32 %v6127_v13, %v4760_v40  ;;  %3022 = vmatpush.bf16.msrb.mxu2 %v5561_v6  ;;  %v5146_v3 = vld [vmem:[#allocation7 + $0x328] sm:$0xf0]  ;;  %v5248_v59 = vld [vmem:[#allocation7 + $0x3d0] sm:$0xf] }
 0x286   : > { %v6191_v18 = vld [vmem:[#allocation7 + $0x224] sm:$0xf0]  ;;  %v6283_v4 = vld [vmem:[#allocation7 + $0x50c] sm:$0xf]  ;;  %v5149_v11 = vor.u32 %v6219_v60, %v5146_v3 }
 0x287   : > { %v5272_v22 = vld [vmem:[#allocation7 + $0x408] sm:$0xf]  ;;  %v5017_v20 = vor.u32 %v6191_v18, %v5016_v15  ;;  %2984 = vmatpush.bf16.msra.mxu3 %v4761_v28  ;;  %v5402_v8 = vld [vmem:[#allocation7 + $0x528] sm:$0xf0] }
 0x288   : > { %v6255_v23 = vld [vmem:[#allocation7 + $0x424] sm:$0xf0]  ;;  %v6347_v5 = vld [vmem:[#allocation7 + $0x70c] sm:$0xf]  ;;  %v5405_v18 = vor.u32 %v6283_v4, %v5402_v8  ;;  %v6312_v4 = vld [vmem:[#allocation7 + $0x5ec] sm:$0xf0] }
 0x289   : > { %v5528_v57 = vld [vmem:[#allocation7 + $0x608] sm:$0xf]  ;;  %v5273_v31 = vor.u32 %v6255_v23, %v5272_v22  ;;  %2997 = vmatpush.bf16.msrb.mxu0 %v5017_v20  ;;  %v5658_v40 = vld [vmem:[#allocation7 + $0x728] sm:$0xf0]  ;;  %v5760_v8 = vld [vmem:[#allocation7 + $0x7d0] sm:$0xf] }
 0x28a   : > { %v6319_v24 = vld [vmem:[#allocation7 + $0x624] sm:$0xf0]  ;;  %2985 = vmatmul.bf16.vlgmr.msra.gmra.mxu3 %v7176_v55  ;;  %v6147_v13 = vld [vmem:[#allocation7 + $0xcc] sm:$0xf]  ;;  %v5661_v21 = vor.u32 %v6347_v5, %v5658_v40  ;;  %v6376_v5 = vld [vmem:[#allocation7 + $0x7ec] sm:$0xf0] }
 0x28b   : > { %v5529_v47 = vor.u32 %v6319_v24, %v5528_v57  ;;  %3010 = vmatpush.bf16.msrb.mxu1 %v5273_v31  ;;  %3029 = vmatpush.bf16.msrb.mxu3 %v4989_v32  ;;  %v4858_v15 = vld [vmem:[#allocation7 + $0xe8] sm:$0xf0] }
 0x28c   : > { %2998 = vmatmul.bf16.vlgmr.msrb.gmra.mxu0 %v7178_v56  ;;  %v6211_v6 = vld [vmem:[#allocation7 + $0x2cc] sm:$0xf]  ;;  %v4861_v33 = vor.u32 %v6147_v13, %v4858_v15  ;;  %v4960_v15 = vld [vmem:[#allocation7 + $0x190] sm:$0xf] }
 0x28d   : > { %3023 = vmatpush.bf16.msrb.mxu2 %v5529_v47  ;;  %3042 = vmatpush.bf16.msra.mxu0 %v5245_v35  ;;  %v5114_v22 = vld [vmem:[#allocation7 + $0x2e8] sm:$0xf0] }
 0x28e   : > { %3011 = vmatmul.bf16.vlgmr.msrb.gmra.mxu1 %v7180_v58  ;;  %v6275_v23 = vld [vmem:[#allocation7 + $0x4cc] sm:$0xf]  ;;  %v5117_v26 = vor.u32 %v6211_v6, %v5114_v22  ;;  %v5761_v6 = vor.u32 %v6376_v5, %v5760_v8  ;;  %v5216_v22 = vld [vmem:[#allocation7 + $0x390] sm:$0xf] }
 0x28f   : > { %3055 = vmatpush.bf16.msra.mxu1 %v5501_v52  ;;  %3030 = vmatpush.bf16.msrb.mxu3 %v4957_v45  ;;  %v5370_v57 = vld [vmem:[#allocation7 + $0x4e8] sm:$0xf0]  ;;  %v6208_v8 = vld [vmem:[#allocation7 + $0x2ac] sm:$0xf0] }
 0x290   : > { %3024 = vmatmul.bf16.vlgmr.msrb.gmra.mxu2 %v7182_v63  ;;  %v6339_v24 = vld [vmem:[#allocation7 + $0x6cc] sm:$0xf]  ;;  %v5373_v28 = vor.u32 %v6275_v23, %v5370_v57  ;;  %v6240_v23 = vld [vmem:[#allocation7 + $0x3ac] sm:$0xf0] }
 0x291   : > { %3068 = vmatpush.bf16.msra.mxu2 %v5757_v12  ;;  %3043 = vmatpush.bf16.msra.mxu0 %v5213_v16  ;;  %v5626_v25 = vld [vmem:[#allocation7 + $0x6e8] sm:$0xf0]  ;;  %v5472_v57 = vld [vmem:[#allocation7 + $0x590] sm:$0xf] }
 0x292   : > { %v6139_v1 = vld [vmem:[#allocation7 + $0x8c] sm:$0xf]  ;;  %v5629_v20 = vor.u32 %v6339_v24, %v5626_v25  ;;  %v6304_v24 = vld [vmem:[#allocation7 + $0x5ac] sm:$0xf0] }
 0x293   : > { %3056 = vmatpush.bf16.msra.mxu1 %v5469_v10  ;;  %3031 = vmatpush.bf16.msrb.mxu3 %v4925_v61  ;;  %v4826_v27 = vld [vmem:[#allocation7 + $0xa8] sm:$0xf0]  ;;  %v5728_v25 = vld [vmem:[#allocation7 + $0x790] sm:$0xf] }
 0x294   : > { %v6203_v7 = vld [vmem:[#allocation7 + $0x28c] sm:$0xf]  ;;  %v4829_v35 = vor.u32 %v6139_v1, %v4826_v27  ;;  %v5217_v1 = vor.u32 %v6240_v23, %v5216_v22  ;;  %v4928_v27 = vld [vmem:[#allocation7 + $0x150] sm:$0xf] }
 0x295   : > { %3069 = vmatpush.bf16.msra.mxu2 %v5725_v51  ;;  %3044 = vmatpush.bf16.msra.mxu0 %v5181_v62  ;;  %v6267_v30 = vld [vmem:[#allocation7 + $0x48c] sm:$0xf]  ;;  %v5085_v36 = vor.u32 %v6203_v7, %v5082_v29  ;;  %v4992_v62 = vld [vmem:[#allocation7 + $0x1d0] sm:$0xf] }
 0x296   : > { %v5338_v31 = vld [vmem:[#allocation7 + $0x4a8] sm:$0xf0]  ;;  %v5184_v29 = vld [vmem:[#allocation7 + $0x350] sm:$0xf] }
 0x297   : > { %3057 = vmatpush.bf16.msra.mxu1 %v5437_v50  ;;  %3032 = vmatpush.bf16.msrb.mxu3 %v4893_v9  ;;  %v6331_v47 = vld [vmem:[#allocation7 + $0x68c] sm:$0xf]  ;;  %v5341_v12 = vor.u32 %v6267_v30, %v5338_v31  ;;  %v6248_v50 = vld [vmem:[#allocation7 + $0x3ec] sm:$0xf0] }
 0x298   : > { %v5594_v32 = vld [vmem:[#allocation7 + $0x6a8] sm:$0xf0]  ;;  %v5249_v13 = vor.u32 %v6248_v50, %v5248_v59  ;;  %v6232_v30 = vld [vmem:[#allocation7 + $0x36c] sm:$0xf0] }
 0x299   : > { %3070 = vmatpush.bf16.msra.mxu2 %v5693_v2  ;;  %3045 = vmatpush.bf16.msra.mxu0 %v5149_v11  ;;  %v6131_v37 = vld [vmem:[#allocation7 + $0x4c] sm:$0xf]  ;;  %v5597_v38 = vor.u32 %v6331_v47, %v5594_v32  ;;  %v5504_v2 = vld [vmem:[#allocation7 + $0x5d0] sm:$0xf]  ;;  %v4993_v11 = vor.u32 %v6184_v0, %v4992_v62 }
 0x29a   : > { %v4794_v52 = vld [vmem:[#allocation7 + $0x68] sm:$0xf0]  ;;  %v5440_v31 = vld [vmem:[#allocation7 + $0x550] sm:$0xf] }
 0x29b   : > { %3058 = vmatpush.bf16.msra.mxu1 %v5405_v18  ;;  %3033 = vmatpush.bf16.msrb.mxu3 %v4861_v33  ;;  %v6195_v39 = vld [vmem:[#allocation7 + $0x24c] sm:$0xf]  ;;  %v4797_v46 = vor.u32 %v6131_v37, %v4794_v52  ;;  %v6176_v18 = vld [vmem:[#allocation7 + $0x1ac] sm:$0xf0]  ;;  %v5185_v37 = vor.u32 %v6232_v30, %v5184_v29 }
 0x29c   : > { %v5050_v41 = vld [vmem:[#allocation7 + $0x268] sm:$0xf0]  ;;  %v6368_v33 = vld [vmem:[#allocation7 + $0x7ac] sm:$0xf0] }
 0x29d   : > { %3071 = vmatpush.bf16.msra.mxu2 %v5661_v21  ;;  %3046 = vmatpush.bf16.msra.mxu0 %v5117_v26  ;;  %v6259_v43 = vld [vmem:[#allocation7 + $0x44c] sm:$0xf]  ;;  %v5053_v42 = vor.u32 %v6195_v39, %v5050_v41  ;;  %v5505_v21 = vor.u32 %v6312_v4, %v5504_v2  ;;  %v4961_v26 = vor.u32 %v6176_v18, %v4960_v15  ;;  %v6296_v47 = vld [vmem:[#allocation7 + $0x56c] sm:$0xf0] }
 0x29e   : > { %v5306_v44 = vld [vmem:[#allocation7 + $0x468] sm:$0xf0]  ;;  %v5729_v7 = vor.u32 %v6368_v33, %v5728_v25  ;;  %v5696_v32 = vld [vmem:[#allocation7 + $0x750] sm:$0xf] }
 0x29f   : > { %3059 = vmatpush.bf16.msra.mxu1 %v5373_v28  ;;  %v6323_v17 = vld [vmem:[#allocation7 + $0x64c] sm:$0xf]  ;;  %3034 = vmatpush.bf16.msrb.mxu3 %v4829_v35  ;;  %v5309_v48 = vor.u32 %v6259_v43, %v5306_v44  ;;  %v6168_v28 = vld [vmem:[#allocation7 + $0x16c] sm:$0xf0] }
 0x2a0   : > { %v5562_v45 = vld [vmem:[#allocation7 + $0x668] sm:$0xf0]  ;;  %v6360_v35 = vld [vmem:[#allocation7 + $0x76c] sm:$0xf0] }
 0x2a1   : > { %3072 = vmatpush.bf16.msra.mxu2 %v5629_v20  ;;  %v6123_v16 = vld [vmem:[#allocation7 + $0xc] sm:$0xf]  ;;  %3047 = vmatpush.bf16.msra.mxu0 %v5085_v36  ;;  %v5565_v49 = vor.u32 %v6323_v17, %v5562_v45  ;;  %v5473_v20 = vor.u32 %v6304_v24, %v5472_v57  ;;  %v4929_v36 = vor.u32 %v6168_v28, %v4928_v27  ;;  %v4896_v52 = vld [vmem:[#allocation7 + $0x110] sm:$0xf] }
 0x2a2   : > { %v4762_v10 = vld [vmem:[#allocation7 + $0x28] sm:$0xf0]  ;;  %v5697_v39 = vor.u32 %v6360_v35, %v5696_v32  ;;  %v5152_v41 = vld [vmem:[#allocation7 + $0x310] sm:$0xf] }
 0x2a3   : > { %v6187_v51 = vld [vmem:[#allocation7 + $0x20c] sm:$0xf]  ;;  %3060 = vmatpush.bf16.msra.mxu1 %v5341_v12  ;;  %3035 = vmatpush.bf16.msrb.mxu3 %v4797_v46  ;;  %v4765_v60 = vor.u32 %v6123_v16, %v4762_v10  ;;  %v6160_v12 = vld [vmem:[#allocation7 + $0x12c] sm:$0xf0] }
 0x2a4   : > { %v5018_v14 = vld [vmem:[#allocation7 + $0x228] sm:$0xf0]  ;;  %v6224_v43 = vld [vmem:[#allocation7 + $0x32c] sm:$0xf0]  ;;  %v4897_v46 = vor.u32 %v6160_v12, %v4896_v52  ;;  %v4994_v52 = vld [vmem:[#allocation7 + $0x1f0] sm:$0xf0] }
 0x2a5   : > { %3073 = vmatpush.bf16.msra.mxu2 %v5597_v38  ;;  %v6251_v53 = vld [vmem:[#allocation7 + $0x40c] sm:$0xf]  ;;  %3048 = vmatpush.bf16.msra.mxu0 %v5053_v42  ;;  %v5021_v3 = vor.u32 %v6187_v51, %v5018_v14  ;;  %v5441_v38 = vor.u32 %v6296_v47, %v5440_v31  ;;  %v5408_v44 = vld [vmem:[#allocation7 + $0x510] sm:$0xf]  ;;  %v5153_v42 = vor.u32 %v6224_v43, %v5152_v41  ;;  %v6244_v12 = vld [vmem:[#allocation7 + $0x3d4] sm:$0xf] }
 0x2a6   : > { %v5274_v54 = vld [vmem:[#allocation7 + $0x428] sm:$0xf0]  ;;  %v6288_v17 = vld [vmem:[#allocation7 + $0x52c] sm:$0xf0] }
 0x2a7   : > { %v6315_v19 = vld [vmem:[#allocation7 + $0x60c] sm:$0xf]  ;;  %3061 = vmatpush.bf16.msra.mxu1 %v5309_v48  ;;  %v5277_v40 = vor.u32 %v6251_v53, %v5274_v54  ;;  %3036 = vmatpush.bf16.msrb.mxu3 %v4765_v60  ;;  %v5664_v45 = vld [vmem:[#allocation7 + $0x710] sm:$0xf]  ;;  %v5409_v14 = vor.u32 %v6288_v17, %v5408_v44  ;;  %v5506_v44 = vld [vmem:[#allocation7 + $0x5f0] sm:$0xf0] }
 0x2a8   : > { %v5530_v61 = vld [vmem:[#allocation7 + $0x628] sm:$0xf0]  ;;  %v6352_v16 = vld [vmem:[#allocation7 + $0x72c] sm:$0xf0]  ;;  %v6372_v17 = vld [vmem:[#allocation7 + $0x7d4] sm:$0xf] }
 0x2a9   : > { %3074 = vmatpush.bf16.msra.mxu2 %v5565_v49  ;;  %v5533_v9 = vor.u32 %v6315_v19, %v5530_v61  ;;  %3049 = vmatpush.bf16.msra.mxu0 %v5021_v3  ;;  %v4864_v10 = vld [vmem:[#allocation7 + $0xd0] sm:$0xf]  ;;  %v5665_v48 = vor.u32 %v6352_v16, %v5664_v45  ;;  %v5762_v45 = vld [vmem:[#allocation7 + $0x7f0] sm:$0xf0] }
 0x2aa   : > { %3037 = vmatmul.bf16.vlgmr.msrb.gmra.mxu3 %v7176_v55  ;;  %v6152_v51 = vld [vmem:[#allocation7 + $0xec] sm:$0xf0] }
 0x2ab   : > { %3062 = vmatpush.bf16.msra.mxu1 %v5277_v40  ;;  %3081 = vmatpush.bf16.msra.mxu3 %v4993_v11  ;;  %v5120_v49 = vld [vmem:[#allocation7 + $0x2d0] sm:$0xf]  ;;  %v4865_v0 = vor.u32 %v6152_v51, %v4864_v10  ;;  %v6172_v51 = vld [vmem:[#allocation7 + $0x194] sm:$0xf] }
 0x2ac   : > { %3050 = vmatmul.bf16.vlgmr.msra.gmra.mxu0 %v7178_v56  ;;  %v6216_v53 = vld [vmem:[#allocation7 + $0x2ec] sm:$0xf0] }
 0x2ad   : > { %3075 = vmatpush.bf16.msra.mxu2 %v5533_v9  ;;  %3094 = vmatpush.bf16.msrb.mxu0 %v5249_v13  ;;  %v5376_v54 = vld [vmem:[#allocation7 + $0x4d0] sm:$0xf]  ;;  %v5121_v59 = vor.u32 %v6216_v53, %v5120_v49  ;;  %v5765_v49 = vor.u32 %v6372_v17, %v5762_v45  ;;  %v6236_v53 = vld [vmem:[#allocation7 + $0x394] sm:$0xf] }
 0x2ae   : > { %3063 = vmatmul.bf16.vlgmr.msra.gmra.mxu1 %v7180_v58  ;;  %v6280_v19 = vld [vmem:[#allocation7 + $0x4ec] sm:$0xf0]  ;;  %v5090_v17 = vld [vmem:[#allocation7 + $0x2b0] sm:$0xf0] }
 0x2af   : > { %3107 = vmatpush.bf16.msrb.mxu1 %v5505_v21  ;;  %3082 = vmatpush.bf16.msra.mxu3 %v4961_v26  ;;  %v5632_v61 = vld [vmem:[#allocation7 + $0x6d0] sm:$0xf]  ;;  %v5377_v60 = vor.u32 %v6280_v19, %v5376_v54  ;;  %v5218_v54 = vld [vmem:[#allocation7 + $0x3b0] sm:$0xf0] }
 0x2b0   : > { %3076 = vmatmul.bf16.vlgmr.msra.gmra.mxu2 %v7182_v63  ;;  %v6344_v62 = vld [vmem:[#allocation7 + $0x6ec] sm:$0xf0]  ;;  %v6300_v19 = vld [vmem:[#allocation7 + $0x594] sm:$0xf] }
 0x2b1   : > { %3120 = vmatpush.bf16.msrb.mxu2 %v5761_v6  ;;  %3095 = vmatpush.bf16.msrb.mxu0 %v5217_v1  ;;  %v4832_v50 = vld [vmem:[#allocation7 + $0x90] sm:$0xf]  ;;  %v5633_v3 = vor.u32 %v6344_v62, %v5632_v61  ;;  %v5474_v61 = vld [vmem:[#allocation7 + $0x5b0] sm:$0xf0] }
 0x2b2   : > { %v6144_v2 = vld [vmem:[#allocation7 + $0xac] sm:$0xf0]  ;;  %v6364_v62 = vld [vmem:[#allocation7 + $0x794] sm:$0xf] }
 0x2b3   : > { %3108 = vmatpush.bf16.msrb.mxu1 %v5473_v20  ;;  %3083 = vmatpush.bf16.msra.mxu3 %v4929_v36  ;;  %v5088_v4 = vld [vmem:[#allocation7 + $0x290] sm:$0xf]  ;;  %v4833_v13 = vor.u32 %v6144_v2, %v4832_v50  ;;  %v5221_v50 = vor.u32 %v6236_v53, %v5218_v54  ;;  %v6164_v2 = vld [vmem:[#allocation7 + $0x154] sm:$0xf] }
 0x2b4   : > { %v5344_v5 = vld [vmem:[#allocation7 + $0x490] sm:$0xf]  ;;  %v5089_v15 = vor.u32 %v6208_v8, %v5088_v4  ;;  %v6228_v8 = vld [vmem:[#allocation7 + $0x354] sm:$0xf] }
 0x2b5   : > { %3121 = vmatpush.bf16.msrb.mxu2 %v5729_v7  ;;  %3096 = vmatpush.bf16.msrb.mxu0 %v5185_v37  ;;  %v6272_v40 = vld [vmem:[#allocation7 + $0x4ac] sm:$0xf0]  ;;  %v6180_v37 = vld [vmem:[#allocation7 + $0x1d4] sm:$0xf] }
 0x2b6   : > { %v5600_v9 = vld [vmem:[#allocation7 + $0x690] sm:$0xf]  ;;  %v5345_v6 = vor.u32 %v6272_v40, %v5344_v5  ;;  %v5186_v5 = vld [vmem:[#allocation7 + $0x370] sm:$0xf0] }
 0x2b7   : > { %3109 = vmatpush.bf16.msrb.mxu1 %v5441_v38  ;;  %3084 = vmatpush.bf16.msra.mxu3 %v4897_v46  ;;  %v6336_v11 = vld [vmem:[#allocation7 + $0x6ac] sm:$0xf0]  ;;  %v5250_v38 = vld [vmem:[#allocation7 + $0x3f0] sm:$0xf0] }
 0x2b8   : > { %v4800_v18 = vld [vmem:[#allocation7 + $0x50] sm:$0xf]  ;;  %v5601_v22 = vor.u32 %v6336_v11, %v5600_v9  ;;  %v5253_v10 = vor.u32 %v6244_v12, %v5250_v38  ;;  %v6292_v40 = vld [vmem:[#allocation7 + $0x554] sm:$0xf] }
 0x2b9   : > { %3122 = vmatpush.bf16.msrb.mxu2 %v5697_v39  ;;  %3097 = vmatpush.bf16.msrb.mxu0 %v5153_v42  ;;  %v6136_v21 = vld [vmem:[#allocation7 + $0x6c] sm:$0xf0]  ;;  %v6308_v39 = vld [vmem:[#allocation7 + $0x5d4] sm:$0xf]  ;;  %v4997_v42 = vor.u32 %v6180_v37, %v4994_v52 }
 0x2ba   : > { %v5056_v23 = vld [vmem:[#allocation7 + $0x250] sm:$0xf]  ;;  %v4801_v27 = vor.u32 %v6136_v21, %v4800_v18  ;;  %v5442_v9 = vld [vmem:[#allocation7 + $0x570] sm:$0xf0]  ;;  %v5189_v18 = vor.u32 %v6228_v8, %v5186_v5 }
 0x2bb   : > { %3110 = vmatpush.bf16.msrb.mxu1 %v5409_v14  ;;  %3085 = vmatpush.bf16.msra.mxu3 %v4865_v0  ;;  %v6200_v57 = vld [vmem:[#allocation7 + $0x26c] sm:$0xf0]  ;;  %v4962_v14 = vld [vmem:[#allocation7 + $0x1b0] sm:$0xf0] }
 0x2bc   : > { %v5312_v24 = vld [vmem:[#allocation7 + $0x450] sm:$0xf]  ;;  %v5057_v28 = vor.u32 %v6200_v57, %v5056_v23  ;;  %v5730_v0 = vld [vmem:[#allocation7 + $0x7b0] sm:$0xf0] }
 0x2bd   : > { %3123 = vmatpush.bf16.msrb.mxu2 %v5665_v48  ;;  %3098 = vmatpush.bf16.msrb.mxu0 %v5121_v59  ;;  %v6264_v25 = vld [vmem:[#allocation7 + $0x46c] sm:$0xf0]  ;;  %v5509_v48 = vor.u32 %v6308_v39, %v5506_v44  ;;  %v4965_v59 = vor.u32 %v6172_v51, %v4962_v14  ;;  %v5733_v4 = vor.u32 %v6364_v62, %v5730_v0  ;;  %v6356_v11 = vld [vmem:[#allocation7 + $0x754] sm:$0xf] }
 0x2be   : > { %v5568_v33 = vld [vmem:[#allocation7 + $0x650] sm:$0xf]  ;;  %v5313_v30 = vor.u32 %v6264_v25, %v5312_v24  ;;  %v6156_v21 = vld [vmem:[#allocation7 + $0x114] sm:$0xf] }
 0x2bf   : > { %3111 = vmatpush.bf16.msrb.mxu1 %v5377_v60  ;;  %v6328_v26 = vld [vmem:[#allocation7 + $0x66c] sm:$0xf0]  ;;  %3086 = vmatpush.bf16.msra.mxu3 %v4833_v13  ;;  %v4930_v60 = vld [vmem:[#allocation7 + $0x170] sm:$0xf0] }
 0x2c0   : > { %v4768_v1 = vld [vmem:[#allocation7 + $0x10] sm:$0xf]  ;;  %v5569_v31 = vor.u32 %v6328_v26, %v5568_v33  ;;  %v5698_v13 = vld [vmem:[#allocation7 + $0x770] sm:$0xf0] }
 0x2c1   : > { %3124 = vmatpush.bf16.msrb.mxu2 %v5633_v3  ;;  %3099 = vmatpush.bf16.msrb.mxu0 %v5089_v15  ;;  %v6128_v20 = vld [vmem:[#allocation7 + $0x2c] sm:$0xf0]  ;;  %v5477_v3 = vor.u32 %v6300_v19, %v5474_v61  ;;  %v4933_v15 = vor.u32 %v6164_v2, %v4930_v60  ;;  %v5701_v23 = vor.u32 %v6356_v11, %v5698_v13  ;;  %v6220_v57 = vld [vmem:[#allocation7 + $0x314] sm:$0xf] }
 0x2c2   : > { %v5024_v7 = vld [vmem:[#allocation7 + $0x210] sm:$0xf]  ;;  %v4769_v41 = vor.u32 %v6128_v20, %v4768_v1  ;;  %v5154_v24 = vld [vmem:[#allocation7 + $0x330] sm:$0xf0] }
 0x2c3   : > { %v6192_v29 = vld [vmem:[#allocation7 + $0x22c] sm:$0xf0]  ;;  %3112 = vmatpush.bf16.msrb.mxu1 %v5345_v6  ;;  %3087 = vmatpush.bf16.msra.mxu3 %v4801_v27  ;;  %v4898_v6 = vld [vmem:[#allocation7 + $0x130] sm:$0xf0] }
 0x2c4   : > { %v5280_v47 = vld [vmem:[#allocation7 + $0x410] sm:$0xf]  ;;  %v5025_v43 = vor.u32 %v6192_v29, %v5024_v7  ;;  %v6284_v25 = vld [vmem:[#allocation7 + $0x514] sm:$0xf]  ;;  %v4901_v27 = vor.u32 %v6156_v21, %v4898_v6  ;;  %v6185_v21 = vld [vmem:[#allocation7 + $0x1f4] sm:$0xf0] }
 0x2c5   : > { %3125 = vmatpush.bf16.msrb.mxu2 %v5601_v22  ;;  %v6256_v32 = vld [vmem:[#allocation7 + $0x42c] sm:$0xf0]  ;;  %3100 = vmatpush.bf16.msrb.mxu0 %v5057_v28  ;;  %v5445_v22 = vor.u32 %v6292_v40, %v5442_v9  ;;  %v5410_v33 = vld [vmem:[#allocation7 + $0x530] sm:$0xf0]  ;;  %v5157_v28 = vor.u32 %v6220_v57, %v5154_v24  ;;  %v5256_v6 = vld [vmem:[#allocation7 + $0x3d8] sm:$0xf] }
 0x2c6   : > { %v5536_v35 = vld [vmem:[#allocation7 + $0x610] sm:$0xf]  ;;  %v5281_v16 = vor.u32 %v6256_v32, %v5280_v47  ;;  %v6348_v26 = vld [vmem:[#allocation7 + $0x714] sm:$0xf]  ;;  %v5413_v29 = vor.u32 %v6284_v25, %v5410_v33  ;;  %v6313_v25 = vld [vmem:[#allocation7 + $0x5f4] sm:$0xf0] }
 0x2c7   : > { %v6320_v36 = vld [vmem:[#allocation7 + $0x62c] sm:$0xf0]  ;;  %3113 = vmatpush.bf16.msrb.mxu1 %v5313_v30  ;;  %3088 = vmatpush.bf16.msra.mxu3 %v4769_v41  ;;  %v5666_v1 = vld [vmem:[#allocation7 + $0x730] sm:$0xf0]  ;;  %v5768_v33 = vld [vmem:[#allocation7 + $0x7d8] sm:$0xf] }
 0x2c8   : > { %v5537_v46 = vor.u32 %v6320_v36, %v5536_v35  ;;  %v6148_v20 = vld [vmem:[#allocation7 + $0xd4] sm:$0xf]  ;;  %v5669_v30 = vor.u32 %v6348_v26, %v5666_v1  ;;  %v6377_v26 = vld [vmem:[#allocation7 + $0x7f4] sm:$0xf0] }
 0x2c9   : > { %3126 = vmatpush.bf16.msrb.mxu2 %v5569_v31  ;;  %3101 = vmatpush.bf16.msrb.mxu0 %v5025_v43  ;;  %v4866_v7 = vld [vmem:[#allocation7 + $0xf0] sm:$0xf0] }
 0x2ca   : > { %3089 = vmatmul.bf16.vlgmr.msra.gmra.mxu3 %v7176_v55  ;;  %v6212_v31 = vld [vmem:[#allocation7 + $0x2d4] sm:$0xf]  ;;  %v4869_v52 = vor.u32 %v6148_v20, %v4866_v7  ;;  %v4968_v7 = vld [vmem:[#allocation7 + $0x198] sm:$0xf] }
 0x2cb   : > { %3114 = vmatpush.bf16.msrb.mxu1 %v5281_v16  ;;  %3133 = vmatpush.bf16.msrb.mxu3 %v4997_v42  ;;  %v5122_v47 = vld [vmem:[#allocation7 + $0x2f0] sm:$0xf0] }
 0x2cc   : > { %3102 = vmatmul.bf16.vlgmr.msrb.gmra.mxu0 %v7178_v56  ;;  %v6276_v32 = vld [vmem:[#allocation7 + $0x4d4] sm:$0xf]  ;;  %v5125_v12 = vor.u32 %v6212_v31, %v5122_v47  ;;  %v5769_v31 = vor.u32 %v6377_v26, %v5768_v33  ;;  %v5224_v47 = vld [vmem:[#allocation7 + $0x398] sm:$0xf] }
 0x2cd   : > { %3127 = vmatpush.bf16.msrb.mxu2 %v5537_v46  ;;  %3146 = vmatpush.bf16.msra.mxu0 %v5253_v10  ;;  %v5378_v35 = vld [vmem:[#allocation7 + $0x4f0] sm:$0xf0] }
 0x2ce   : > { %3115 = vmatmul.bf16.vlgmr.msrb.gmra.mxu1 %v7180_v58  ;;  %v6340_v36 = vld [vmem:[#allocation7 + $0x6d4] sm:$0xf]  ;;  %v5381_v41 = vor.u32 %v6276_v32, %v5378_v35  ;;  %v6241_v32 = vld [vmem:[#allocation7 + $0x3b4] sm:$0xf0] }
 0x2cf   : > { %3159 = vmatpush.bf16.msra.mxu1 %v5509_v48  ;;  %3134 = vmatpush.bf16.msrb.mxu3 %v4965_v59  ;;  %v5634_v37 = vld [vmem:[#allocation7 + $0x6f0] sm:$0xf0]  ;;  %v5480_v35 = vld [vmem:[#allocation7 + $0x598] sm:$0xf] }
 0x2d0   : > { %3128 = vmatmul.bf16.vlgmr.msrb.gmra.mxu2 %v7182_v63  ;;  %v6140_v38 = vld [vmem:[#allocation7 + $0x94] sm:$0xf]  ;;  %v5637_v43 = vor.u32 %v6340_v36, %v5634_v37  ;;  %v6305_v36 = vld [vmem:[#allocation7 + $0x5b4] sm:$0xf0] }
 0x2d1   : > { %3172 = vmatpush.bf16.msra.mxu2 %v5765_v49  ;;  %3147 = vmatpush.bf16.msra.mxu0 %v5221_v50  ;;  %v4834_v39 = vld [vmem:[#allocation7 + $0xb0] sm:$0xf0]  ;;  %v5736_v37 = vld [vmem:[#allocation7 + $0x798] sm:$0xf] }
 0x2d2   : > { %v6204_v44 = vld [vmem:[#allocation7 + $0x294] sm:$0xf]  ;;  %v4837_v10 = vor.u32 %v6140_v38, %v4834_v39  ;;  %v5225_v38 = vor.u32 %v6241_v32, %v5224_v47  ;;  %v4936_v39 = vld [vmem:[#allocation7 + $0x158] sm:$0xf] }
 0x2d3   : > { %3160 = vmatpush.bf16.msra.mxu1 %v5477_v3  ;;  %3135 = vmatpush.bf16.msrb.mxu3 %v4933_v15  ;;  %v6268_v45 = vld [vmem:[#allocation7 + $0x494] sm:$0xf]  ;;  %v5093_v51 = vor.u32 %v6204_v44, %v5090_v17  ;;  %v5192_v17 = vld [vmem:[#allocation7 + $0x358] sm:$0xf] }
 0x2d4   : > { %v5346_v16 = vld [vmem:[#allocation7 + $0x4b0] sm:$0xf0]  ;;  %v6273_v32 = vld [vmem:[#allocation7 + $0x4b4] sm:$0xf0] }
 0x2d5   : > { %3173 = vmatpush.bf16.msra.mxu2 %v5733_v4  ;;  %3148 = vmatpush.bf16.msra.mxu0 %v5189_v18  ;;  %v6332_v46 = vld [vmem:[#allocation7 + $0x694] sm:$0xf]  ;;  %v5349_v49 = vor.u32 %v6268_v45, %v5346_v16  ;;  %v5000_v18 = vld [vmem:[#allocation7 + $0x1d8] sm:$0xf] }
 0x2d6   : > { %v5602_v42 = vld [vmem:[#allocation7 + $0x6b0] sm:$0xf0]  ;;  %v6233_v45 = vld [vmem:[#allocation7 + $0x374] sm:$0xf0] }
 0x2d7   : > { %3161 = vmatpush.bf16.msra.mxu1 %v5445_v22  ;;  %3136 = vmatpush.bf16.msrb.mxu3 %v4901_v27  ;;  %v6132_v14 = vld [vmem:[#allocation7 + $0x54] sm:$0xf]  ;;  %v5605_v53 = vor.u32 %v6332_v46, %v5602_v42  ;;  %v6249_v22 = vld [vmem:[#allocation7 + $0x3f4] sm:$0xf0] }
 0x2d8   : > { %v4802_v48 = vld [vmem:[#allocation7 + $0x70] sm:$0xf0]  ;;  %v5257_v20 = vor.u32 %v6249_v22, %v5256_v6  ;;  %v5448_v16 = vld [vmem:[#allocation7 + $0x558] sm:$0xf] }
 0x2d9   : > { %3174 = vmatpush.bf16.msra.mxu2 %v5701_v23  ;;  %3149 = vmatpush.bf16.msra.mxu0 %v5157_v28  ;;  %v6196_v54 = vld [vmem:[#allocation7 + $0x254] sm:$0xf]  ;;  %v4805_v2 = vor.u32 %v6132_v14, %v4802_v48  ;;  %v5512_v23 = vld [vmem:[#allocation7 + $0x5d8] sm:$0xf]  ;;  %v5001_v28 = vor.u32 %v6185_v21, %v5000_v18  ;;  %v5193_v48 = vor.u32 %v6233_v45, %v5192_v17 }
 0x2da   : > { %v5058_v19 = vld [vmem:[#allocation7 + $0x270] sm:$0xf0]  ;;  %v6297_v46 = vld [vmem:[#allocation7 + $0x574] sm:$0xf0] }
 0x2db   : > { %3162 = vmatpush.bf16.msra.mxu1 %v5413_v29  ;;  %3137 = vmatpush.bf16.msrb.mxu3 %v4869_v52  ;;  %v6260_v61 = vld [vmem:[#allocation7 + $0x454] sm:$0xf]  ;;  %v5061_v60 = vor.u32 %v6196_v54, %v5058_v19  ;;  %v6177_v29 = vld [vmem:[#allocation7 + $0x1b4] sm:$0xf0]  ;;  %v5449_v19 = vor.u32 %v6297_v46, %v5448_v16 }
 0x2dc   : > { %v5314_v62 = vld [vmem:[#allocation7 + $0x470] sm:$0xf0]  ;;  %v6369_v52 = vld [vmem:[#allocation7 + $0x7b4] sm:$0xf0] }
 0x2dd   : > { %3175 = vmatpush.bf16.msra.mxu2 %v5669_v30  ;;  %3150 = vmatpush.bf16.msra.mxu0 %v5125_v12  ;;  %v6324_v0 = vld [vmem:[#allocation7 + $0x654] sm:$0xf]  ;;  %v5317_v5 = vor.u32 %v6260_v61, %v5314_v62  ;;  %v5513_v30 = vor.u32 %v6313_v25, %v5512_v23  ;;  %v4969_v12 = vor.u32 %v6177_v29, %v4968_v7  ;;  %v5704_v42 = vld [vmem:[#allocation7 + $0x758] sm:$0xf] }
 0x2de   : > { %v5570_v59 = vld [vmem:[#allocation7 + $0x670] sm:$0xf0]  ;;  %v5737_v44 = vor.u32 %v6369_v52, %v5736_v37  ;;  %v6161_v54 = vld [vmem:[#allocation7 + $0x134] sm:$0xf0] }
 0x2df   : > { %3163 = vmatpush.bf16.msra.mxu1 %v5381_v41  ;;  %v6124_v50 = vld [vmem:[#allocation7 + $0x14] sm:$0xf]  ;;  %3138 = vmatpush.bf16.msrb.mxu3 %v4837_v10  ;;  %v5573_v40 = vor.u32 %v6324_v0, %v5570_v59  ;;  %v6169_v41 = vld [vmem:[#allocation7 + $0x174] sm:$0xf0] }
 0x2e0   : > { %v4770_v3 = vld [vmem:[#allocation7 + $0x30] sm:$0xf0]  ;;  %v6361_v10 = vld [vmem:[#allocation7 + $0x774] sm:$0xf0]  ;;  %v4937_v14 = vor.u32 %v6169_v41, %v4936_v39 }
 0x2e1   : > { %3176 = vmatpush.bf16.msra.mxu2 %v5637_v43  ;;  %3151 = vmatpush.bf16.msra.mxu0 %v5093_v51  ;;  %v6188_v4 = vld [vmem:[#allocation7 + $0x214] sm:$0xf]  ;;  %v4773_v57 = vor.u32 %v6124_v50, %v4770_v3  ;;  %v5481_v43 = vor.u32 %v6305_v36, %v5480_v35  ;;  %v5705_v61 = vor.u32 %v6361_v10, %v5704_v42  ;;  %v5160_v62 = vld [vmem:[#allocation7 + $0x318] sm:$0xf] }
 0x2e2   : > { %v5026_v8 = vld [vmem:[#allocation7 + $0x230] sm:$0xf0]  ;;  %v6225_v0 = vld [vmem:[#allocation7 + $0x334] sm:$0xf0] }
 0x2e3   : > { %3164 = vmatpush.bf16.msra.mxu1 %v5349_v49  ;;  %v6252_v9 = vld [vmem:[#allocation7 + $0x414] sm:$0xf]  ;;  %3139 = vmatpush.bf16.msrb.mxu3 %v4805_v2  ;;  %v5029_v24 = vor.u32 %v6188_v4, %v5026_v8  ;;  %v5416_v59 = vld [vmem:[#allocation7 + $0x518] sm:$0xf]  ;;  %v5161_v4 = vor.u32 %v6225_v0, %v5160_v62 }
 0x2e4   : > { %v5282_v11 = vld [vmem:[#allocation7 + $0x430] sm:$0xf0]  ;;  %v2895_v51 = vpop.f32.mrf.mxu0  ;;  %v6289_v50 = vld [vmem:[#allocation7 + $0x534] sm:$0xf0] }
 0x2e5   : > { %3177 = vmatpush.bf16.msra.mxu2 %v5605_v53  ;;  %v6316_v13 = vld [vmem:[#allocation7 + $0x614] sm:$0xf]  ;;  %3152 = vmatpush.bf16.msra.mxu0 %v5061_v60  ;;  %v5285_v1 = vor.u32 %v6252_v9, %v5282_v11  ;;  %v2908_v49 = vpop.f32.mrf.mxu1  ;;  %v4904_v53 = vld [vmem:[#allocation7 + $0x118] sm:$0xf] }
 0x2e6   : > { %v5538_v15 = vld [vmem:[#allocation7 + $0x630] sm:$0xf0]  ;;  %v5672_v2 = vld [vmem:[#allocation7 + $0x718] sm:$0xf]  ;;  %v4905_v3 = vor.u32 %v6161_v54, %v4904_v53 }
 0x2e7   : > { %3165 = vmatpush.bf16.msra.mxu1 %v5317_v5  ;;  %v5541_v27 = vor.u32 %v6316_v13, %v5538_v15  ;;  %3140 = vmatpush.bf16.msrb.mxu3 %v4773_v57  ;;  %v6353_v60 = vld [vmem:[#allocation7 + $0x734] sm:$0xf0] }
 0x2e8   : > { %v4872_v8 = vld [vmem:[#allocation7 + $0xd8] sm:$0xf]  ;;  %v5673_v9 = vor.u32 %v6353_v60, %v5672_v2 }
 0x2e9   : > { %3178 = vmatpush.bf16.msra.mxu2 %v5573_v40  ;;  %3153 = vmatpush.bf16.msra.mxu0 %v5029_v24  ;;  %v6153_v5 = vld [vmem:[#allocation7 + $0xf4] sm:$0xf0]  ;;  %v5417_v40 = vor.u32 %v6289_v50, %v5416_v59 }
 0x2ea   : > { %3141 = vmatmul.bf16.vlgmr.msrb.gmra.mxu3 %v7176_v55  ;;  %v2882_v11 = vpop.f32.mrf.mxu3  ;;  %v5128_v13 = vld [vmem:[#allocation7 + $0x2d8] sm:$0xf]  ;;  %v4873_v33 = vor.u32 %v6153_v5, %v4872_v8 }
 0x2eb   : > { %3166 = vmatpush.bf16.msra.mxu1 %v5285_v1  ;;  %3185 = vmatpush.bf16.msra.mxu3 %v5001_v28  ;;  %v6217_v15 = vld [vmem:[#allocation7 + $0x2f4] sm:$0xf0]  ;;  %v2896_v21 = vadd.f32 %v2895_v51, %v2882_v11  ;;  %v2921_v6 = vpop.f32.mrf.mxu2  ;;  %v6181_v11 = vld [vmem:[#allocation7 + $0x1dc] sm:$0xf] }
 0x2ec   : > { %3154 = vmatmul.bf16.vlgmr.msra.gmra.mxu0 %v7178_v56  ;;  %v5384_v18 = vld [vmem:[#allocation7 + $0x4d8] sm:$0xf]  ;;  %v2897_v24 = vpop.f32.mrf.mxu0  ;;  %v5129_v26 = vor.u32 %v6217_v15, %v5128_v13 }
 0x2ed   : > { %3179 = vmatpush.bf16.msra.mxu2 %v5541_v27  ;;  %3198 = vmatpush.bf16.msrb.mxu0 %v5257_v20  ;;  %v6281_v22 = vld [vmem:[#allocation7 + $0x4f4] sm:$0xf0]  ;;  %v2909_v25 = vadd.f32 %v2908_v49, %v2896_v21  ;;  %v2910_v1 = vpop.f32.mrf.mxu1  ;;  %v6245_v21 = vld [vmem:[#allocation7 + $0x3dc] sm:$0xf] }
 0x2ee   : > { %3167 = vmatmul.bf16.vlgmr.msra.gmra.mxu1 %v7180_v58  ;;  %v5640_v23 = vld [vmem:[#allocation7 + $0x6d8] sm:$0xf]  ;;  %v5385_v20 = vor.u32 %v6281_v22, %v5384_v18  ;;  %v5002_v18 = vld [vmem:[#allocation7 + $0x1f8] sm:$0xf0] }
 0x2ef   : > { %3211 = vmatpush.bf16.msrb.mxu1 %v5513_v30  ;;  %3186 = vmatpush.bf16.msra.mxu3 %v4969_v12  ;;  %v6345_v57 = vld [vmem:[#allocation7 + $0x6f4] sm:$0xf0]  ;;  %v7208_v47 = vadd.f32 %v2921_v6, %v2909_v25  ;;  %v5258_v6 = vld [vmem:[#allocation7 + $0x3f8] sm:$0xf0] }
 0x2f0   : > { %3180 = vmatmul.bf16.vlgmr.msra.gmra.mxu2 %v7182_v63  ;;  %v4840_v27 = vld [vmem:[#allocation7 + $0x98] sm:$0xf]  ;;  %v5641_v7 = vor.u32 %v6345_v57, %v5640_v23  ;;  %v6309_v22 = vld [vmem:[#allocation7 + $0x5dc] sm:$0xf] }
 0x2f1   : > { %3224 = vmatpush.bf16.msrb.mxu2 %v5769_v31  ;;  %3199 = vmatpush.bf16.msrb.mxu0 %v5225_v38  ;;  %v6145_v28 = vld [vmem:[#allocation7 + $0xb4] sm:$0xf0]  ;;  %v3289_v52 = vrot.slane %v7208_v47, 4  ;;  %v3345_v12 = vmul.f32 %v7208_v47, %v7208_v47  ;;  %v5514_v23 = vld [vmem:[#allocation7 + $0x5f8] sm:$0xf0] }
 0x2f2   : > { %v5096_v29 = vld [vmem:[#allocation7 + $0x298] sm:$0xf]  ;;  %v4841_v38 = vor.u32 %v6145_v28, %v4840_v27  ;;  %v2884_v45 = vpop.f32.mrf.mxu3  ;;  %v5770_v1 = vld [vmem:[#allocation7 + $0x7f8] sm:$0xf0] }
 0x2f3   : > { %3212 = vmatpush.bf16.msrb.mxu1 %v5481_v43  ;;  %3187 = vmatpush.bf16.msra.mxu3 %v4937_v14  ;;  %v6209_v30 = vld [vmem:[#allocation7 + $0x2b4] sm:$0xf0]  ;;  %v3290_v10 = vadd.f32 %v3289_v52, %v7208_v47  ;;  %v3353_v51 = vrot.slane %v3345_v12, 4  ;;  %v2923_v14 = vpop.f32.mrf.mxu2  ;;  %v6237_v52 = vld [vmem:[#allocation7 + $0x39c] sm:$0xf] }
 0x2f4   : > { %v5352_v31 = vld [vmem:[#allocation7 + $0x498] sm:$0xf]  ;;  %v5097_v39 = vor.u32 %v6209_v30, %v5096_v29  ;;  %v2947_v53 = vpop.f32.mrf.mxu0  ;;  %v6173_v29 = vld [vmem:[#allocation7 + $0x19c] sm:$0xf] }
 0x2f5   : > { %3225 = vmatpush.bf16.msrb.mxu2 %v5737_v44  ;;  %3200 = vmatpush.bf16.msrb.mxu0 %v5193_v48  ;;  %v5608_v35 = vld [vmem:[#allocation7 + $0x698] sm:$0xf]  ;;  %v5353_v44 = vor.u32 %v6273_v32, %v5352_v31  ;;  %v3291_v0 = vrot.slane %v3290_v10, 2  ;;  %v3354_v59 = vadd.f32 %v3353_v51, %v3345_v12  ;;  %v2960_v60 = vpop.f32.mrf.mxu1  ;;  %v4970_v30 = vld [vmem:[#allocation7 + $0x1b8] sm:$0xf0] }
 0x2f6   : > { %v6337_v36 = vld [vmem:[#allocation7 + $0x6b4] sm:$0xf0]  ;;  %v5226_v12 = vld [vmem:[#allocation7 + $0x3b8] sm:$0xf0]  ;;  %v4973_v51 = vor.u32 %v6173_v29, %v4970_v30 }
 0x2f7   : > { %3213 = vmatpush.bf16.msrb.mxu1 %v5449_v19  ;;  %3188 = vmatpush.bf16.msra.mxu3 %v4905_v3  ;;  %v4808_v37 = vld [vmem:[#allocation7 + $0x58] sm:$0xf]  ;;  %v5609_v17 = vor.u32 %v6337_v36, %v5608_v35  ;;  %v3292_v13 = vadd.f32 %v3291_v0, %v3290_v10  ;;  %v3355_v15 = vrot.slane %v3354_v59, 2  ;;  %v5261_v35 = vor.u32 %v6245_v21, %v5258_v6  ;;  %v5738_v10 = vld [vmem:[#allocation7 + $0x7b8] sm:$0xf0] }
 0x2f8   : > { %v6137_v41 = vld [vmem:[#allocation7 + $0x74] sm:$0xf0]  ;;  %v5229_v14 = vor.u32 %v6237_v52, %v5226_v12  ;;  %v6149_v30 = vld [vmem:[#allocation7 + $0xdc] sm:$0xf] }
 0x2f9   : > { %3226 = vmatpush.bf16.msrb.mxu2 %v5705_v61  ;;  %3201 = vmatpush.bf16.msrb.mxu0 %v5161_v4  ;;  %v5064_v43 = vld [vmem:[#allocation7 + $0x258] sm:$0xf]  ;;  %v4809_v50 = vor.u32 %v6137_v41, %v4808_v37  ;;  %v3293_v57 = vrot.slane %v3292_v13, 1  ;;  %v3356_v24 = vadd.f32 %v3355_v15, %v3354_v59  ;;  %v5194_v59 = vld [vmem:[#allocation7 + $0x378] sm:$0xf0] }
 0x2fa   : > { %v6201_v16 = vld [vmem:[#allocation7 + $0x274] sm:$0xf0]  ;;  %v6213_v52 = vld [vmem:[#allocation7 + $0x2dc] sm:$0xf] }
 0x2fb   : > { %3214 = vmatpush.bf16.msrb.mxu1 %v5417_v40  ;;  %3189 = vmatpush.bf16.msra.mxu3 %v4873_v33  ;;  %v5320_v46 = vld [vmem:[#allocation7 + $0x458] sm:$0xf]  ;;  %v5065_v2 = vor.u32 %v6201_v16, %v5064_v43  ;;  %v3294_v31 = vadd.f32 %v3293_v57, %v3292_v13  ;;  %v3357_v32 = vrot.slane %v3356_v24, 1  ;;  %v2973_v37 = vpop.f32.mrf.mxu2  ;;  %v6301_v43 = vld [vmem:[#allocation7 + $0x59c] sm:$0xf] }
 0x2fc   : > { %v6265_v42 = vld [vmem:[#allocation7 + $0x474] sm:$0xf0]  ;;  %v2949_v41 = vpop.f32.mrf.mxu0  ;;  %v4906_v13 = vld [vmem:[#allocation7 + $0x138] sm:$0xf0] }
 0x2fd   : > { %3227 = vmatpush.bf16.msrb.mxu2 %v5673_v9  ;;  %3202 = vmatpush.bf16.msrb.mxu0 %v5129_v26  ;;  %v5576_v48 = vld [vmem:[#allocation7 + $0x658] sm:$0xf]  ;;  %v5321_v8 = vor.u32 %v6265_v42, %v5320_v46  ;;  %v6373_v26 = vld [vmem:[#allocation7 + $0x7dc] sm:$0xf]  ;;  %v2962_v16 = vpop.f32.mrf.mxu1 }
 0x2fe   : > { %v6329_v49 = vld [vmem:[#allocation7 + $0x674] sm:$0xf0]  ;;  %v5482_v46 = vld [vmem:[#allocation7 + $0x5b8] sm:$0xf0] }
 0x2ff   : > { %3215 = vmatpush.bf16.msrb.mxu1 %v5385_v20  ;;  %v4776_v54 = vld [vmem:[#allocation7 + $0x18] sm:$0xf]  ;;  %3190 = vmatpush.bf16.msra.mxu3 %v4841_v38  ;;  %v5577_v5 = vor.u32 %v6329_v49, %v5576_v48  ;;  %v5005_v20 = vor.u32 %v6181_v11, %v5002_v18  ;;  %v5517_v38 = vor.u32 %v6309_v22, %v5514_v23  ;;  %v6365_v42 = vld [vmem:[#allocation7 + $0x79c] sm:$0xf] }
 0x300   : > { %v6129_v19 = vld [vmem:[#allocation7 + $0x34] sm:$0xf0]  ;;  %v5741_v0 = vor.u32 %v6365_v42, %v5738_v10  ;;  %v6157_v11 = vld [vmem:[#allocation7 + $0x11c] sm:$0xf] }
 0x301   : > { %3228 = vmatpush.bf16.msrb.mxu2 %v5641_v7  ;;  %v5032_v61 = vld [vmem:[#allocation7 + $0x218] sm:$0xf]  ;;  %3203 = vmatpush.bf16.msrb.mxu0 %v5097_v39  ;;  %v4777_v25 = vor.u32 %v6129_v19, %v4776_v54  ;;  %v2934_v7 = vpop.f32.mrf.mxu3  ;;  %v5773_v39 = vor.u32 %v6373_v26, %v5770_v1  ;;  %v6165_v54 = vld [vmem:[#allocation7 + $0x15c] sm:$0xf]  ;;  %v4909_v29 = vor.u32 %v6157_v11, %v4906_v13 }
 0x302   : > { %v6193_v62 = vld [vmem:[#allocation7 + $0x234] sm:$0xf0]  ;;  %v2948_v36 = vadd.f32 %v2947_v53, %v2934_v7  ;;  %v4938_v19 = vld [vmem:[#allocation7 + $0x178] sm:$0xf0] }
 0x303   : > { %v5288_v3 = vld [vmem:[#allocation7 + $0x418] sm:$0xf]  ;;  %3216 = vmatpush.bf16.msrb.mxu1 %v5353_v44  ;;  %3191 = vmatpush.bf16.msra.mxu3 %v4809_v50  ;;  %v5033_v33 = vor.u32 %v6193_v62, %v5032_v61  ;;  %v7215_v44 = vmul.f32 %v3294_v31, %v7003_v34  ;;  %v6229_v61 = vld [vmem:[#allocation7 + $0x35c] sm:$0xf]  ;;  %v5485_v62 = vor.u32 %v6301_v43, %v5482_v46  ;;  %v2975_v22 = vpop.f32.mrf.mxu2 }
 0x304   : > { %v6257_v4 = vld [vmem:[#allocation7 + $0x434] sm:$0xf0]  ;;  %v2961_v45 = vadd.f32 %v2960_v60, %v2948_v36  ;;  %v6293_v50 = vld [vmem:[#allocation7 + $0x55c] sm:$0xf]  ;;  %v5197_v6 = vor.u32 %v6229_v61, %v5194_v59 }
 0x305   : > { %3229 = vmatpush.bf16.msrb.mxu2 %v5609_v17  ;;  %v5544_v40 = vld [vmem:[#allocation7 + $0x618] sm:$0xf]  ;;  %3204 = vmatpush.bf16.msrb.mxu0 %v5065_v2  ;;  %v5289_v27 = vor.u32 %v6257_v4, %v5288_v3  ;;  %v3358_v17 = vadd.f32 %v3357_v32, %v3356_v24  ;;  %v3409_v49 = vmul.f32 %v7215_v44, %v7215_v44  ;;  %v5450_v2 = vld [vmem:[#allocation7 + $0x578] sm:$0xf0] }
 0x306   : > { %v6321_v9 = vld [vmem:[#allocation7 + $0x634] sm:$0xf0]  ;;  %v7220_v53 = vadd.f32 %v2973_v37, %v2961_v45  ;;  %v6221_v23 = vld [vmem:[#allocation7 + $0x31c] sm:$0xf]  ;;  %v5453_v57 = vor.u32 %v6293_v50, %v5450_v2 }
 0x307   : > { %3217 = vmatpush.bf16.msrb.mxu1 %v5321_v8  ;;  %v5545_v28 = vor.u32 %v6321_v9, %v5544_v40  ;;  %3192 = vmatpush.bf16.msra.mxu3 %v4777_v25  ;;  %v3401_v48 = vmul.f32 %v3358_v17, %v7003_v34  ;;  %v6357_v8 = vld [vmem:[#allocation7 + $0x75c] sm:$0xf]  ;;  %v4941_v40 = vor.u32 %v6165_v54, %v4938_v19 }
 0x308   : > { %v3295_v3 = vrot.slane %v7220_v53, 4  ;;  %v3346_v4 = vmul.f32 %v7220_v53, %v7220_v53  ;;  %v5162_v25 = vld [vmem:[#allocation7 + $0x338] sm:$0xf0] }
 0x309   : > { %3230 = vmatpush.bf16.msrb.mxu2 %v5577_v5  ;;  %3205 = vmatpush.bf16.msrb.mxu0 %v5033_v33  ;;  %v3417_v60 = vsub.f32 %v3401_v48, %v3409_v49  ;;  %v5706_v5 = vld [vmem:[#allocation7 + $0x778] sm:$0xf0]  ;;  %v2936_v9 = vpop.f32.mrf.mxu3  ;;  %v2999_v7 = vpop.f32.mrf.mxu0  ;;  %v5165_v36 = vor.u32 %v6221_v23, %v5162_v25 }
 0x30a   : > { %3193 = vmatmul.bf16.vlgmr.msra.gmra.mxu3 %v7176_v55  ;;  %v3296_v18 = vadd.f32 %v3295_v3, %v7220_v53  ;;  %v3359_v21 = vrot.slane %v3346_v4, 4  ;;  %v5709_v24 = vor.u32 %v6357_v8, %v5706_v5  ;;  %v6285_v33 = vld [vmem:[#allocation7 + $0x51c] sm:$0xf] }
 0x30b   : > { %3218 = vmatpush.bf16.msrb.mxu1 %v5289_v27  ;;  %3237 = vmatpush.bf16.msrb.mxu3 %v5005_v20  ;;  %v7229_v15 = vadd.f32 0.8, %v3417_v60  ;;  %v5418_v26 = vld [vmem:[#allocation7 + $0x538] sm:$0xf0] }
 0x30c   : > { %3206 = vmatmul.bf16.vlgmr.msrb.gmra.mxu0 %v7178_v56  ;;  %v3297_v1 = vrot.slane %v3296_v18, 2  ;;  %v3360_v27 = vadd.f32 %v3359_v21, %v3346_v4  ;;  %v5674_v20 = vld [vmem:[#allocation7 + $0x738] sm:$0xf0]  ;;  %v5421_v12 = vor.u32 %v6285_v33, %v5418_v26 }
 0x30d   : > { %3231 = vmatpush.bf16.msrb.mxu2 %v5545_v28  ;;  %3250 = vmatpush.bf16.msra.mxu0 %v5261_v35  ;;  %v6349_v28 = vld [vmem:[#allocation7 + $0x71c] sm:$0xf]  ;;  %6555 = vrsqrt.f32 %v7229_v15  ;;  %v3012_v35 = vpop.f32.mrf.mxu1  ;;  %vm3439_vm8 = vweird.f32 %v7229_v15 }
 0x30e   : > { %3219 = vmatmul.bf16.vlgmr.msrb.gmra.mxu1 %v7180_v58  ;;  %v3298_v31 = vadd.f32 %v3297_v1, %v3296_v18  ;;  %v3361_v32 = vrot.slane %v3360_v27, 2  ;;  %v4874_v37 = vld [vmem:[#allocation7 + $0xf8] sm:$0xf0] }
 0x30f   : > { %3263 = vmatpush.bf16.msra.mxu1 %v5517_v38  ;;  %3238 = vmatpush.bf16.msrb.mxu3 %v4973_v51  ;;  %v5677_v38 = vor.u32 %v6349_v28, %v5674_v20  ;;  %v6277_v41 = vld [vmem:[#allocation7 + $0x4dc] sm:$0xf]  ;;  %v4877_v48 = vor.u32 %v6149_v30, %v4874_v37 }
 0x310   : > { %3232 = vmatmul.bf16.vlgmr.msrb.gmra.mxu2 %v7182_v63  ;;  %v5386_v43 = vld [vmem:[#allocation7 + $0x4f8] sm:$0xf0]  ;;  %v3299_v17 = vrot.slane %v3298_v31, 1  ;;  %v3362_v45 = vadd.f32 %v3361_v32, %v3360_v27 }
 0x311   : > { %3276 = vmatpush.bf16.msra.mxu2 %v5773_v39  ;;  %3251 = vmatpush.bf16.msra.mxu0 %v5229_v14  ;;  %v5130_v39 = vld [vmem:[#allocation7 + $0x2f8] sm:$0xf0]  ;;  %v5389_v61 = vor.u32 %v6277_v41, %v5386_v43  ;;  %v3001_v9 = vpop.f32.mrf.mxu0 }
 0x312   : > { %v6341_v16 = vld [vmem:[#allocation7 + $0x6dc] sm:$0xf]  ;;  %v3300_v51 = vadd.f32 %v3299_v17, %v3298_v31  ;;  %v3363_v14 = vrot.slane %v3362_v45, 1  ;;  %v5133_v49 = vor.u32 %v6213_v52, %v5130_v39 }
 0x313   : > { %3264 = vmatpush.bf16.msra.mxu1 %v5485_v62  ;;  %3239 = vmatpush.bf16.msrb.mxu3 %v4941_v40  ;;  %v5642_v46 = vld [vmem:[#allocation7 + $0x6f8] sm:$0xf0]  ;;  %v7233_v50 = vpop.eup %6555  ;;  %v3025_v4 = vpop.f32.mrf.mxu2 }
 0x314   : > { %v6141_v42 = vld [vmem:[#allocation7 + $0x9c] sm:$0xf]  ;;  %v5645_v62 = vor.u32 %v6341_v16, %v5642_v46  ;;  %v7236_v2 = vmul.f32 %v3300_v51, %v7003_v34  ;;  %v3364_v60 = vadd.f32 %v3363_v14, %v3362_v45  ;;  %vm3440_vm6 = vweird.f32 %v7233_v50 }
 0x315   : > { %3277 = vmatpush.bf16.msra.mxu2 %v5741_v0  ;;  %3252 = vmatpush.bf16.msra.mxu0 %v5197_v6  ;;  %v4842_v10 = vld [vmem:[#allocation7 + $0xb8] sm:$0xf0]  ;;  %v2986_v0 = vpop.f32.mrf.mxu3  ;;  %v3014_v22 = vpop.f32.mrf.mxu1  ;;  %vm3441_vm10 = vmor %vm3439_vm8, %vm3440_vm6 }
 0x316   : > { %v6205_v54 = vld [vmem:[#allocation7 + $0x29c] sm:$0xf]  ;;  %v3000_v3 = vadd.f32 %v2999_v7, %v2986_v0  ;;  %v4845_v11 = vor.u32 %v6141_v42, %v4842_v10  ;;  %v3402_v18 = vmul.f32 %v3364_v60, %v7003_v34  ;;  %v3410_v21 = vmul.f32 %v7236_v2, %v7236_v2 }
 0x317   : > { %3265 = vmatpush.bf16.msra.mxu1 %v5453_v57  ;;  %3240 = vmatpush.bf16.msrb.mxu3 %v4909_v29  ;;  %v5098_v19 = vld [vmem:[#allocation7 + $0x2b8] sm:$0xf0] }
 0x318   : > { %v6269_v59 = vld [vmem:[#allocation7 + $0x49c] sm:$0xf]  ;;  %v5101_v13 = vor.u32 %v6205_v54, %v5098_v19  ;;  %v3013_v6 = vadd.f32 %v3012_v35, %v3000_v3  ;;  %v3418_v28 = vsub.f32 %v3402_v18, %v3410_v21 }
 0x319   : > { %3278 = vmatpush.bf16.msra.mxu2 %v5709_v24  ;;  %3253 = vmatpush.bf16.msra.mxu0 %v5165_v36  ;;  %v5354_v8 = vld [vmem:[#allocation7 + $0x4b8] sm:$0xf0]  ;;  %v3434_v24 = vmul.f32 %v7233_v50, %v7229_v15 }
 0x31a   : > { %v6333_v5 = vld [vmem:[#allocation7 + $0x69c] sm:$0xf]  ;;  %v5357_v25 = vor.u32 %v6269_v59, %v5354_v8  ;;  %v7243_v20 = vadd.f32 %v3025_v4, %v3013_v6  ;;  %v7245_v36 = vadd.f32 0.8, %v3418_v28 }
 0x31b   : > { %3266 = vmatpush.bf16.msra.mxu1 %v5421_v12  ;;  %v5610_v40 = vld [vmem:[#allocation7 + $0x6b8] sm:$0xf0]  ;;  %3241 = vmatpush.bf16.msrb.mxu3 %v4877_v48  ;;  %v3435_v39 = vmul.f32 %v7233_v50, %v3434_v24  ;;  %v3027_v51 = vpop.f32.mrf.mxu2 }
 0x31c   : > { %v6133_v23 = vld [vmem:[#allocation7 + $0x5c] sm:$0xf]  ;;  %v5613_v33 = vor.u32 %v6333_v5, %v5610_v40  ;;  %v3301_v37 = vrot.slane %v7243_v20, 4  ;;  %v3347_v52 = vmul.f32 %v7243_v20, %v7243_v20  ;;  %6557 = vrsqrt.f32 %v7245_v36 }
 0x31d   : > { %3279 = vmatpush.bf16.msra.mxu2 %v5677_v38  ;;  %3254 = vmatpush.bf16.msra.mxu0 %v5133_v49  ;;  %v4810_v57 = vld [vmem:[#allocation7 + $0x78] sm:$0xf0]  ;;  %v2988_v17 = vpop.f32.mrf.mxu3  ;;  %vm3449_vm11 = vweird.f32 %v7245_v36 }
 0x31e   : > { %v6197_v26 = vld [vmem:[#allocation7 + $0x25c] sm:$0xf]  ;;  %v4813_v31 = vor.u32 %v6133_v23, %v4810_v57  ;;  %v3302_v42 = vadd.f32 %v3301_v37, %v7243_v20  ;;  %v3365_v10 = vrot.slane %v3347_v52, 4 }
 0x31f   : > { %3267 = vmatpush.bf16.msra.mxu1 %v5389_v61  ;;  %v5066_v1 = vld [vmem:[#allocation7 + $0x278] sm:$0xf0]  ;;  %3242 = vmatpush.bf16.msrb.mxu3 %v4845_v11 }
 0x320   : > { %v6261_v27 = vld [vmem:[#allocation7 + $0x45c] sm:$0xf]  ;;  %v5069_v12 = vor.u32 %v6197_v26, %v5066_v1  ;;  %v3303_v49 = vrot.slane %v3302_v42, 2  ;;  %v3366_v54 = vadd.f32 %v3365_v10, %v3347_v52 }
 0x321   : > { %3280 = vmatpush.bf16.msra.mxu2 %v5645_v62  ;;  %v5322_v7 = vld [vmem:[#allocation7 + $0x478] sm:$0xf0]  ;;  %3255 = vmatpush.bf16.msra.mxu0 %v5101_v13  ;;  %v3436_v62 = vmul.f32 0.5, %v3435_v39 }
 0x322   : > { %v6325_v29 = vld [vmem:[#allocation7 + $0x65c] sm:$0xf]  ;;  %v5325_v41 = vor.u32 %v6261_v27, %v5322_v7  ;;  %v3304_v60 = vadd.f32 %v3303_v49, %v3302_v42  ;;  %v3367_v3 = vrot.slane %v3366_v54, 2  ;;  %v6558_v4 = vpop.eup %6557 }
 0x323   : > { %v5578_v30 = vld [vmem:[#allocation7 + $0x678] sm:$0xf0]  ;;  %3268 = vmatpush.bf16.msra.mxu1 %v5357_v25  ;;  %3243 = vmatpush.bf16.msrb.mxu3 %v4813_v31  ;;  %v3437_v11 = vsub.f32 1.5, %v3436_v62  ;;  %v3444_v13 = vmul.f32 %v6558_v4, %v7245_v36  ;;  %vm3450_vm9 = vweird.f32 %v6558_v4 }
 0x324   : > { %v6125_v32 = vld [vmem:[#allocation7 + $0x1c] sm:$0xf]  ;;  %v5581_v43 = vor.u32 %v6325_v29, %v5578_v30  ;;  %v3305_v5 = vrot.slane %v3304_v60, 1  ;;  %v3368_v40 = vadd.f32 %v3367_v3, %v3366_v54  ;;  %vm3451_vm12 = vmor %vm3449_vm11, %vm3450_vm9  ;;  %vm3564_vm9 = vcmask 1044484  }
 0x325   : > { %v4778_v35 = vld [vmem:[#allocation7 + $0x38] sm:$0xf0]  ;;  %3281 = vmatpush.bf16.msra.mxu2 %v5613_v33  ;;  %3256 = vmatpush.bf16.msra.mxu0 %v5069_v12  ;;  %v3445_v18 = vmul.f32 %v6558_v4, %v3444_v13  ;;  %v3438_v23 = vmul.f32 %v7233_v50, %v3437_v11 }
 0x326   : > { %v6189_v38 = vld [vmem:[#allocation7 + $0x21c] sm:$0xf]  ;;  %v4781_v19 = vor.u32 %v6125_v32, %v4778_v35  ;;  %v3306_v6 = vadd.f32 %v3305_v5, %v3304_v60  ;;  %v3369_v22 = vrot.slane %v3368_v40, 1 }
 0x327   : > { %v5034_v45 = vld [vmem:[#allocation7 + $0x238] sm:$0xf0]  ;;  %3269 = vmatpush.bf16.msra.mxu1 %v5325_v41  ;;  %v3446_v57 = vmul.f32 0.5, %v3445_v18 }
 0x328   : > { %v6253_v16 = vld [vmem:[#allocation7 + $0x41c] sm:$0xf]  ;;  %v5037_v61 = vor.u32 %v6189_v38, %v5034_v45  ;;  %3244 = vmatpush.bf16.msrb.mxu3 %v4781_v19  ;;  %v7266_v25 = vmul.f32 %v3306_v6, %v7003_v34 }
 0x329   : > { %v5290_v46 = vld [vmem:[#allocation7 + $0x438] sm:$0xf0]  ;;  %3282 = vmatpush.bf16.msra.mxu2 %v5581_v43  ;;  %v3447_v24 = vsub.f32 1.5, %v3446_v57  ;;  %v3051_v26 = vpop.f32.mrf.mxu0 }
 0x32a   : > { %v6317_v14 = vld [vmem:[#allocation7 + $0x61c] sm:$0xf]  ;;  %v5293_v0 = vor.u32 %v6253_v16, %v5290_v46  ;;  %3257 = vmatpush.bf16.msra.mxu0 %v5037_v61  ;;  %v3411_v29 = vmul.f32 %v7266_v25, %v7266_v25 }
 0x32b   : > { %v5546_v48 = vld [vmem:[#allocation7 + $0x638] sm:$0xf0]  ;;  %3245 = vmatmul.bf16.vlgmr.msrb.gmra.mxu3 %v7176_v55  ;;  %v3448_v33 = vmul.f32 %v6558_v4, %v3447_v24  ;;  %v3064_v1 = vpop.f32.mrf.mxu1 }
 0x32c   : > { %v5549_v59 = vor.u32 %v6317_v14, %v5546_v48  ;;  %v365_v8 = vld [vmem:[#allocation10 + $0x5] ss:$8 sm:$0xf]  ;;  %3270 = vmatpush.bf16.msra.mxu1 %v5293_v0 }
 0x32d   : > { %v366_v9 = vld [vmem:[#allocation10 + $0x5] ss:$8 sm:$0xf0]  ;;  %3258 = vmatmul.bf16.vlgmr.msra.gmra.mxu0 %v7178_v56  ;;  %v3452_v15 = vsel %vm3451_vm12, %v6558_v4, %v3448_v33 }
 0x32e   : > { %3283 = vmatpush.bf16.msra.mxu2 %v5549_v59  ;;  %v7256_v21 = vor.u32 %v366_v9, %v365_v8 }
 0x32f   : > { %3271 = vmatmul.bf16.vlgmr.msra.gmra.mxu1 %v7180_v58  ;;  %v3370_v58 = vadd.f32 %v3369_v22, %v3368_v40 }
 0x330   : > { %v3514_v55 = vperm.slane %v7256_v21, 0  ;;  %v3515_v56 = vperm.slane %v7256_v21, 1 }
 0x331   : > { %3284 = vmatmul.bf16.vlgmr.msra.gmra.mxu2 %v7182_v63  ;;  %v3442_v63 = vsel %vm3441_vm10, %v7233_v50, %v3438_v23  ;;  %v3403_v7 = vmul.f32 %v3370_v58, %v7003_v34  ;;  %v3038_v50 = vpop.f32.mrf.mxu3  ;;  %v3053_v52 = vpop.f32.mrf.mxu0 }
 0x332   : > { %v7270_v27 = vmul.f32 %v3514_v55, %v3442_v63  ;;  %v7272_v28 = vmul.f32 %v3515_v56, %v3452_v15  ;;  %v3052_v36 = vadd.f32 %v3051_v26, %v3038_v50  ;;  %v3516_v26 = vperm.slane %v7256_v21, 2 }
 0x333   : > { %v3419_v35 = vsub.f32 %v3403_v7, %v3411_v29  ;;  %v3077_v37 = vpop.f32.mrf.mxu2  ;;  %v3066_v39 = vpop.f32.mrf.mxu1 }
 0x334   : > { %v3539_v30 = vmul.f32 %v7272_v28, %v7236_v2  ;;  %v3538_v31 = vmul.f32 %v7270_v27, %v7215_v44  ;;  %v3065_v38 = vadd.f32 %v3064_v1, %v3052_v36 }
 0x335   : > { %v3427_v41 = vadd.f32 0.8, %v3419_v35 }
 0x336   : > { %v3554_v32 = vrot.slane %v3539_v30, 7  ;;  %v7284_v43 = vadd.f32 %v3077_v37, %v3065_v38  ;;  %v3517_v37 = vperm.slane %v7256_v21, 3 }
 0x337   : > { %6559 = vrsqrt.f32 %v3427_v41  ;;  %vm3459_vm13 = vweird.f32 %v3427_v41 }
 0x338   : > { %v7282_v12 = vsel %vm652_vm7, %v3538_v31, %v3554_v32  ;;  %v3307_v17 = vrot.slane %v7284_v43, 4  ;;  %v3348_v2 = vmul.f32 %v7284_v43, %v7284_v43 }
 0x339   : > { %v3040_v45 = vpop.f32.mrf.mxu3 }
 0x33a   : > { %v3308_v44 = vadd.f32 %v3307_v17, %v7284_v43  ;;  %v3371_v16 = vrot.slane %v3348_v2, 4 }
 0x33b   : > { %v3079_v46 = vpop.f32.mrf.mxu2 }
 0x33c   : > { %v3309_v42 = vrot.slane %v3308_v44, 2  ;;  %v3372_v10 = vadd.f32 %v3371_v16, %v3348_v2 }
 0x33d   : > { %v6560_v48 = vpop.eup %6559 }
 0x33e   : > { %v3310_v51 = vadd.f32 %v3309_v42, %v3308_v44  ;;  %v3373_v14 = vrot.slane %v3372_v10, 2  ;;  %v3454_v62 = vmul.f32 %v6560_v48, %v3427_v41  ;;  %vm3460_vm7 = vweird.f32 %v6560_v48 }
 0x33f   : > { %vm3461_vm14 = vmor %vm3459_vm13, %vm3460_vm7 }
 0x340   : > { %v3311_v49 = vrot.slane %v3310_v51, 1  ;;  %v3374_v54 = vadd.f32 %v3373_v14, %v3372_v10  ;;  %v3455_v4 = vmul.f32 %v6560_v48, %v3454_v62 }
 0x342   : > { %v3312_v19 = vadd.f32 %v3311_v49, %v3310_v51  ;;  %v3375_v61 = vrot.slane %v3374_v54, 1  ;;  %v3456_v11 = vmul.f32 0.5, %v3455_v4 }
 0x344   : > { %v3340_v0 = vmul.f32 %v3312_v19, %v7003_v34  ;;  %v3376_v59 = vadd.f32 %v3375_v61, %v3374_v54  ;;  %v3457_v13 = vsub.f32 1.5, %v3456_v11 }
 0x346   : > { %v3404_v60 = vmul.f32 %v3376_v59, %v7003_v34  ;;  %v3412_v3 = vmul.f32 %v3340_v0, %v3340_v0  ;;  %v3458_v56 = vmul.f32 %v6560_v48, %v3457_v13 }
 0x348   : > { %v3420_v8 = vsub.f32 %v3404_v60, %v3412_v3  ;;  %v3462_v7 = vsel %vm3461_vm14, %v6560_v48, %v3458_v56 }
 0x349   : > { %v3103_v5 = vpop.f32.mrf.mxu0  ;;  %v7299_v36 = vmul.f32 %v3516_v26, %v3462_v7 }
 0x34a   : > { %v3428_v40 = vadd.f32 0.8, %v3420_v8 }
 0x34b   : > { %v3116_v9 = vpop.f32.mrf.mxu1  ;;  %v3540_v45 = vmul.f32 %v7299_v36, %v7266_v25 }
 0x34c   : > { %6561 = vrsqrt.f32 %v3428_v40  ;;  %vm3469_vm0 = vweird.f32 %v3428_v40 }
 0x34d   : > { %v3090_v18 = vpop.f32.mrf.mxu3  ;;  %v3555_v10 = vrot.slane %v3540_v45, 6 }
 0x34e   : > { %v3104_v6 = vadd.f32 %v3103_v5, %v3090_v18 }
 0x350   : > { %v3117_v24 = vadd.f32 %v3116_v9, %v3104_v6 }
 0x351   : > { %v3105_v23 = vpop.f32.mrf.mxu0 }
 0x352   : > { %v6562_v57 = vpop.eup %6561 }
 0x353   : > { %v3129_v22 = vpop.f32.mrf.mxu2  ;;  %v3118_v55 = vpop.f32.mrf.mxu1  ;;  %v3464_v58 = vmul.f32 %v6562_v57, %v3428_v40  ;;  %vm3470_vm15 = vweird.f32 %v6562_v57 }
 0x354   : > { %v7292_v63 = vadd.f32 %v3129_v22, %v3117_v24  ;;  %vm3471_vm1 = vmor %vm3469_vm0, %vm3470_vm15  ;;  %vm3566_vm15 = vcmask 1046534   ;;  %vm3568_vm0 = vcmask 1045508  }
 0x355   : > { %v3465_v33 = vmul.f32 %v6562_v57, %v3464_v58  ;;  %v3092_v30 = vpop.f32.mrf.mxu3 }
 0x356   : > { %v3313_v1 = vrot.slane %v7292_v63, 4  ;;  %v3349_v15 = vmul.f32 %v7292_v63, %v7292_v63 }
 0x357   : > { %v3466_v29 = vmul.f32 0.5, %v3465_v33 }
 0x358   : > { %v3314_v50 = vadd.f32 %v3313_v1, %v7292_v63  ;;  %v3377_v31 = vrot.slane %v3349_v15, 4 }
 0x359   : > { %v3467_v35 = vsub.f32 1.5, %v3466_v29 }
 0x35a   : > { %v3315_v52 = vrot.slane %v3314_v50, 2  ;;  %v3378_v38 = vadd.f32 %v3377_v31, %v3349_v15 }
 0x35b   : > { %v3131_v32 = vpop.f32.mrf.mxu2  ;;  %v3468_v39 = vmul.f32 %v6562_v57, %v3467_v35 }
 0x35c   : > { %v3316_v41 = vadd.f32 %v3315_v52, %v3314_v50  ;;  %v3379_v17 = vrot.slane %v3378_v38, 2 }
 0x35d   : > { %v3472_v2 = vsel %vm3471_vm1, %v6562_v57, %v3468_v39  ;;  %vm3570_vm1 = vcmask 1043456  }
 0x35e   : > { %v7304_v44 = vmul.f32 %v3517_v37, %v3472_v2  ;;  %v3317_v16 = vrot.slane %v3316_v41, 1  ;;  %v3380_v46 = vadd.f32 %v3379_v17, %v3378_v38 }
 0x360   : > { %v3541_v42 = vmul.f32 %v7304_v44, %v3340_v0  ;;  %v3318_v14 = vadd.f32 %v3317_v16, %v3316_v41  ;;  %v3381_v48 = vrot.slane %v3380_v46, 1 }
 0x362   : > { %v3556_v51 = vrot.slane %v3541_v42, 5  ;;  %v7313_v19 = vmul.f32 %v3318_v14, %v7003_v34  ;;  %v3382_v25 = vadd.f32 %v3381_v48, %v3380_v46 }
 0x364   : > { %v3562_v49 = vsel %vm1298_vm4, %v3555_v10, %v3556_v51  ;;  %v3405_v59 = vmul.f32 %v3382_v25, %v7003_v34  ;;  %v3413_v0 = vmul.f32 %v7313_v19, %v7313_v19 }
 0x365   : > { %v7310_v54 = vsel %vm1300_vm5, %v7282_v12, %v3562_v49 }
 0x366   : > { %v3421_v3 = vsub.f32 %v3405_v59, %v3413_v0 }
 0x368   : > { %v3429_v12 = vadd.f32 0.8, %v3421_v3 }
 0x369   : > { %v3155_v61 = vpop.f32.mrf.mxu0 }
 0x36a   : > { %6563 = vrsqrt.f32 %v3429_v12  ;;  %vm3479_vm3 = vweird.f32 %v3429_v12 }
 0x36b   : > { %v3168_v62 = vpop.f32.mrf.mxu1 }
 0x36d   : > { %v3142_v60 = vpop.f32.mrf.mxu3 }
 0x36e   : > { %v3156_v4 = vadd.f32 %v3155_v61, %v3142_v60  ;;  %v3518_v61 = vperm.slane %v7256_v21, 4 }
 0x370   : > { %v3169_v40 = vadd.f32 %v3168_v62, %v3156_v4  ;;  %v6564_v33 = vpop.eup %6563 }
 0x371   : > { %v3157_v5 = vpop.f32.mrf.mxu0  ;;  %v3474_v29 = vmul.f32 %v6564_v33, %v3429_v12  ;;  %vm3480_vm2 = vweird.f32 %v6564_v33  ;;  %v3519_v12 = vperm.slane %v7256_v21, 5 }
 0x372   : > { %vm3481_vm4 = vmor %vm3479_vm3, %vm3480_vm2 }
 0x373   : > { %v3181_v8 = vpop.f32.mrf.mxu2  ;;  %v3170_v9 = vpop.f32.mrf.mxu1  ;;  %v3475_v35 = vmul.f32 %v6564_v33, %v3474_v29  ;;  %v6393_v29 = vld [vmem:[#allocation8 + $0x78] sm:$0xff] }
 0x374   : > { %v7318_v11 = vadd.f32 %v3181_v8, %v3169_v40  ;;  %4164 = vmatpush.bf16.msrb.mxu0 %v6393_v29 }
 0x375   : > { %v3144_v6 = vpop.f32.mrf.mxu3  ;;  %v3476_v41 = vmul.f32 0.5, %v3475_v35  ;;  %v6401_v35 = vld [vmem:[#allocation8 + $0xb8] sm:$0xff] }
 0x376   : > { %v3319_v13 = vrot.slane %v7318_v11, 4  ;;  %v3350_v18 = vmul.f32 %v7318_v11, %v7318_v11  ;;  %4177 = vmatpush.bf16.msrb.mxu1 %v6401_v35  ;;  %v6387_v35 = vld [vmem:[#allocation8 + $0x48] sm:$0xff] }
 0x377   : > { %v3477_v17 = vsub.f32 1.5, %v3476_v41  ;;  %v6400_v41 = vld [vmem:[#allocation8 + $0xb0] sm:$0xff] }
 0x378   : > { %v3320_v22 = vadd.f32 %v3319_v13, %v7318_v11  ;;  %v3383_v23 = vrot.slane %v3350_v18, 4 }
 0x379   : > { %v3478_v14 = vmul.f32 %v6564_v33, %v3477_v17 }
 0x37a   : > { %v3321_v24 = vrot.slane %v3320_v22, 2  ;;  %v3384_v55 = vadd.f32 %v3383_v23, %v3350_v18  ;;  %4178 = vmatpush.bf16.msrb.mxu1 %v6400_v41 }
 0x37b   : > { %v3183_v57 = vpop.f32.mrf.mxu2  ;;  %v3482_v0 = vsel %vm3481_vm4, %v6564_v33, %v3478_v14 }
 0x37c   : > { %v3322_v56 = vadd.f32 %v3321_v24, %v3320_v22  ;;  %v3385_v58 = vrot.slane %v3384_v55, 2  ;;  %v7333_v9 = vmul.f32 %v3518_v61, %v3482_v0  ;;  %v6398_v0 = vld [vmem:[#allocation8 + $0xa0] sm:$0xff] }
 0x37e   : > { %v3323_v26 = vrot.slane %v3322_v56, 1  ;;  %v3386_v1 = vadd.f32 %v3385_v58, %v3384_v55  ;;  %v3542_v24 = vmul.f32 %v7333_v9, %v7313_v19 }
 0x380   : > { %v3324_v15 = vadd.f32 %v3323_v26, %v3322_v56  ;;  %v3387_v7 = vrot.slane %v3386_v1, 1 }
 0x382   : > { %v3342_v30 = vmul.f32 %v3324_v15, %v7003_v34  ;;  %v3388_v50 = vadd.f32 %v3387_v7, %v3386_v1  ;;  %v6385_v7 = vld [vmem:[#allocation8 + $0x38] sm:$0xff] }
 0x383   : > { %4151 = vmatpush.bf16.msra.mxu3 %v6385_v7 }
 0x384   : > { %v3406_v31 = vmul.f32 %v3388_v50, %v7003_v34  ;;  %v3414_v32 = vmul.f32 %v3342_v30, %v3342_v30  ;;  %v3557_v50 = vrot.slane %v3542_v24, 4 }
 0x386   : > { %v3422_v37 = vsub.f32 %v3406_v31, %v3414_v32 }
 0x388   : > { %v3430_v38 = vadd.f32 0.8, %v3422_v37  ;;  %v6409_v37 = vld [vmem:[#allocation8 + $0xf8] sm:$0xff] }
 0x389   : > { %v3207_v52 = vpop.f32.mrf.mxu0  ;;  %4190 = vmatpush.bf16.msrb.mxu2 %v6409_v37  ;;  %v6395_v37 = vld [vmem:[#allocation8 + $0x88] sm:$0xff] }
 0x38a   : > { %6565 = vrsqrt.f32 %v3430_v38  ;;  %vm3489_vm6 = vweird.f32 %v3430_v38 }
 0x38b   : > { %v3220_v39 = vpop.f32.mrf.mxu1 }
 0x38d   : > { %v3194_v2 = vpop.f32.mrf.mxu3 }
 0x38e   : > { %v3208_v45 = vadd.f32 %v3207_v52, %v3194_v2  ;;  %v6408_v2 = vld [vmem:[#allocation8 + $0xf0] sm:$0xff] }
 0x38f   : > { %4191 = vmatpush.bf16.msrb.mxu2 %v6408_v2 }
 0x390   : > { %v6566_v42 = vpop.eup %6565  ;;  %v3221_v10 = vadd.f32 %v3220_v39, %v3208_v45  ;;  %v6392_v39 = vld [vmem:[#allocation8 + $0x70] sm:$0xff] }
 0x391   : > { %v3209_v46 = vpop.f32.mrf.mxu0  ;;  %v3484_v48 = vmul.f32 %v6566_v42, %v3430_v38  ;;  %vm3490_vm5 = vweird.f32 %v6566_v42  ;;  %v6384_v38 = vld [vmem:[#allocation8 + $0x30] sm:$0xff]  ;;  %4165 = vmatpush.bf16.msrb.mxu0 %v6392_v39 }
 0x392   : > { %vm3491_vm8 = vmor %vm3489_vm6, %vm3490_vm5  ;;  %4152 = vmatpush.bf16.msra.mxu3 %v6384_v38  ;;  %v6383_v46 = vld [vmem:[#allocation8 + $0x28] sm:$0xff] }
 0x393   : > { %v3233_v16 = vpop.f32.mrf.mxu2  ;;  %v3222_v51 = vpop.f32.mrf.mxu1  ;;  %v3485_v25 = vmul.f32 %v6566_v42, %v3484_v48 }
 0x394   : > { %v7326_v49 = vadd.f32 %v3233_v16, %v3221_v10  ;;  %v6399_v10 = vld [vmem:[#allocation8 + $0xa8] sm:$0xff] }
 0x395   : > { %v3486_v60 = vmul.f32 0.5, %v3485_v25  ;;  %v3196_v3 = vpop.f32.mrf.mxu3  ;;  %v6407_v51 = vld [vmem:[#allocation8 + $0xe8] sm:$0xff]  ;;  %4179 = vmatpush.bf16.msrb.mxu1 %v6399_v10  ;;  %v6417_v10 = vld [vmem:[#allocation8 + $0x138] sm:$0xff] }
 0x396   : > { %v3325_v62 = vrot.slane %v7326_v49, 4  ;;  %v3351_v59 = vmul.f32 %v7326_v49, %v7326_v49  ;;  %4153 = vmatpush.bf16.msra.mxu3 %v6383_v46  ;;  %4192 = vmatpush.bf16.msrb.mxu2 %v6407_v51  ;;  %v6406_v3 = vld [vmem:[#allocation8 + $0xe0] sm:$0xff]  ;;  %v6425_v51 = vld [vmem:[#allocation8 + $0x178] sm:$0xff] }
 0x397   : > { %v3487_v40 = vsub.f32 1.5, %v3486_v60 }
 0x398   : > { %v3326_v4 = vadd.f32 %v3325_v62, %v7326_v49  ;;  %v3389_v8 = vrot.slane %v3351_v59, 4  ;;  %v6382_v62 = vld [vmem:[#allocation8 + $0x20] sm:$0xff] }
 0x399   : > { %v3488_v6 = vmul.f32 %v6566_v42, %v3487_v40  ;;  %4180 = vmatpush.bf16.msrb.mxu1 %v6398_v0 }
 0x39a   : > { %v3327_v13 = vrot.slane %v3326_v4, 2  ;;  %v3390_v18 = vadd.f32 %v3389_v8, %v3351_v59  ;;  %v6390_v59 = vld [vmem:[#allocation8 + $0x60] sm:$0xff]  ;;  %4154 = vmatpush.bf16.msra.mxu3 %v6382_v62  ;;  %4193 = vmatpush.bf16.msrb.mxu2 %v6406_v3  ;;  %v6424_v3 = vld [vmem:[#allocation8 + $0x170] sm:$0xff] }
 0x39b   : > { %v3235_v5 = vpop.f32.mrf.mxu2  ;;  %v3492_v57 = vsel %vm3491_vm8, %v6566_v42, %v3488_v6  ;;  %v6391_v42 = vld [vmem:[#allocation8 + $0x68] sm:$0xff]  ;;  %v6405_v6 = vld [vmem:[#allocation8 + $0xd8] sm:$0xff] }
 0x39c   : > { %v3328_v22 = vadd.f32 %v3327_v13, %v3326_v4  ;;  %v3391_v23 = vrot.slane %v3390_v18, 2  ;;  %v3535_v55 = vmul.f32 %v3519_v12, %v3492_v57  ;;  %4166 = vmatpush.bf16.msrb.mxu0 %v6391_v42  ;;  %v6381_v12 = vld [vmem:[#allocation8 + $0x18] sm:$0xff]  ;;  %v6402_v42 = vld [vmem:[#allocation8 + $0xc0] sm:$0xff] }
 0x39d   : > { %v6389_v13 = vld [vmem:[#allocation8 + $0x58] sm:$0xff] }
 0x39e   : > { %v3329_v56 = vrot.slane %v3328_v22, 1  ;;  %v3392_v58 = vadd.f32 %v3391_v23, %v3390_v18  ;;  %v3543_v33 = vmul.f32 %v3535_v55, %v3342_v30  ;;  %v3579_v26 = vperm.slane %v3535_v55, 0  ;;  %v6397_v18 = vld [vmem:[#allocation8 + $0x98] sm:$0xff]  ;;  %4155 = vmatpush.bf16.msra.mxu3 %v6381_v12  ;;  %4194 = vmatpush.bf16.msrb.mxu2 %v6405_v6  ;;  %v6440_v12 = vld [vmem:[#allocation8 + $0x1f0] sm:$0xff]  ;;  %v6423_v6 = vld [vmem:[#allocation8 + $0x168] sm:$0xff] }
 0x39f   : > { %4181 = vmatpush.bf16.msrb.mxu1 %v6397_v18 }
 0x3a0   : > { %v3330_v1 = vadd.f32 %v3329_v56, %v3328_v22  ;;  %v3393_v15 = vrot.slane %v3392_v58, 1  ;;  %v3558_v31 = vrot.slane %v3543_v33, 3  ;;  %v7339_v32 = vmul.f32 %v3579_v26, %v7318_v11  ;;  %4167 = vmatpush.bf16.msrb.mxu0 %v6390_v59  ;;  %v6388_v33 = vld [vmem:[#allocation8 + $0x50] sm:$0xff] }
 0x3a1   : > { %v6396_v26 = vld [vmem:[#allocation8 + $0x90] sm:$0xff] }
 0x3a2   : > { %v7341_v19 = vsel %vm3564_vm9, %v3557_v50, %v3558_v31  ;;  %v7344_v30 = vmul.f32 %v3330_v1, %v7003_v34  ;;  %v3394_v52 = vadd.f32 %v3393_v15, %v3392_v58  ;;  %v6380_v58 = vld [vmem:[#allocation8 + $0x10] sm:$0xff]  ;;  %v6379_v31 = vld [vmem:[#allocation8 + $0x8] sm:$0xff] }
 0x3a3   : > { %v6404_v1 = vld [vmem:[#allocation8 + $0xd0] sm:$0xff]  ;;  %4156 = vmatpush.bf16.msra.mxu3 %v6380_v58  ;;  %4182 = vmatpush.bf16.msrb.mxu1 %v6396_v26  ;;  %v6438_v58 = vld [vmem:[#allocation8 + $0x1e0] sm:$0xff] }
 0x3a4   : > { %v3407_v11 = vmul.f32 %v3394_v52, %v7003_v34  ;;  %v3415_v16 = vmul.f32 %v7344_v30, %v7344_v30  ;;  %4168 = vmatpush.bf16.msrb.mxu0 %v6389_v13  ;;  %4195 = vmatpush.bf16.msrb.mxu2 %v6404_v1  ;;  %v6403_v52 = vld [vmem:[#allocation8 + $0xc8] sm:$0xff] }
 0x3a6   : > { %v3423_v48 = vsub.f32 %v3407_v11, %v3415_v16  ;;  %v6386_v11 = vld [vmem:[#allocation8 + $0x40] sm:$0xff] }
 0x3a7   : > { %4157 = vmatpush.bf16.msra.mxu3 %v6379_v31  ;;  %4183 = vmatpush.bf16.msrb.mxu1 %v6395_v37  ;;  %v6394_v16 = vld [vmem:[#allocation8 + $0x80] sm:$0xff]  ;;  %v6412_v37 = vld [vmem:[#allocation8 + $0x110] sm:$0xff] }
 0x3a8   : > { %v7349_v5 = vadd.f32 0.8, %v3423_v48  ;;  %4169 = vmatpush.bf16.msrb.mxu0 %v6388_v33  ;;  %4196 = vmatpush.bf16.msrb.mxu2 %v6403_v52  ;;  %v6420_v52 = vld [vmem:[#allocation8 + $0x150] sm:$0xff] }
 0x3aa   : > { %v3259_v17 = vpop.f32.mrf.mxu0  ;;  %6567 = vrsqrt.f32 %v7349_v5  ;;  %vm3499_vm11 = vweird.f32 %v7349_v5 }
 0x3ab   : > { %4184 = vmatpush.bf16.msrb.mxu1 %v6394_v16  ;;  %v6411_v16 = vld [vmem:[#allocation8 + $0x108] sm:$0xff] }
 0x3ac   : > { %v3272_v45 = vpop.f32.mrf.mxu1  ;;  %4170 = vmatpush.bf16.msrb.mxu0 %v6387_v35  ;;  %4197 = vmatpush.bf16.msrb.mxu2 %v6402_v42  ;;  %v3520_v35 = vperm.slane %v7256_v21, 6 }
 0x3ae   : > { %v3246_v14 = vpop.f32.mrf.mxu3 }
 0x3af   : > { %v3260_v25 = vadd.f32 %v3259_v17, %v3246_v14 }
 0x3b0   : > { %v7358_v38 = vpop.eup %6567  ;;  %4171 = vmatpush.bf16.msrb.mxu0 %v6386_v11 }
 0x3b1   : > { %v3273_v4 = vadd.f32 %v3272_v45, %v3260_v25  ;;  %v6378_v45 = vld [vmem:[#allocation8] sm:$0xff]  ;;  %v3494_v46 = vmul.f32 %v7358_v38, %v7349_v5  ;;  %v6433_v25 = vld [vmem:[#allocation8 + $0x1b8] sm:$0xff]  ;;  %vm3500_vm10 = vweird.f32 %v7358_v38  ;;  %v3521_v5 = vperm.slane %v7256_v21, 7 }
 0x3b2   : > { %v3261_v60 = vpop.f32.mrf.mxu0  ;;  %4158 = vmatpush.bf16.msra.mxu3 %v6378_v45  ;;  %4229 = vmatpush.bf16.msra.mxu1 %v6433_v25  ;;  %vm3501_vm12 = vmor %vm3499_vm11, %vm3500_vm10  ;;  %v6426_v21 = vld [vmem:[#allocation8 + $0x180] sm:$0xff] }
 0x3b3   : > { %v3495_v0 = vmul.f32 %v7358_v38, %v3494_v46  ;;  %v6416_v60 = vld [vmem:[#allocation8 + $0x130] sm:$0xff]  ;;  %v6419_v46 = vld [vmem:[#allocation8 + $0x148] sm:$0xff] }
 0x3b4   : > { %v3285_v61 = vpop.f32.mrf.mxu2  ;;  %v3274_v8 = vpop.f32.mrf.mxu1  ;;  %4216 = vmatpush.bf16.msra.mxu0 %v6425_v51 }
 0x3b5   : > { %v7351_v40 = vadd.f32 %v3285_v61, %v3273_v4  ;;  %v6441_v61 = vld [vmem:[#allocation8 + $0x1f8] sm:$0xff]  ;;  %v6432_v4 = vld [vmem:[#allocation8 + $0x1b0] sm:$0xff]  ;;  %v3496_v18 = vmul.f32 0.5, %v3495_v0 }
 0x3b6   : > { %v3248_v57 = vpop.f32.mrf.mxu3  ;;  %4203 = vmatpush.bf16.msrb.mxu3 %v6417_v10  ;;  %4242 = vmatpush.bf16.msra.mxu2 %v6441_v61  ;;  %v6427_v10 = vld [vmem:[#allocation8 + $0x188] sm:$0xff]  ;;  %v6410_v61 = vld [vmem:[#allocation8 + $0x100] sm:$0xff] }
 0x3b7   : > { %v3331_v22 = vrot.slane %v7351_v40, 4  ;;  %v3352_v23 = vmul.f32 %v7351_v40, %v7351_v40  ;;  %4230 = vmatpush.bf16.msra.mxu1 %v6432_v4  ;;  %v6414_v57 = vld [vmem:[#allocation8 + $0x120] sm:$0xff]  ;;  %v3574_v4 = vperm.slane %v7270_v27, 0 }
 0x3b8   : > { %4217 = vmatpush.bf16.msra.mxu0 %v6424_v3  ;;  %v369_v0 = vld [vmem:[#allocation10 + $0x6] ss:$8 sm:$0xf] }
 0x3b9   : > { %v3332_v24 = vadd.f32 %v3331_v22, %v7351_v40  ;;  %v3395_v55 = vrot.slane %v3352_v23, 4  ;;  %v6431_v22 = vld [vmem:[#allocation8 + $0x1a8] sm:$0xff] }
 0x3ba   : > { %4204 = vmatpush.bf16.msrb.mxu3 %v6416_v60  ;;  %4243 = vmatpush.bf16.msra.mxu2 %v6440_v12  ;;  %v370_v60 = vld [vmem:[#allocation10 + $0x6] ss:$8 sm:$0xf0] }
 0x3bb   : > { %v3333_v15 = vrot.slane %v3332_v24, 2  ;;  %v3396_v7 = vadd.f32 %v3395_v55, %v3352_v23  ;;  %v6439_v23 = vld [vmem:[#allocation8 + $0x1e8] sm:$0xff]  ;;  %v3497_v55 = vsub.f32 1.5, %v3496_v18  ;;  %4231 = vmatpush.bf16.msra.mxu1 %v6431_v22  ;;  %v3577_v18 = vperm.slane %v7304_v44, 0 }
 0x3bc   : > { %v3287_v56 = vpop.f32.mrf.mxu2  ;;  %4218 = vmatpush.bf16.msra.mxu0 %v6423_v6 }
 0x3bd   : > { %v3334_v29 = vadd.f32 %v3333_v15, %v3332_v24  ;;  %v3397_v50 = vrot.slane %v3396_v7, 2  ;;  %v6422_v24 = vld [vmem:[#allocation8 + $0x160] sm:$0xff]  ;;  %v3498_v26 = vmul.f32 %v7358_v38, %v3497_v55  ;;  %v6413_v15 = vld [vmem:[#allocation8 + $0x118] sm:$0xff]  ;;  %v3585_v55 = vmul.f32 %v3577_v18, %v7284_v43 }
 0x3be   : > { %4244 = vmatpush.bf16.msra.mxu2 %v6439_v23  ;;  %v6430_v56 = vld [vmem:[#allocation8 + $0x1a0] sm:$0xff] }
 0x3bf   : > { %v3335_v39 = vrot.slane %v3334_v29, 1  ;;  %v3398_v41 = vadd.f32 %v3397_v50, %v3396_v7  ;;  %4232 = vmatpush.bf16.msra.mxu1 %v6430_v56  ;;  %v6421_v7 = vld [vmem:[#allocation8 + $0x158] sm:$0xff] }
 0x3c0   : > { %4219 = vmatpush.bf16.msra.mxu0 %v6422_v24  ;;  %v6437_v50 = vld [vmem:[#allocation8 + $0x1d8] sm:$0xff] }
 0x3c1   : > { %v3336_v17 = vadd.f32 %v3335_v39, %v3334_v29  ;;  %v3399_v2 = vrot.slane %v3398_v41, 1  ;;  %v6429_v29 = vld [vmem:[#allocation8 + $0x198] sm:$0xff]  ;;  %v3502_v39 = vsel %vm3501_vm12, %v7358_v38, %v3498_v26  ;;  %v6435_v38 = vld [vmem:[#allocation8 + $0x1c8] sm:$0xff] }
 0x3c2   : > { %4245 = vmatpush.bf16.msra.mxu2 %v6438_v58  ;;  %v3536_v11 = vmul.f32 %v3520_v35, %v3502_v39 }
 0x3c3   : > { %v7363_v14 = vmul.f32 %v3336_v17, %v7003_v34  ;;  %v3400_v48 = vadd.f32 %v3399_v2, %v3398_v41  ;;  %4233 = vmatpush.bf16.msra.mxu1 %v6429_v29  ;;  %v6428_v17 = vld [vmem:[#allocation8 + $0x190] sm:$0xff] }
 0x3c4   : > { %4220 = vmatpush.bf16.msra.mxu0 %v6421_v7  ;;  %v6436_v2 = vld [vmem:[#allocation8 + $0x1d0] sm:$0xff]  ;;  %v3580_v6 = vperm.slane %v3536_v11, 0 }
 0x3c5   : > { %v3408_v62 = vmul.f32 %v3400_v48, %v7003_v34  ;;  %v3416_v59 = vmul.f32 %v7363_v14, %v7363_v14  ;;  %v6415_v34 = vld [vmem:[#allocation8 + $0x128] sm:$0xff]  ;;  %v3544_v48 = vmul.f32 %v3536_v11, %v7344_v30 }
 0x3c6   : > { %4205 = vmatpush.bf16.msrb.mxu3 %v6415_v34  ;;  %4246 = vmatpush.bf16.msra.mxu2 %v6437_v50  ;;  %v371_v34 = vor.u32 %v370_v60, %v369_v0 }
 0x3c7   : > { %v3424_v8 = vsub.f32 %v3408_v62, %v3416_v59  ;;  %4234 = vmatpush.bf16.msra.mxu1 %v6428_v17  ;;  %v6418_v62 = vld [vmem:[#allocation8 + $0x140] sm:$0xff]  ;;  %v3559_v12 = vrot.slane %v3544_v48, 2 }
 0x3c8   : > { %4221 = vmatpush.bf16.msra.mxu0 %v6420_v52  ;;  %v6434_v59 = vld [vmem:[#allocation8 + $0x1c0] sm:$0xff] }
 0x3c9   : > { %v3432_v13 = vadd.f32 0.8, %v3424_v8  ;;  %v3575_v8 = vperm.slane %v7272_v28, 0 }
 0x3ca   : > { %4206 = vmatpush.bf16.msrb.mxu3 %v6414_v57  ;;  %4247 = vmatpush.bf16.msra.mxu2 %v6436_v2  ;;  %v3582_v57 = vmul.f32 %v3574_v4, %v7208_v47 }
 0x3cb   : > { %6569 = vrsqrt.f32 %v3432_v13  ;;  %vm3509_vm13 = vweird.f32 %v3432_v13  ;;  %4235 = vmatpush.bf16.msra.mxu1 %v6427_v10  ;;  %v3583_v24 = vmul.f32 %v3575_v8, %v7220_v53 }
 0x3cc   : > { %4222 = vmatpush.bf16.msra.mxu0 %v6419_v46 }
 0x3ce   : > { %4207 = vmatpush.bf16.msrb.mxu3 %v6413_v15  ;;  %4248 = vmatpush.bf16.msra.mxu2 %v6435_v38 }
 0x3cf   : > { %4236 = vmatpush.bf16.msra.mxu1 %v6426_v21 }
 0x3d0   : > { %4223 = vmatpush.bf16.msra.mxu0 %v6418_v62 }
 0x3d1   : > { %v6570_v33 = vpop.eup %6569 }
 0x3d2   : > { %v3504_v1 = vmul.f32 %v6570_v33, %v3432_v13  ;;  %vm3510_vm7 = vweird.f32 %v6570_v33  ;;  %4208 = vmatpush.bf16.msrb.mxu3 %v6412_v37  ;;  %v3576_v13 = vperm.slane %v7299_v36, 0  ;;  %4249 = vmatpush.bf16.msra.mxu2 %v6434_v59 }
 0x3d3   : > { %vm3511_vm14 = vmor %vm3509_vm13, %vm3510_vm7 }
 0x3d4   : > { %v3505_v31 = vmul.f32 %v6570_v33, %v3504_v1  ;;  %v3584_v36 = vmul.f32 %v3576_v13, %v7243_v20 }
 0x3d6   : > { %v3506_v41 = vmul.f32 0.5, %v3505_v31  ;;  %4209 = vmatpush.bf16.msrb.mxu3 %v6411_v16 }
 0x3d8   : > { %v3507_v45 = vsub.f32 1.5, %v3506_v41 }
 0x3da   : > { %v3508_v42 = vmul.f32 %v6570_v33, %v3507_v45  ;;  %4210 = vmatpush.bf16.msrb.mxu3 %v6410_v61 }
 0x3dc   : > { %v3512_v51 = vsel %vm3511_vm14, %v6570_v33, %v3508_v42 }
 0x3dd   : > { %v3537_v25 = vmul.f32 %v3521_v5, %v3512_v51 }
 0x3df   : > { %v3545_v3 = vmul.f32 %v3537_v25, %v7363_v14  ;;  %v3578_v14 = vperm.slane %v7333_v9, 0  ;;  %v3581_v22 = vperm.slane %v3537_v25, 0  ;;  %v3588_v9 = vmul.f32 %v3580_v6, %v7326_v49 }
 0x3e1   : > { %v3560_v30 = vrot.slane %v3545_v3, 1  ;;  %v3586_v56 = vmul.f32 %v3578_v14, %v7292_v63  ;;  %v3589_v58 = vmul.f32 %v3581_v22, %v7351_v40  ;;  %v372_v3 = vld [vmem:[#allocation10 + $0x7] ss:$0 sm:$0xff] }
 0x3e3   : > { %v3567_v27 = vsel %vm3566_vm15, %v3559_v12, %v3560_v30 }
 0x3e4   : > { %v3569_v28 = vsel %vm3568_vm0, %v7341_v19, %v3567_v27 }
 0x3e5   : > { %v3571_v23 = vsel %vm3570_vm1, %v7310_v54, %v3569_v28 }
 0x3e6   : > { %v3573_v44 = vsub.f32 %v371_v34, %v3571_v23 }
 0x3e8   : > { %v3598_v33 = vperm.slane %v3573_v44, 7  ;;  %v3591_v26 = vperm.slane %v3573_v44, 0  ;;  %v3592_v19 = vperm.slane %v3573_v44, 1  ;;  %v3593_v1 = vperm.slane %v3573_v44, 2 }
 0x3e9   : > { %v3594_v54 = vperm.slane %v3573_v44, 3  ;;  %v3595_v15 = vperm.slane %v3573_v44, 4  ;;  %v3596_v47 = vperm.slane %v3573_v44, 5  ;;  %v3597_v7 = vperm.slane %v3573_v44, 6 }
 0x3ea   : > { %v3614_v53 = vadd.f32 %v3598_v33, %v3589_v58  ;;  %v3607_v29 = vadd.f32 %v3591_v26, %v3582_v57  ;;  %v3608_v20 = vadd.f32 %v3592_v19, %v3583_v24  ;;  %v3609_v50 = vadd.f32 %v3593_v1, %v3584_v36 }
 0x3eb   : > { %v3610_v31 = vadd.f32 %v3594_v54, %v3585_v55  ;;  %v3611_v43 = vadd.f32 %v3595_v15, %v3586_v56  ;;  %v3612_v63 = vadd.f32 %v3596_v47, %v7339_v32  ;;  %v3613_v35 = vadd.f32 %v3597_v7, %v3588_v9 }
 0x3ec   : > { %v3615_v49 = vmul.f32 0.2, %v3607_v29  ;;  %v3616_v37 = vmul.f32 0.2, %v3608_v20  ;;  %v3617_v40 = vmul.f32 0.2, %v3609_v50 }
 0x3ed   : > { %v3618_v52 = vmul.f32 0.2, %v3610_v31  ;;  %v3619_v46 = vmul.f32 0.2, %v3611_v43  ;;  %v3620_v42 = vmul.f32 0.2, %v3612_v63 }
 0x3ee   : > { %v3623_v39 = vmax.f32 %v3607_v29, %v3615_v49  ;;  %v3624_v41 = vmax.f32 %v3608_v20, %v3616_v37  ;;  %v3625_v17 = vmax.f32 %v3609_v50, %v3617_v40  ;;  %v3622_v32 = vmul.f32 0.2, %v3614_v53 }
 0x3ef   : > { %v3626_v2 = vmax.f32 %v3610_v31, %v3618_v52  ;;  %v3621_v10 = vmul.f32 0.2, %v3613_v35  ;;  %v3627_v38 = vmax.f32 %v3611_v43, %v3619_v46  ;;  %v3628_v51 = vmax.f32 %v3612_v63, %v3620_v42 }
 0x3f0   : > { %v3631_v45 = vpack.c.bf16 %v3623_v39, %v3623_v39  ;;  %v3632_v11 = vpack.c.bf16 %v3624_v41, %v3624_v41  ;;  %v3633_v5 = vpack.c.bf16 %v3625_v17, %v3625_v17  ;;  %v3630_v25 = vmax.f32 %v3614_v53, %v3622_v32 }
 0x3f1   : > { %v3634_v16 = vpack.c.bf16 %v3626_v2, %v3626_v2  ;;  %v3629_v48 = vmax.f32 %v3613_v35, %v3621_v10  ;;  %v3635_v61 = vpack.c.bf16 %v3627_v38, %v3627_v38  ;;  %v3636_v62 = vpack.c.bf16 %v3628_v51, %v3628_v51 }
 0x3f2   : > { %4159 = vmatmul.bf16.vlgmr.msra.gmra.mxu3 %v3631_v45  ;;  %4172 = vmatmul.bf16.vlgmr.msrb.gmra.mxu0 %v3632_v11  ;;  %v3638_v59 = vpack.c.bf16 %v3630_v25, %v3630_v25 }
 0x3f3   : > { %4185 = vmatmul.bf16.vlgmr.msrb.gmra.mxu1 %v3633_v5  ;;  %4198 = vmatmul.bf16.vlgmr.msrb.gmra.mxu2 %v3634_v16  ;;  %v3637_v21 = vpack.c.bf16 %v3629_v48, %v3629_v48 }
 0x402   : > { %4211 = vmatmul.bf16.vlgmr.msrb.gmra.mxu3 %v3635_v61  ;;  %4224 = vmatmul.bf16.vlgmr.msra.gmra.mxu0 %v3636_v62 }
 0x403   : > { %4237 = vmatmul.bf16.vlgmr.msra.gmra.mxu1 %v3637_v21  ;;  %4250 = vmatmul.bf16.vlgmr.msra.gmra.mxu2 %v3638_v59 }
 0x46f   : > { %v4173_v0 = vpop.f32.mrf.mxu0 }
 0x470   : > { %v4186_v60 = vpop.f32.mrf.mxu1 }
 0x475   : > { %v4160_v4 = vpop.f32.mrf.mxu3 }
 0x476   : > { %v4199_v8 = vpop.f32.mrf.mxu2  ;;  %v4161_v30 = vadd.f32 %v4160_v4, %v372_v3 }
 0x477   : > { %v4175_v12 = vpop.f32.mrf.mxu0 }
 0x478   : > { %v4188_v13 = vpop.f32.mrf.mxu1  ;;  %v4174_v18 = vadd.f32 %v4173_v0, %v4161_v30 }
 0x47a   : > { %v4187_v27 = vadd.f32 %v4186_v60, %v4174_v18 }
 0x47c   : > { %v4200_v28 = vadd.f32 %v4199_v8, %v4187_v27 }
 0x47d   : > { %v4162_v34 = vpop.f32.mrf.mxu3 }
 0x47e   : > { %v4201_v14 = vpop.f32.mrf.mxu2 }
 0x47f   : > { %v4225_v6 = vpop.f32.mrf.mxu0 }
 0x480   : > { %v4238_v22 = vpop.f32.mrf.mxu1 }
 0x485   : > { %v4212_v23 = vpop.f32.mrf.mxu3 }
 0x486   : > { %v4213_v57 = vadd.f32 %v4212_v23, %v4200_v28  ;;  %v4251_v24 = vpop.f32.mrf.mxu2 }
 0x487   : > { %v4227_v36 = vpop.f32.mrf.mxu0 }
 0x488   : > { %v4226_v44 = vadd.f32 %v4225_v6, %v4213_v57  ;;  %v4240_v55 = vpop.f32.mrf.mxu1 }
 0x48a   : > { %v4239_v56 = vadd.f32 %v4238_v22, %v4226_v44 }
 0x48c   : > { %v4252_v9 = vadd.f32 %v4251_v24, %v4239_v56 }
 0x48d   : > { %v4214_v58 = vpop.f32.mrf.mxu3 }
 0x48e   : > { %6571 = vtanh.f32 %v4252_v9  ;;  %v4253_v33 = vpop.f32.mrf.mxu2 }
 0x494   : > { %v6572_v26 = vpop.eup %6571 }
 0x495   : > { %4256 = vst [vmem:[%s350_s22] sm:$0xff] %v6572_v26 }
 0x496   : > { %6750 = shalt.err (!%p6747_p8)
}
 0x497   : > { %6462 = dma.vmem_to_hbm [thread:$0]  (%p6891_p5), %s4271_s29, 128, %s4273_s3, %s4258_s8  }
 0x498 PF: > { %p6494_p9 = scmp.ge.s32.totalorder %s6797_s27, 2  ;;  %s4284_s13 = sand.u32 1, %s6785_s24  }
 0x499   : > { %s4285_s19 = scalar_lea.sflag [#allocation4], %s4284_s13 }
 0x49a   : > { %p6481_p10 = pnand %p6494_p9, %p6895_p6 }
 0x49c   : > { %p6482_p11 = pneg %p6481_p10 }
 0x49e   : > { %6780 = dma.done.wait (%p6482_p11), %s4285_s19, 128  }
 0x49f   : > { %6782 = vsyncadd (%p6482_p11), %s4285_s19, 4294967168  ;;  %s7449_s17 = sld [smem:[#allocation16_spill]]  ;;  %p20_p12 = scmp.ge.s32.totalorder %s6878_s30, 6  }
 0x4a0   : > { %s7450_s26 = sld [smem:[#allocation17_spill]]  ;;  %s7451_s24 = smov %s6789_s25 }
 0x4a1   : > { %s7453_s27 = smov %s6878_s30  ;;  %22 = sbr.rel (!%p20_p12) target bundleno = 9 (0x9), region = 110 }
 0x4a5   : > { %s7452_s25 = smov %s7449_s17 }
 0x4a6   :  { %4291 = vsyncpa [#allocation3], 1 }
 0x4a7   :  { %4293 = vsyncpa [#allocation3 + $0x1], 1 }
 0x4a8   :  { %4294 = vsyncpa [#allocation6], 1 }
 0x4a9   :  { %4295 = vsyncpa [#allocation9], 1 }
 0x4aa   :  { %4296 = vsyncpa [#allocation4], 1 }
 0x4ab   :  { %4298 = vsyncpa [#allocation4 + $0x1], 1 }

</bundles_post_ra>
